<compile_context>
chip_gen: v5e
topology: v5e:2x2
jax: 0.10.0
libtpu: 0.0.40
codegen_flags: <defaults>
</compile_context>

<pallas_src>
from functools import partial

import jax
import jax.numpy as jnp
from jax import lax
from jax.experimental import pallas as pl
from jax.experimental.pallas import tpu as pltpu

HIDDEN = 768
EPS = 1e-12
_INV_SQRT2 = 0.7071067811865475
_SQRT_2_OVER_PI = 0.7978845608028654
# > every generation's default scoped VMEM limit, < v7x's 64 MiB physical.
_VMEM_LIMIT_BYTES = 48 * 1024 * 1024


def _mlp_kernel(x_ref, w_ref, b_ref, gamma_ref, beta_ref, o_ref, *, approx_gelu):
    # x_ref: (TM, HIDDEN) input dtype; w_ref: (HIDDEN, HIDDEN) bf16 (W^T layout);
    # b/gamma/beta: (1, HIDDEN) f32; o_ref: (TM, HIDDEN) output dtype.
    x_bf16 = x_ref[...].astype(jnp.bfloat16)

    # Dense: bf16 x bf16 -> f32 accumulate on the MXU (full K = N = 768).
    h = jnp.dot(x_bf16, w_ref[...], preferred_element_type=jnp.float32)
    h = h + b_ref[...]

    if approx_gelu:
        # tanh-approx GELU: the transcendental lands on the EUP slot instead of
        # a long f32 erf polynomial on the VALU (the binding slot on v6e/v7x).
        inner = _SQRT_2_OVER_PI * (h + 0.044715 * (h * h * h))
        h = 0.5 * h * (1.0 + jnp.tanh(inner))
    else:
        # Exact GELU (torch.nn.GELU default).
        h = 0.5 * h * (1.0 + lax.erf(h * _INV_SQRT2))

    # LayerNorm over last dim (biased variance, eps=1e-12); two-pass moments
    # in f32 (h is VMEM-resident, the extra pass is free filler here).
    inv_h = 1.0 / HIDDEN
    mean = jnp.sum(h, axis=-1, keepdims=True) * inv_h
    centered = h - mean
    var = jnp.sum(centered * centered, axis=-1, keepdims=True) * inv_h
    inv_std = lax.rsqrt(var + EPS)

    y = centered * inv_std * gamma_ref[...] + beta_ref[...]
    o_ref[...] = y.astype(o_ref.dtype)


def prepare_mlp_params(w, b, gamma, beta):
    """One-time parameter prep (call at model init, NOT per forward):
    transpose the PyTorch (out, in) Linear weight so the kernel computes
    x @ W^T, and cast it to bf16 to halve its HBM/DMA footprint."""
    w_t = jnp.asarray(w).T.astype(jnp.bfloat16)
    b2 = jnp.asarray(b).reshape(1, HIDDEN).astype(jnp.float32)
    g2 = jnp.asarray(gamma).reshape(1, HIDDEN).astype(jnp.float32)
    be2 = jnp.asarray(beta).reshape(1, HIDDEN).astype(jnp.float32)
    return w_t, b2, g2, be2


def _round_up(v, mult):
    return ((v + mult - 1) // mult) * mult


def _pick_tm(m, tm_max):
    """Row-tile choice: large lane/MXU-friendly tiles, but (a) never much
    larger than M and (b) at least 2 grid steps when M allows, so both v7x
    TensorCores see work under dimension_semantics=('parallel',)."""
    if m <= 128:
        return max(8, _round_up(m, 8))            # one small sublane-aligned tile
    tm = max(128, _round_up(pl.cdiv(m, 2), 128))  # aim for >= 2 grid steps
    return min(_round_up(tm_max, 128), tm)


@partial(jax.jit, static_argnames=("tm", "gelu"))
def mlp_forward(x, w_t, b2, g2, be2, *, tm=1024, gelu="auto"):
    """x: [..., 768]. (w_t, b2, g2, be2) = prepare_mlp_params(w, b, gamma, beta).
    Returns LayerNorm(GELU(x @ W^T + b)) with x's shape and dtype."""
    if gelu == "auto":
        kind = jax.devices()[0].device_kind.lower()
        # v6e/v7x: f32 erf saturates the VALU -> tanh (EUP). v5e and older:
        # VALU has slack -> keep exact erf (torch-default numerics).
        gelu = "tanh" if ("v6" in kind or "v7" in kind) else "exact"

    orig_shape = x.shape
    x2 = x.reshape(-1, HIDDEN)
    m = x2.shape[0]
    tm_eff = _pick_tm(m, tm)
    grid = (pl.cdiv(m, tm_eff),)

    cost = pl.CostEstimate(
        flops=2 * m * HIDDEN * HIDDEN + 12 * m * HIDDEN,
        transcendentals=m * HIDDEN,  # tanh/erf + rsqrt
        bytes_accessed=(
            x2.size * x2.dtype.itemsize        # activations in
            + HIDDEN * HIDDEN * 2               # bf16 weight
            + m * HIDDEN * x.dtype.itemsize     # activations out
            + 3 * HIDDEN * 4                    # bias / gamma / beta
        ),
    )

    out = pl.pallas_call(
        partial(_mlp_kernel, approx_gelu=(gelu == "tanh")),
        out_shape=jax.ShapeDtypeStruct((m, HIDDEN), x.dtype),
        grid_spec=pltpu.PrefetchScalarGridSpec(
            num_scalar_prefetch=0,
            grid=grid,
            in_specs=[
                pl.BlockSpec((tm_eff, HIDDEN), lambda i: (i, 0)),
                pl.BlockSpec((HIDDEN, HIDDEN), lambda i: (0, 0)),  # invariant
                pl.BlockSpec((1, HIDDEN), lambda i: (0, 0)),       # invariant
                pl.BlockSpec((1, HIDDEN), lambda i: (0, 0)),       # invariant
                pl.BlockSpec((1, HIDDEN), lambda i: (0, 0)),       # invariant
            ],
            out_specs=pl.BlockSpec((tm_eff, HIDDEN), lambda i: (i, 0)),
        ),
        compiler_params=pltpu.CompilerParams(
            dimension_semantics=("parallel",),
            vmem_limit_bytes=_VMEM_LIMIT_BYTES,
        ),
        cost_estimate=cost,
    )(x2, w_t, b2, g2, be2)

    return out.reshape(orig_shape)


def _reference_f32(x, w, b, gamma, beta):
    h = jnp.einsum("...i,oi->...o", x, w) + b
    h = 0.5 * h * (1.0 + lax.erf(h * _INV_SQRT2))  # exact GELU (torch default)
    mean = jnp.mean(h, axis=-1, keepdims=True)
    var = jnp.mean((h - mean) ** 2, axis=-1, keepdims=True)
    return (h - mean) * lax.rsqrt(var + EPS) * gamma + beta


if __name__ == "__main__":
    key = jax.random.PRNGKey(0)
    k_x, k_w, k_b, k_g, k_be = jax.random.split(key, 5)

    batch, seq = 2, 8
    x = jax.random.normal(k_x, (batch, seq, HIDDEN), dtype=jnp.float32)

    # Synthetic params; shapes match nn.Linear(768, 768) / nn.LayerNorm(768).
    w = jax.random.normal(k_w, (HIDDEN, HIDDEN), dtype=jnp.float32) * 0.02
    b = jax.random.normal(k_b, (HIDDEN,), dtype=jnp.float32) * 0.02
    gamma = 1.0 + 0.1 * jax.random.normal(k_g, (HIDDEN,), dtype=jnp.float32)
    beta = 0.1 * jax.random.normal(k_be, (HIDDEN,), dtype=jnp.float32)

    # One-time (model-init) weight transpose / bf16 cast -- not per-call.
    params = prepare_mlp_params(w, b, gamma, beta)

    out = mlp_forward(x, *params)
    out = jax.block_until_ready(out)
    assert out.shape == x.shape and out.dtype == x.dtype

    # bf16 MXU operands (+ tanh-GELU on v6e/v7x) vs exact f32 reference.
    ref = _reference_f32(x, w, b, gamma, beta)
    assert jnp.allclose(out, ref, atol=5e-2, rtol=5e-2), "mismatch vs reference"
    assert bool(jnp.all(jnp.isfinite(out)))

    # Ragged-M path: 185 rows -> grid of 2 with a partial final block, checks
    # Pallas masked final-block write (the jnp.pad removal).
    x_ragged = jax.random.normal(k_x, (185, HIDDEN), dtype=jnp.float32)
    out_r = jax.block_until_ready(mlp_forward(x_ragged, *params))
    ref_r = _reference_f32(x_ragged, w, b, gamma, beta)
    assert out_r.shape == x_ragged.shape
    assert jnp.allclose(out_r, ref_r, atol=5e-2, rtol=5e-2), "ragged mismatch"
    assert bool(jnp.all(jnp.isfinite(out_r)))

    print("KERNEL_OK")
</pallas_src>

<mosaic_0001>
module attributes {stable_mosaic.version = 11 : i64} {
  func.func @_mlp_kernel(%arg0: i32, %arg1: memref<16x768xf32, #tpu.memory_space<vmem>>, %arg2: memref<768x768xbf16, #tpu.memory_space<vmem>>, %arg3: memref<1x768xf32, #tpu.memory_space<vmem>>, %arg4: memref<1x768xf32, #tpu.memory_space<vmem>>, %arg5: memref<1x768xf32, #tpu.memory_space<vmem>>, %arg6: memref<16x768xf32, #tpu.memory_space<vmem>>) attributes {dimension_semantics = [#tpu.dimension_semantics<parallel>], iteration_bounds = array<i64: 1>, scalar_prefetch = 0 : i64, scratch_operands = 0 : i64, tpu.core_type = #tpu.core_type<tc>, window_params = [{transform_indices = @transform_0, window_bounds = array<i64: 16, 768>}, {pipeline_mode = #tpu.pipeline_mode<synchronous>, transform_indices = @transform_1, window_bounds = array<i64: 768, 768>}, {pipeline_mode = #tpu.pipeline_mode<synchronous>, transform_indices = @transform_2, window_bounds = array<i64: 1, 768>}, {pipeline_mode = #tpu.pipeline_mode<synchronous>, transform_indices = @transform_3, window_bounds = array<i64: 1, 768>}, {pipeline_mode = #tpu.pipeline_mode<synchronous>, transform_indices = @transform_4, window_bounds = array<i64: 1, 768>}, {transform_indices = @transform_5, window_bounds = array<i64: 16, 768>}]} {
    %c0 = arith.constant 0 : index
    %c0_0 = arith.constant 0 : index
    %0 = vector.load %arg1[%c0, %c0_0] : memref<16x768xf32, #tpu.memory_space<vmem>>, vector<16x768xf32>
    %1 = arith.truncf %0 : vector<16x768xf32> to vector<16x768xbf16>
    %c0_1 = arith.constant 0 : index
    %c0_2 = arith.constant 0 : index
    %2 = vector.load %arg2[%c0_1, %c0_2] : memref<768x768xbf16, #tpu.memory_space<vmem>>, vector<768x768xbf16>
    %cst = arith.constant dense<0.000000e+00> : vector<16x768xf32>
    %3 = tpu.matmul %1, %2, %cst {dimension_numbers = #tpu.dot_dimension_numbers<[1], [0], [0], [1], [0, 0, 1, 1], [], []>} : vector<16x768xbf16>, vector<768x768xbf16>, vector<16x768xf32> -> vector<16x768xf32>
    %c0_3 = arith.constant 0 : index
    %c0_4 = arith.constant 0 : index
    %4 = vector.load %arg3[%c0_3, %c0_4] : memref<1x768xf32, #tpu.memory_space<vmem>>, vector<1x768xf32>
    %5 = vector.broadcast %4 : vector<1x768xf32> to vector<16x768xf32>
    %6 = arith.addf %3, %5 : vector<16x768xf32>
    %cst_5 = arith.constant 5.000000e-01 : f32
    %7 = vector.broadcast %cst_5 : f32 to vector<16x768xf32>
    %8 = arith.mulf %7, %6 : vector<16x768xf32>
    %cst_6 = arith.constant 0.707106769 : f32
    %9 = vector.broadcast %cst_6 : f32 to vector<16x768xf32>
    %10 = arith.mulf %6, %9 : vector<16x768xf32>
    %11 = math.erf %10 : vector<16x768xf32>
    %cst_7 = arith.constant 1.000000e+00 : f32
    %12 = vector.broadcast %cst_7 : f32 to vector<16x768xf32>
    %13 = arith.addf %12, %11 : vector<16x768xf32>
    %14 = arith.mulf %8, %13 : vector<16x768xf32>
    %cst_8 = arith.constant dense<0.000000e+00> : vector<16xf32>
    %15 = vector.multi_reduction <add>, %14, %cst_8 [1] : vector<16x768xf32> to vector<16xf32>
    %16 = vector.shape_cast %15 : vector<16xf32> to vector<16x1xf32>
    %cst_9 = arith.constant 0.00130208337 : f32
    %17 = vector.broadcast %cst_9 : f32 to vector<16x1xf32>
    %18 = arith.mulf %16, %17 : vector<16x1xf32>
    %19 = vector.broadcast %18 : vector<16x1xf32> to vector<16x768xf32>
    %20 = arith.subf %14, %19 : vector<16x768xf32>
    %21 = arith.mulf %20, %20 : vector<16x768xf32>
    %cst_10 = arith.constant dense<0.000000e+00> : vector<16xf32>
    %22 = vector.multi_reduction <add>, %21, %cst_10 [1] : vector<16x768xf32> to vector<16xf32>
    %23 = vector.shape_cast %22 : vector<16xf32> to vector<16x1xf32>
    %cst_11 = arith.constant 0.00130208337 : f32
    %24 = vector.broadcast %cst_11 : f32 to vector<16x1xf32>
    %25 = arith.mulf %23, %24 : vector<16x1xf32>
    %cst_12 = arith.constant 9.99999996E-13 : f32
    %26 = vector.broadcast %cst_12 : f32 to vector<16x1xf32>
    %27 = arith.addf %25, %26 : vector<16x1xf32>
    %28 = math.rsqrt %27 : vector<16x1xf32>
    %29 = vector.broadcast %28 : vector<16x1xf32> to vector<16x768xf32>
    %30 = arith.mulf %20, %29 : vector<16x768xf32>
    %c0_13 = arith.constant 0 : index
    %c0_14 = arith.constant 0 : index
    %31 = vector.load %arg4[%c0_13, %c0_14] : memref<1x768xf32, #tpu.memory_space<vmem>>, vector<1x768xf32>
    %32 = vector.broadcast %31 : vector<1x768xf32> to vector<16x768xf32>
    %33 = arith.mulf %30, %32 : vector<16x768xf32>
    %c0_15 = arith.constant 0 : index
    %c0_16 = arith.constant 0 : index
    %34 = vector.load %arg5[%c0_15, %c0_16] : memref<1x768xf32, #tpu.memory_space<vmem>>, vector<1x768xf32>
    %35 = vector.broadcast %34 : vector<1x768xf32> to vector<16x768xf32>
    %36 = arith.addf %33, %35 : vector<16x768xf32>
    %c0_17 = arith.constant 0 : index
    %c0_18 = arith.constant 0 : index
    %37 = vector.load %arg6[%c0_17, %c0_18] : memref<16x768xf32, #tpu.memory_space<vmem>>, vector<16x768xf32>
    tpu.vector_store %arg6[%c0_17, %c0_18], %36 {strides = array<i32>} : memref<16x768xf32, #tpu.memory_space<vmem>>, vector<16x768xf32>,
    return
  }
  func.func @transform_0(%arg0: i32) -> (i32, i32) {
    %c0_i32 = arith.constant 0 : i32
    %c0_i32_0 = arith.constant 0 : i32
    return %arg0, %c0_i32 : i32, i32
  }
  func.func @transform_1(%arg0: i32) -> (i32, i32) {
    %c0_i32 = arith.constant 0 : i32
    %c0_i32_0 = arith.constant 0 : i32
    %c0_i32_1 = arith.constant 0 : i32
    return %c0_i32, %c0_i32_0 : i32, i32
  }
  func.func @transform_2(%arg0: i32) -> (i32, i32) {
    %c0_i32 = arith.constant 0 : i32
    %c0_i32_0 = arith.constant 0 : i32
    %c0_i32_1 = arith.constant 0 : i32
    return %c0_i32, %c0_i32_0 : i32, i32
  }
  func.func @transform_3(%arg0: i32) -> (i32, i32) {
    %c0_i32 = arith.constant 0 : i32
    %c0_i32_0 = arith.constant 0 : i32
    %c0_i32_1 = arith.constant 0 : i32
    return %c0_i32, %c0_i32_0 : i32, i32
  }
  func.func @transform_4(%arg0: i32) -> (i32, i32) {
    %c0_i32 = arith.constant 0 : i32
    %c0_i32_0 = arith.constant 0 : i32
    %c0_i32_1 = arith.constant 0 : i32
    return %c0_i32, %c0_i32_0 : i32, i32
  }
  func.func @transform_5(%arg0: i32) -> (i32, i32) {
    %c0_i32 = arith.constant 0 : i32
    %c0_i32_0 = arith.constant 0 : i32
    return %arg0, %c0_i32 : i32, i32
  }
}

</mosaic_0001>

<bundles_post_ra>
// kernel: mlp_forward.1
= control target key start
LH: loop header
LB: loop body
LE: loop exit
PB: predicated region body
PF: predicated region fallthrough
CT: control target
= control target key end

     0   :  { %10 = vsyncpa [#allocation3], 0  ;;  %s5490_s0 = inlined_call_operand.hbm [shape: f32[16,768], index: 0, kind: input, shape index: {}]   ;;  %s5491_s1 = inlined_call_operand.hbm [shape: bf16[768,768], index: 1, kind: input, shape index: {}]   ;;  %s5492_s2 = inlined_call_operand.hbm [shape: f32[1,768], index: 2, kind: input, shape index: {}]   ;;  %s5493_s3 = inlined_call_operand.hbm [shape: f32[1,768], index: 3, kind: input, shape index: {}]   ;;  %s5494_s4 = inlined_call_operand.hbm [shape: f32[1,768], index: 4, kind: input, shape index: {}]   ;;  %s5495_s5 = inlined_call_operand.hbm [shape: f32[16,768], index: 5, kind: output, shape index: {}]  }
   0x1   :  { %11 = vsyncpa [#allocation6], 0 }
   0x2   :  { %12 = vsyncpa [#allocation9], 0  ;;  %s31_s20 = sshll.u32 %s5491_s1, 4  ;;  %s32_s20 = int_to_ptr.hbm [resolvable:$true] %s31_s20 }
   0x3   :  { %13 = vsyncpa [#allocation4], 0  ;;  %s4703_s21 = smov [#allocation5]   ;;  %s56_s25 = sshll.u32 %s5493_s3, 4  ;;  %s57_s25 = int_to_ptr.hbm [resolvable:$true] %s56_s25 }
   0x4   :  { %s33_s22 = sshll.u32 %s4703_s21, 4  ;;  %s4704_s26 = smov 384   ;;  %s34_s22 = int_to_ptr.vmem [resolvable:$true] %s33_s22 }
   0x5   :  { %s4705_s27 = smov 24   ;;  %s4706_s28 = smov [#allocation8]  }
   0x6   :  { %39 = dma.hbm_to_vmem [thread:$0]  %s32_s20, 36864, %s34_s22, [#allocation6], %s4704_s26, %s4704_s26, %s4705_s27  }
   0x7   :  { %s58_s29 = sshll.u32 %s4706_s28, 4  ;;  %s18_s7 = sshll.u32 %s5490_s0, 4  ;;  %s59_s29 = int_to_ptr.vmem [resolvable:$true] %s58_s29  ;;  %s19_s7 = int_to_ptr.hbm [resolvable:$true] %s18_s7 }
   0x8   :  { %61 = dma.hbm_to_vmem [thread:$0]  %s57_s25, 96, %s59_s29, [#allocation9]  }
   0x9   :  { %s4707_s1 = smov [#allocation2]   ;;  %s45_s3 = sshll.u32 %s5492_s2, 4  ;;  %s46_s3 = int_to_ptr.hbm [resolvable:$true] %s45_s3 }
   0xa   :  { %s20_s8 = sshll.u32 %s4707_s1, 4  ;;  %s4708_s11 = smov 768   ;;  %s21_s8 = int_to_ptr.vmem [resolvable:$true] %s20_s8 }
   0xb   :  { %s4709_s12 = smov 48   ;;  %s4710_s13 = smov [#allocation7]  }
   0xc   :  { %26 = dma.hbm_to_vmem [thread:$0]  %s19_s7, 1536, %s21_s8, [#allocation3], %s4708_s11, %s4708_s11, %s4709_s12  }
   0xd   :  { %s47_s14 = sshll.u32 %s4710_s13, 4  ;;  %s67_s16 = sshll.u32 %s5494_s4, 4  ;;  %s48_s14 = int_to_ptr.vmem [resolvable:$true] %s47_s14  ;;  %s68_s16 = int_to_ptr.hbm [resolvable:$true] %s67_s16 }
   0xe   :  { %50 = dma.hbm_to_vmem [thread:$0]  %s46_s3, 96, %s48_s14, [#allocation6]  }
   0xf   :  { %s4711_s17 = smov [#allocation10]  }
  0x10   :  { %s69_s18 = sshll.u32 %s4711_s17, 4  ;;  %s70_s18 = int_to_ptr.vmem [resolvable:$true] %s69_s18 }
  0x11   :  { %72 = dma.hbm_to_vmem [thread:$0]  %s68_s16, 96, %s70_s18, [#allocation9]  }
  0x12   :  { %4695 = dma.done.wait [#allocation3], 1536  }
  0x13   :  { %4696 = vsyncadd [#allocation3], 4294965760 }
  0x14   :  { %4697 = dma.done.wait [#allocation6], 36960  }
  0x15   :  { %4698 = vsyncadd [#allocation6], 4294930336 }
  0x16   :  { %4699 = dma.done.wait [#allocation9], 192  }
  0x17   :  { %4700 = vsyncadd [#allocation9], 4294967104  ;;  %v3230_v0 = vld [vmem:[#allocation5 + $0x150] sm:$0xf]  ;;  %v4269_v1 = vld [vmem:[#allocation5 + $0x164] sm:$0xf0] }
  0x18   :  { %v3422_v2 = vld [vmem:[#allocation5 + $0x2d0] sm:$0xf]  ;;  %v3231_v3 = vor.u32 %v4269_v1, %v3230_v0  ;;  %v4317_v4 = vld [vmem:[#allocation5 + $0x2e4] sm:$0xf0]  ;;  %v3206_v11 = vld [vmem:[#allocation5 + $0x120] sm:$0xf] }
  0x19   :  { %v3614_v5 = vld [vmem:[#allocation5 + $0x450] sm:$0xf]  ;;  %v4365_v6 = vld [vmem:[#allocation5 + $0x464] sm:$0xf0]  ;;  %v3423_v7 = vor.u32 %v4317_v4, %v3422_v2  ;;  %v4263_v13 = vld [vmem:[#allocation5 + $0x134] sm:$0xf0] }
  0x1a   :  { %v3615_v8 = vor.u32 %v4365_v6, %v3614_v5  ;;  %v3806_v9 = vld [vmem:[#allocation5 + $0x5d0] sm:$0xf]  ;;  %v4413_v10 = vld [vmem:[#allocation5 + $0x5e4] sm:$0xf0]  ;;  %1853 = vmatpush.bf16.msra.mxu0 %v3231_v3  ;;  %v3398_v14 = vld [vmem:[#allocation5 + $0x2a0] sm:$0xf]  ;;  %v3207_v16 = vor.u32 %v4263_v13, %v3206_v11 }
  0x1b   :  { %v3807_v12 = vor.u32 %v4413_v10, %v3806_v9  ;;  %v4311_v15 = vld [vmem:[#allocation5 + $0x2b4] sm:$0xf0]  ;;  %1867 = vmatpush.bf16.msra.mxu1 %v3423_v7  ;;  %v3590_v18 = vld [vmem:[#allocation5 + $0x420] sm:$0xf]  ;;  %v3182_v23 = vld [vmem:[#allocation5 + $0xf0] sm:$0xf] }
  0x1c   :  { %1881 = vmatpush.bf16.msra.mxu2 %v3615_v8  ;;  %v3399_v17 = vor.u32 %v4311_v15, %v3398_v14  ;;  %v4359_v19 = vld [vmem:[#allocation5 + $0x434] sm:$0xf0]  ;;  %v3782_v20 = vld [vmem:[#allocation5 + $0x5a0] sm:$0xf]  ;;  %v4257_v24 = vld [vmem:[#allocation5 + $0x104] sm:$0xf0] }
  0x1d   :  { %1895 = vmatpush.bf16.msra.mxu3 %v3807_v12  ;;  %v3591_v21 = vor.u32 %v4359_v19, %v3590_v18  ;;  %v4407_v22 = vld [vmem:[#allocation5 + $0x5b4] sm:$0xf0]  ;;  %v3374_v26 = vld [vmem:[#allocation5 + $0x270] sm:$0xf]  ;;  %v4305_v27 = vld [vmem:[#allocation5 + $0x284] sm:$0xf0]  ;;  %v3183_v29 = vor.u32 %v4257_v24, %v3182_v23 }
  0x1e   :  { %v3783_v25 = vor.u32 %v4407_v22, %v3782_v20  ;;  %v3566_v28 = vld [vmem:[#allocation5 + $0x3f0] sm:$0xf]  ;;  %1854 = vmatpush.bf16.msra.mxu0 %v3207_v16  ;;  %v4353_v30 = vld [vmem:[#allocation5 + $0x404] sm:$0xf0]  ;;  %v3375_v33 = vor.u32 %v4305_v27, %v3374_v26  ;;  %v3158_v35 = vld [vmem:[#allocation5 + $0xc0] sm:$0xf] }
  0x1f   :  { %v3758_v31 = vld [vmem:[#allocation5 + $0x570] sm:$0xf]  ;;  %v4401_v32 = vld [vmem:[#allocation5 + $0x584] sm:$0xf0]  ;;  %1868 = vmatpush.bf16.msra.mxu1 %v3399_v17  ;;  %v3567_v34 = vor.u32 %v4353_v30, %v3566_v28  ;;  %v4251_v36 = vld [vmem:[#allocation5 + $0xd4] sm:$0xf0] }
  0x20   :  { %1882 = vmatpush.bf16.msra.mxu2 %v3591_v21  ;;  %v3350_v37 = vld [vmem:[#allocation5 + $0x240] sm:$0xf]  ;;  %v3759_v38 = vor.u32 %v4401_v32, %v3758_v31  ;;  %v4299_v39 = vld [vmem:[#allocation5 + $0x254] sm:$0xf0]  ;;  %v3159_v44 = vor.u32 %v4251_v36, %v3158_v35  ;;  %v3134_v47 = vld [vmem:[#allocation5 + $0x90] sm:$0xf] }
  0x21   :  { %1896 = vmatpush.bf16.msra.mxu3 %v3783_v25  ;;  %v3542_v40 = vld [vmem:[#allocation5 + $0x3c0] sm:$0xf]  ;;  %v4347_v41 = vld [vmem:[#allocation5 + $0x3d4] sm:$0xf0]  ;;  %v3351_v45 = vor.u32 %v4299_v39, %v3350_v37  ;;  %v4245_v48 = vld [vmem:[#allocation5 + $0xa4] sm:$0xf0] }
  0x22   :  { %v3734_v42 = vld [vmem:[#allocation5 + $0x540] sm:$0xf]  ;;  %v4395_v43 = vld [vmem:[#allocation5 + $0x554] sm:$0xf0]  ;;  %1855 = vmatpush.bf16.msra.mxu0 %v3183_v29  ;;  %v3543_v46 = vor.u32 %v4347_v41, %v3542_v40  ;;  %v3326_v49 = vld [vmem:[#allocation5 + $0x210] sm:$0xf]  ;;  %v3135_v56 = vor.u32 %v4245_v48, %v3134_v47 }
  0x23   :  { %1869 = vmatpush.bf16.msra.mxu1 %v3375_v33  ;;  %v3735_v50 = vor.u32 %v4395_v43, %v3734_v42  ;;  %v4293_v51 = vld [vmem:[#allocation5 + $0x224] sm:$0xf0]  ;;  %v3518_v52 = vld [vmem:[#allocation5 + $0x390] sm:$0xf]  ;;  %v3110_v59 = vld [vmem:[#allocation5 + $0x60] sm:$0xf] }
  0x24   :  { %1883 = vmatpush.bf16.msra.mxu2 %v3567_v34  ;;  %v4341_v53 = vld [vmem:[#allocation5 + $0x3a4] sm:$0xf0]  ;;  %v3710_v54 = vld [vmem:[#allocation5 + $0x510] sm:$0xf]  ;;  %v3327_v57 = vor.u32 %v4293_v51, %v3326_v49  ;;  %v4239_v60 = vld [vmem:[#allocation5 + $0x74] sm:$0xf0] }
  0x25   :  { %1897 = vmatpush.bf16.msra.mxu3 %v3759_v38  ;;  %v4389_v55 = vld [vmem:[#allocation5 + $0x524] sm:$0xf0]  ;;  %v3519_v58 = vor.u32 %v4341_v53, %v3518_v52  ;;  %v3302_v61 = vld [vmem:[#allocation5 + $0x1e0] sm:$0xf]  ;;  %v4287_v63 = vld [vmem:[#allocation5 + $0x1f4] sm:$0xf0]  ;;  %v3111_v4 = vor.u32 %v4239_v60, %v3110_v59 }
  0x26   :  { %1856 = vmatpush.bf16.msra.mxu0 %v3159_v44  ;;  %v3711_v62 = vor.u32 %v4389_v55, %v3710_v54  ;;  %v3494_v0 = vld [vmem:[#allocation5 + $0x360] sm:$0xf]  ;;  %v4335_v1 = vld [vmem:[#allocation5 + $0x374] sm:$0xf0]  ;;  %v3303_v5 = vor.u32 %v4287_v63, %v3302_v61  ;;  %v3086_v7 = vld [vmem:[#allocation5 + $0x30] sm:$0xf] }
  0x27   :  { %1870 = vmatpush.bf16.msra.mxu1 %v3351_v45  ;;  %v3686_v2 = vld [vmem:[#allocation5 + $0x4e0] sm:$0xf]  ;;  %v4383_v3 = vld [vmem:[#allocation5 + $0x4f4] sm:$0xf0]  ;;  %v3495_v6 = vor.u32 %v4335_v1, %v3494_v0  ;;  %v4233_v8 = vld [vmem:[#allocation5 + $0x44] sm:$0xf0] }
  0x28   :  { %1884 = vmatpush.bf16.msra.mxu2 %v3543_v46  ;;  %v3278_v9 = vld [vmem:[#allocation5 + $0x1b0] sm:$0xf]  ;;  %v3687_v10 = vor.u32 %v4383_v3, %v3686_v2  ;;  %v4281_v11 = vld [vmem:[#allocation5 + $0x1c4] sm:$0xf0]  ;;  %v3087_v16 = vor.u32 %v4233_v8, %v3086_v7  ;;  %v3062_v17 = vld [vmem:[#allocation5] sm:$0xf] }
  0x29   :  { %1898 = vmatpush.bf16.msra.mxu3 %v3735_v50  ;;  %v3470_v12 = vld [vmem:[#allocation5 + $0x330] sm:$0xf]  ;;  %v4329_v13 = vld [vmem:[#allocation5 + $0x344] sm:$0xf0]  ;;  %v4227_v18 = vld [vmem:[#allocation5 + $0x14] sm:$0xf0]  ;;  %v3279_v19 = vor.u32 %v4281_v11, %v3278_v9 }
  0x2a   :  { %1857 = vmatpush.bf16.msra.mxu0 %v3135_v56  ;;  %v3662_v14 = vld [vmem:[#allocation5 + $0x4b0] sm:$0xf]  ;;  %v4377_v15 = vld [vmem:[#allocation5 + $0x4c4] sm:$0xf0]  ;;  %v3471_v20 = vor.u32 %v4329_v13, %v3470_v12  ;;  %v3254_v21 = vld [vmem:[#allocation5 + $0x180] sm:$0xf]  ;;  %v3063_v31 = vor.u32 %v4227_v18, %v3062_v17 }
  0x2b   :  { %1871 = vmatpush.bf16.msra.mxu1 %v3327_v57  ;;  %v4275_v22 = vld [vmem:[#allocation5 + $0x194] sm:$0xf0]  ;;  %v3446_v23 = vld [vmem:[#allocation5 + $0x300] sm:$0xf]  ;;  %v3663_v24 = vor.u32 %v4377_v15, %v3662_v14  ;;  %v3998_v28 = vld [vmem:[#allocation5 + $0x750] sm:$0xf] }
  0x2c   :  { %1885 = vmatpush.bf16.msra.mxu2 %v3519_v58  ;;  %v4323_v25 = vld [vmem:[#allocation5 + $0x314] sm:$0xf0]  ;;  %v3638_v26 = vld [vmem:[#allocation5 + $0x480] sm:$0xf]  ;;  %v4461_v29 = vld [vmem:[#allocation5 + $0x764] sm:$0xf0]  ;;  %v3255_v35 = vor.u32 %v4275_v22, %v3254_v21 }
  0x2d   :  { %1899 = vmatpush.bf16.msra.mxu3 %v3711_v62  ;;  %v4371_v27 = vld [vmem:[#allocation5 + $0x494] sm:$0xf0]  ;;  %v4190_v30 = vld [vmem:[#allocation5 + $0x8d0] sm:$0xf]  ;;  %v4509_v32 = vld [vmem:[#allocation5 + $0x8e4] sm:$0xf0]  ;;  %v3447_v36 = vor.u32 %v4323_v25, %v3446_v23  ;;  %v3999_v40 = vor.u32 %v4461_v29, %v3998_v28 }
  0x2e   :  { %1858 = vmatpush.bf16.msra.mxu0 %v3111_v4  ;;  %v4266_v33 = vld [vmem:[#allocation5 + $0x154] sm:$0xf]  ;;  %v3232_v34 = vld [vmem:[#allocation5 + $0x168] sm:$0xf0]  ;;  %v3639_v39 = vor.u32 %v4371_v27, %v3638_v26  ;;  %v3974_v41 = vld [vmem:[#allocation5 + $0x720] sm:$0xf]  ;;  %v4191_v42 = vor.u32 %v4509_v32, %v4190_v30 }
  0x2f   :  { %1872 = vmatpush.bf16.msra.mxu1 %v3303_v5  ;;  %v4314_v37 = vld [vmem:[#allocation5 + $0x2d4] sm:$0xf]  ;;  %v3424_v38 = vld [vmem:[#allocation5 + $0x2e8] sm:$0xf0]  ;;  %v3235_v43 = vor.u32 %v4266_v33, %v3232_v34  ;;  %v4455_v44 = vld [vmem:[#allocation5 + $0x734] sm:$0xf0] }
  0x30   :  { %1886 = vmatpush.bf16.msra.mxu2 %v3495_v6  ;;  %v4166_v45 = vld [vmem:[#allocation5 + $0x8a0] sm:$0xf]  ;;  %v4503_v46 = vld [vmem:[#allocation5 + $0x8b4] sm:$0xf0]  ;;  %v3427_v47 = vor.u32 %v4314_v37, %v3424_v38  ;;  %v4260_v48 = vld [vmem:[#allocation5 + $0x124] sm:$0xf]  ;;  %v3975_v54 = vor.u32 %v4455_v44, %v3974_v41 }
  0x31   :  { %1900 = vmatpush.bf16.msra.mxu3 %v3687_v10  ;;  %v3208_v49 = vld [vmem:[#allocation5 + $0x138] sm:$0xf0]  ;;  %v4308_v50 = vld [vmem:[#allocation5 + $0x2a4] sm:$0xf]  ;;  %v99_v53 = vld [vmem:[#allocation2 + $0x30] sm:$0xff]  ;;  %v4167_v58 = vor.u32 %v4503_v46, %v4166_v45  ;;  %s4712_s2 = smov [#allocation11]  }
  0x32   :  { %1859 = vmatpush.bf16.msra.mxu0 %v3087_v16  ;;  %v3400_v51 = vld [vmem:[#allocation5 + $0x2b8] sm:$0xf0]  ;;  %v93_v52 = vld [vmem:[#allocation2] sm:$0xff]  ;;  %v3950_v55 = vld [vmem:[#allocation5 + $0x6f0] sm:$0xf]  ;;  %v3211_v59 = vor.u32 %v4260_v48, %v3208_v49  ;;  %s3043_s4 = sshll.u32 %s4712_s2, 4  ;;  %s3044_s4 = int_to_ptr.vmem [resolvable:$true] %s3043_s4 }
  0x33   :  { %1873 = vmatpush.bf16.msra.mxu1 %v3279_v19  ;;  %v4449_v56 = vld [vmem:[#allocation5 + $0x704] sm:$0xf0]  ;;  %v4761_v57 = vpack.c.bf16 %v99_v53, %v93_v52  ;;  %v4142_v60 = vld [vmem:[#allocation5 + $0x870] sm:$0xf]  ;;  %v4254_v62 = vld [vmem:[#allocation5 + $0xf4] sm:$0xf]  ;;  %v3403_v63 = vor.u32 %v4308_v50, %v3400_v51 }
  0x34   :  { %1887 = vmatpush.bf16.msra.mxu2 %v3471_v20  ;;  %v4497_v61 = vld [vmem:[#allocation5 + $0x884] sm:$0xf0]  ;;  %v3184_v0 = vld [vmem:[#allocation5 + $0x108] sm:$0xf0]  ;;  %v100_v2 = vld [vmem:[#allocation2 + $0x38] sm:$0xff]  ;;  %v3951_v7 = vor.u32 %v4449_v56, %v3950_v55  ;;  %s3045_s21 = sshll.u32 %s5495_s5, 4  ;;  %s3046_s21 = int_to_ptr.hbm [resolvable:$true] %s3045_s21 }
  0x35   :  { %1901 = vmatpush.bf16.msra.mxu3 %v3663_v24  ;;  %v94_v1 = vld [vmem:[#allocation2 + $0x8] sm:$0xff]  ;;  %v4302_v3 = vld [vmem:[#allocation5 + $0x274] sm:$0xf]  ;;  %v3926_v5 = vld [vmem:[#allocation5 + $0x6c0] sm:$0xf]  ;;  %v4143_v11 = vor.u32 %v4497_v61, %v4142_v60  ;;  %v3187_v12 = vor.u32 %v4254_v62, %v3184_v0 }
  0x36   :  { %1860 = vmatpush.bf16.msra.mxu0 %v3063_v31  ;;  %v3376_v4 = vld [vmem:[#allocation5 + $0x288] sm:$0xf0]  ;;  %v4764_v6 = vpack.c.bf16 %v100_v2, %v94_v1  ;;  %v4443_v8 = vld [vmem:[#allocation5 + $0x6d4] sm:$0xf0]  ;;  %v4118_v9 = vld [vmem:[#allocation5 + $0x840] sm:$0xf] }
  0x37   :  { %1874 = vmatpush.bf16.msra.mxu1 %v3255_v35  ;;  %v4491_v10 = vld [vmem:[#allocation5 + $0x854] sm:$0xf0]  ;;  %v4248_v13 = vld [vmem:[#allocation5 + $0xc4] sm:$0xf]  ;;  %v3160_v14 = vld [vmem:[#allocation5 + $0xd8] sm:$0xf0]  ;;  %v3379_v16 = vor.u32 %v4302_v3, %v3376_v4  ;;  %v3927_v24 = vor.u32 %v4443_v8, %v3926_v5 }
  0x38   :  { %1888 = vmatpush.bf16.msra.mxu2 %v3447_v36  ;;  %v95_v15 = vld [vmem:[#allocation2 + $0x10] sm:$0xff]  ;;  %v101_v17 = vld [vmem:[#allocation2 + $0x40] sm:$0xff]  ;;  %v96_v18 = vld [vmem:[#allocation2 + $0x18] sm:$0xff]  ;;  %v4119_v25 = vor.u32 %v4491_v10, %v4118_v9  ;;  %v3163_v26 = vor.u32 %v4248_v13, %v3160_v14 }
  0x39   :  { %1902 = vmatpush.bf16.msra.mxu3 %v3639_v39  ;;  %1861 = vmatmul.bf16.vlgmr.msra.gmra.mxu0 %v4761_v57  ;;  %v102_v19 = vld [vmem:[#allocation2 + $0x48] sm:$0xff]  ;;  %v4296_v20 = vld [vmem:[#allocation5 + $0x244] sm:$0xf]  ;;  %v3352_v21 = vld [vmem:[#allocation5 + $0x258] sm:$0xf0]  ;;  %v4767_v22 = vpack.c.bf16 %v101_v17, %v95_v15 }
  0x3a   :  { %1909 = vmatpush.bf16.msrb.mxu0 %v3999_v40  ;;  %1875 = vmatmul.bf16.vlgmr.msra.gmra.mxu1 %v4764_v6  ;;  %v4769_v23 = vpack.c.bf16 %v102_v19, %v96_v18  ;;  %v3902_v27 = vld [vmem:[#allocation5 + $0x690] sm:$0xf]  ;;  %v4437_v28 = vld [vmem:[#allocation5 + $0x6a4] sm:$0xf0]  ;;  %v3355_v30 = vor.u32 %v4296_v20, %v3352_v21  ;;  %v4242_v32 = vld [vmem:[#allocation5 + $0x94] sm:$0xf] }
  0x3b   :  { %1923 = vmatpush.bf16.msrb.mxu1 %v4191_v42  ;;  %v4094_v29 = vld [vmem:[#allocation5 + $0x810] sm:$0xf]  ;;  %v4485_v31 = vld [vmem:[#allocation5 + $0x824] sm:$0xf0]  ;;  %v3136_v33 = vld [vmem:[#allocation5 + $0xa8] sm:$0xf0]  ;;  %1889 = vmatmul.bf16.vlgmr.msra.gmra.mxu2 %v4767_v22  ;;  %v3903_v36 = vor.u32 %v4437_v28, %v3902_v27 }
  0x3c   :  { %1937 = vmatpush.bf16.msrb.mxu2 %v3235_v43  ;;  %v4290_v34 = vld [vmem:[#allocation5 + $0x214] sm:$0xf]  ;;  %v3328_v35 = vld [vmem:[#allocation5 + $0x228] sm:$0xf0]  ;;  %1903 = vmatmul.bf16.vlgmr.msra.gmra.mxu3 %v4769_v23  ;;  %v4095_v37 = vor.u32 %v4485_v31, %v4094_v29  ;;  %v3139_v38 = vor.u32 %v4242_v32, %v3136_v33  ;;  %v3878_v39 = vld [vmem:[#allocation5 + $0x660] sm:$0xf] }
  0x3d   :  { %1951 = vmatpush.bf16.msrb.mxu3 %v3427_v47  ;;  %v4431_v40 = vld [vmem:[#allocation5 + $0x674] sm:$0xf0]  ;;  %v4070_v41 = vld [vmem:[#allocation5 + $0x7e0] sm:$0xf]  ;;  %v3331_v42 = vor.u32 %v4290_v34, %v3328_v35  ;;  %v4236_v44 = vld [vmem:[#allocation5 + $0x64] sm:$0xf] }
  0x3e   :  { %1910 = vmatpush.bf16.msrb.mxu0 %v3975_v54  ;;  %v4479_v43 = vld [vmem:[#allocation5 + $0x7f4] sm:$0xf0]  ;;  %v3112_v45 = vld [vmem:[#allocation5 + $0x78] sm:$0xf0]  ;;  %v4284_v46 = vld [vmem:[#allocation5 + $0x1e4] sm:$0xf]  ;;  %v3879_v48 = vor.u32 %v4431_v40, %v3878_v39 }
  0x3f   :  { %1924 = vmatpush.bf16.msrb.mxu1 %v4167_v58  ;;  %v3304_v47 = vld [vmem:[#allocation5 + $0x1f8] sm:$0xf0]  ;;  %v4071_v49 = vor.u32 %v4479_v43, %v4070_v41  ;;  %v3115_v50 = vor.u32 %v4236_v44, %v3112_v45  ;;  %v3854_v51 = vld [vmem:[#allocation5 + $0x630] sm:$0xf]  ;;  %v4425_v52 = vld [vmem:[#allocation5 + $0x644] sm:$0xf0] }
  0x40   :  { %1938 = vmatpush.bf16.msrb.mxu2 %v3211_v59  ;;  %v4046_v53 = vld [vmem:[#allocation5 + $0x7b0] sm:$0xf]  ;;  %v3307_v54 = vor.u32 %v4284_v46, %v3304_v47  ;;  %v4473_v55 = vld [vmem:[#allocation5 + $0x7c4] sm:$0xf0]  ;;  %v4230_v56 = vld [vmem:[#allocation5 + $0x34] sm:$0xf]  ;;  %v3855_v61 = vor.u32 %v4425_v52, %v3854_v51 }
  0x41   :  { %1952 = vmatpush.bf16.msrb.mxu3 %v3403_v63  ;;  %v3088_v58 = vld [vmem:[#allocation5 + $0x48] sm:$0xf0]  ;;  %v4278_v59 = vld [vmem:[#allocation5 + $0x1b4] sm:$0xf]  ;;  %v3830_v62 = vld [vmem:[#allocation5 + $0x600] sm:$0xf]  ;;  %v4047_v1 = vor.u32 %v4473_v55, %v4046_v53 }
  0x42   :  { %1911 = vmatpush.bf16.msrb.mxu0 %v3951_v7  ;;  %v3280_v60 = vld [vmem:[#allocation5 + $0x1c8] sm:$0xf0]  ;;  %v4419_v63 = vld [vmem:[#allocation5 + $0x614] sm:$0xf0]  ;;  %v4022_v0 = vld [vmem:[#allocation5 + $0x780] sm:$0xf]  ;;  %v3091_v2 = vor.u32 %v4230_v56, %v3088_v58 }
  0x43   :  { %1925 = vmatpush.bf16.msrb.mxu1 %v4143_v11  ;;  %v4467_v3 = vld [vmem:[#allocation5 + $0x794] sm:$0xf0]  ;;  %v4224_v4 = vld [vmem:[#allocation5 + $0x4] sm:$0xf]  ;;  %v3064_v5 = vld [vmem:[#allocation5 + $0x18] sm:$0xf0]  ;;  %v3283_v7 = vor.u32 %v4278_v59, %v3280_v60  ;;  %v3831_v14 = vor.u32 %v4419_v63, %v3830_v62 }
  0x44   :  { %1939 = vmatpush.bf16.msrb.mxu2 %v3187_v12  ;;  %v4272_v8 = vld [vmem:[#allocation5 + $0x184] sm:$0xf]  ;;  %v3256_v9 = vld [vmem:[#allocation5 + $0x198] sm:$0xf0]  ;;  %v4362_v10 = vld [vmem:[#allocation5 + $0x454] sm:$0xf]  ;;  %v4023_v18 = vor.u32 %v4467_v3, %v4022_v0  ;;  %v3067_v19 = vor.u32 %v4224_v4, %v3064_v5 }
  0x45   :  { %1953 = vmatpush.bf16.msrb.mxu3 %v3379_v16  ;;  %v3616_v11 = vld [vmem:[#allocation5 + $0x468] sm:$0xf0]  ;;  %v4410_v12 = vld [vmem:[#allocation5 + $0x5d4] sm:$0xf]  ;;  %v97_v21 = vld [vmem:[#allocation2 + $0x20] sm:$0xff] }
  0x46   :  { %1912 = vmatpush.bf16.msrb.mxu0 %v3927_v24  ;;  %v3808_v13 = vld [vmem:[#allocation5 + $0x5e8] sm:$0xf0]  ;;  %v4458_v15 = vld [vmem:[#allocation5 + $0x754] sm:$0xf]  ;;  %v104_v28 = vld [vmem:[#allocation2 + $0x58] sm:$0xff] }
  0x47   :  { %1926 = vmatpush.bf16.msrb.mxu1 %v4119_v25  ;;  %v4000_v16 = vld [vmem:[#allocation5 + $0x768] sm:$0xf0]  ;;  %v4506_v17 = vld [vmem:[#allocation5 + $0x8d4] sm:$0xf]  ;;  %v3259_v25 = vor.u32 %v4272_v8, %v3256_v9  ;;  %v3811_v29 = vor.u32 %v4410_v12, %v3808_v13  ;;  %v4356_v31 = vld [vmem:[#allocation5 + $0x424] sm:$0xf] }
  0x48   :  { %1940 = vmatpush.bf16.msrb.mxu2 %v3163_v26  ;;  %v4192_v20 = vld [vmem:[#allocation5 + $0x8e8] sm:$0xf0]  ;;  %v103_v24 = vld [vmem:[#allocation2 + $0x50] sm:$0xff]  ;;  %v3619_v26 = vor.u32 %v4362_v10, %v3616_v11  ;;  %v3592_v32 = vld [vmem:[#allocation5 + $0x438] sm:$0xf0] }
  0x49   :  { %1954 = vmatpush.bf16.msrb.mxu3 %v3355_v30  ;;  %v98_v27 = vld [vmem:[#allocation2 + $0x28] sm:$0xff]  ;;  %v4003_v30 = vor.u32 %v4458_v15, %v4000_v16  ;;  %v4404_v33 = vld [vmem:[#allocation5 + $0x5a4] sm:$0xf]  ;;  %v4195_v34 = vor.u32 %v4506_v17, %v4192_v20  ;;  %v4773_v35 = vpack.c.bf16 %v103_v24, %v97_v21  ;;  %v4168_v41 = vld [vmem:[#allocation5 + $0x8b8] sm:$0xf0] }
  0x4a   :  { %1913 = vmatpush.bf16.msrb.mxu0 %v3903_v36  ;;  %v3784_v36 = vld [vmem:[#allocation5 + $0x5b8] sm:$0xf0]  ;;  %v4775_v39 = vpack.c.bf16 %v104_v28, %v98_v27  ;;  %v4500_v40 = vld [vmem:[#allocation5 + $0x8a4] sm:$0xf]  ;;  %v4350_v45 = vld [vmem:[#allocation5 + $0x3f4] sm:$0xf] }
  0x4b   :  { %1927 = vmatpush.bf16.msrb.mxu1 %v4095_v37  ;;  %v4452_v37 = vld [vmem:[#allocation5 + $0x724] sm:$0xf]  ;;  %v3787_v43 = vor.u32 %v4404_v33, %v3784_v36  ;;  %v3568_v46 = vld [vmem:[#allocation5 + $0x408] sm:$0xf0]  ;;  %v4398_v47 = vld [vmem:[#allocation5 + $0x574] sm:$0xf] }
  0x4c   :  { %1941 = vmatpush.bf16.msrb.mxu2 %v3139_v38  ;;  %v3976_v38 = vld [vmem:[#allocation5 + $0x738] sm:$0xf0]  ;;  %v3952_v51 = vld [vmem:[#allocation5 + $0x708] sm:$0xf0]  ;;  %v4494_v52 = vld [vmem:[#allocation5 + $0x874] sm:$0xf] }
  0x4d   :  { %1955 = vmatpush.bf16.msrb.mxu3 %v3331_v42  ;;  %v3595_v42 = vor.u32 %v4356_v31, %v3592_v32  ;;  %v3979_v44 = vor.u32 %v4452_v37, %v3976_v38  ;;  %v4144_v53 = vld [vmem:[#allocation5 + $0x888] sm:$0xf0]  ;;  %v4344_v58 = vld [vmem:[#allocation5 + $0x3c4] sm:$0xf]  ;;  %v3544_v59 = vld [vmem:[#allocation5 + $0x3d8] sm:$0xf0] }
  0x4e   :  { %1914 = vmatpush.bf16.msrb.mxu0 %v3879_v48  ;;  %v4171_v48 = vor.u32 %v4500_v40, %v4168_v41  ;;  %v4392_v60 = vld [vmem:[#allocation5 + $0x544] sm:$0xf]  ;;  %v3736_v62 = vld [vmem:[#allocation5 + $0x558] sm:$0xf0]  ;;  %v3547_v3 = vor.u32 %v4344_v58, %v3544_v59  ;;  %v3520_v8 = vld [vmem:[#allocation5 + $0x3a8] sm:$0xf0] }
  0x4f   :  { %1928 = vmatpush.bf16.msrb.mxu1 %v4071_v49  ;;  %v3760_v49 = vld [vmem:[#allocation5 + $0x588] sm:$0xf0]  ;;  %v4440_v63 = vld [vmem:[#allocation5 + $0x6c4] sm:$0xf]  ;;  %v3928_v0 = vld [vmem:[#allocation5 + $0x6d8] sm:$0xf0]  ;;  %v3739_v4 = vor.u32 %v4392_v60, %v3736_v62 }
  0x50   :  { %1942 = vmatpush.bf16.msrb.mxu2 %v3115_v50  ;;  %v4446_v50 = vld [vmem:[#allocation5 + $0x6f4] sm:$0xf]  ;;  %v3763_v55 = vor.u32 %v4398_v47, %v3760_v49  ;;  %v3931_v5 = vor.u32 %v4440_v63, %v3928_v0  ;;  %v3712_v11 = vld [vmem:[#allocation5 + $0x528] sm:$0xf0]  ;;  %v3496_v20 = vld [vmem:[#allocation5 + $0x378] sm:$0xf0] }
  0x51   :  { %1956 = vmatpush.bf16.msrb.mxu3 %v3307_v54  ;;  %v3571_v54 = vor.u32 %v4350_v45, %v3568_v46  ;;  %v3955_v56 = vor.u32 %v4446_v50, %v3952_v51  ;;  %v4386_v9 = vld [vmem:[#allocation5 + $0x514] sm:$0xf]  ;;  %v3904_v13 = vld [vmem:[#allocation5 + $0x6a8] sm:$0xf0]  ;;  %v4380_v21 = vld [vmem:[#allocation5 + $0x4e4] sm:$0xf] }
  0x52   :  { %1915 = vmatpush.bf16.msrb.mxu0 %v3855_v61  ;;  %v4147_v61 = vor.u32 %v4494_v52, %v4144_v53  ;;  %v4434_v12 = vld [vmem:[#allocation5 + $0x694] sm:$0xf]  ;;  %v4096_v15 = vld [vmem:[#allocation5 + $0x828] sm:$0xf0]  ;;  %v3715_v17 = vor.u32 %v4386_v9, %v3712_v11  ;;  %v3880_v27 = vld [vmem:[#allocation5 + $0x678] sm:$0xf0] }
  0x53   :  { %1929 = vmatpush.bf16.msrb.mxu1 %v4047_v1  ;;  %v4488_v1 = vld [vmem:[#allocation5 + $0x844] sm:$0xf]  ;;  %v4326_v33 = vld [vmem:[#allocation5 + $0x334] sm:$0xf]  ;;  %v3664_v38 = vld [vmem:[#allocation5 + $0x4c8] sm:$0xf0] }
  0x54   :  { %1943 = vmatpush.bf16.msrb.mxu2 %v3091_v2  ;;  %v4120_v2 = vld [vmem:[#allocation5 + $0x858] sm:$0xf0]  ;;  %v4476_v28 = vld [vmem:[#allocation5 + $0x7e4] sm:$0xf]  ;;  %v4374_v36 = vld [vmem:[#allocation5 + $0x4b4] sm:$0xf] }
  0x55   :  { %1957 = vmatpush.bf16.msrb.mxu3 %v3283_v7  ;;  %v4338_v7 = vld [vmem:[#allocation5 + $0x394] sm:$0xf]  ;;  %v4123_v10 = vor.u32 %v4488_v1, %v4120_v2  ;;  %v3856_v41 = vld [vmem:[#allocation5 + $0x648] sm:$0xf0]  ;;  %v4320_v45 = vld [vmem:[#allocation5 + $0x304] sm:$0xf]  ;;  %v3667_v47 = vor.u32 %v4374_v36, %v3664_v38 }
  0x56   :  { %1916 = vmatpush.bf16.msrb.mxu0 %v3831_v14  ;;  %v4482_v14 = vld [vmem:[#allocation5 + $0x814] sm:$0xf]  ;;  %v3523_v16 = vor.u32 %v4338_v7, %v3520_v8  ;;  %v3448_v46 = vld [vmem:[#allocation5 + $0x318] sm:$0xf0]  ;;  %v4368_v49 = vld [vmem:[#allocation5 + $0x484] sm:$0xf] }
  0x57   :  { %1930 = vmatpush.bf16.msrb.mxu1 %v4023_v18  ;;  %v3907_v18 = vor.u32 %v4434_v12, %v3904_v13  ;;  %v4099_v24 = vor.u32 %v4482_v14, %v4096_v15  ;;  %v4422_v40 = vld [vmem:[#allocation5 + $0x634] sm:$0xf]  ;;  %v3640_v50 = vld [vmem:[#allocation5 + $0x498] sm:$0xf0]  ;;  %v4416_v51 = vld [vmem:[#allocation5 + $0x604] sm:$0xf]  ;;  %v3451_v60 = vor.u32 %v4320_v45, %v3448_v46 }
  0x58   :  { %1944 = vmatpush.bf16.msrb.mxu2 %v3067_v19  ;;  %v4332_v19 = vld [vmem:[#allocation5 + $0x364] sm:$0xf]  ;;  %v3832_v53 = vld [vmem:[#allocation5 + $0x618] sm:$0xf0]  ;;  %v4270_v58 = vld [vmem:[#allocation5 + $0x16c] sm:$0xf0]  ;;  %v3643_v0 = vor.u32 %v4368_v49, %v3640_v50 }
  0x59   :  { %1958 = vmatpush.bf16.msrb.mxu3 %v3259_v25  ;;  %1917 = vmatmul.bf16.vlgmr.msrb.gmra.mxu0 %v4773_v35  ;;  %v3688_v25 = vld [vmem:[#allocation5 + $0x4f8] sm:$0xf0]  ;;  %v3430_v59 = vld [vmem:[#allocation5 + $0x2d8] sm:$0xf]  ;;  %v4366_v63 = vld [vmem:[#allocation5 + $0x46c] sm:$0xf0]  ;;  %v3835_v1 = vor.u32 %v4416_v51, %v3832_v53 }
  0x5a   :  { %1965 = vmatpush.bf16.msra.mxu0 %v3619_v26  ;;  %1931 = vmatmul.bf16.vlgmr.msrb.gmra.mxu1 %v4775_v39  ;;  %v4428_v26 = vld [vmem:[#allocation5 + $0x664] sm:$0xf]  ;;  %v3691_v31 = vor.u32 %v4380_v21, %v3688_v25  ;;  %v3622_v62 = vld [vmem:[#allocation5 + $0x458] sm:$0xf]  ;;  %v3214_v9 = vld [vmem:[#allocation5 + $0x128] sm:$0xf] }
  0x5b   :  { %1979 = vmatpush.bf16.msra.mxu1 %v3811_v29  ;;  %1945 = vmatmul.bf16.vlgmr.msrb.gmra.mxu2 %v4761_v57  ;;  %v4072_v29 = vld [vmem:[#allocation5 + $0x7f8] sm:$0xf0]  ;;  %v3883_v32 = vor.u32 %v4428_v26, %v3880_v27  ;;  %v3814_v2 = vld [vmem:[#allocation5 + $0x5d8] sm:$0xf]  ;;  %v3623_v8 = vor.u32 %v4366_v63, %v3622_v62  ;;  %v3406_v11 = vld [vmem:[#allocation5 + $0x2a8] sm:$0xf] }
  0x5c   :  { %1993 = vmatpush.bf16.msra.mxu2 %v4003_v30  ;;  %1959 = vmatmul.bf16.vlgmr.msrb.gmra.mxu3 %v4764_v6  ;;  %v3499_v30 = vor.u32 %v4332_v19, %v3496_v20  ;;  %v4075_v37 = vor.u32 %v4476_v28, %v4072_v29  ;;  %v4312_v13 = vld [vmem:[#allocation5 + $0x2bc] sm:$0xf0]  ;;  %v3598_v14 = vld [vmem:[#allocation5 + $0x428] sm:$0xf]  ;;  %v3190_v21 = vld [vmem:[#allocation5 + $0xf8] sm:$0xf] }
  0x5d   :  { %2007 = vmatpush.bf16.msra.mxu3 %v4195_v34  ;;  %v3472_v34 = vld [vmem:[#allocation5 + $0x348] sm:$0xf0]  ;;  %v4360_v15 = vld [vmem:[#allocation5 + $0x43c] sm:$0xf0]  ;;  %v3407_v19 = vor.u32 %v4312_v13, %v3406_v11  ;;  %v3382_v25 = vld [vmem:[#allocation5 + $0x278] sm:$0xf] }
  0x5e   :  { %1966 = vmatpush.bf16.msra.mxu0 %v3595_v42  ;;  %v4470_v42 = vld [vmem:[#allocation5 + $0x7b4] sm:$0xf]  ;;  %v3599_v20 = vor.u32 %v4360_v15, %v3598_v14  ;;  %v4306_v27 = vld [vmem:[#allocation5 + $0x28c] sm:$0xf0]  ;;  %v3574_v28 = vld [vmem:[#allocation5 + $0x3f8] sm:$0xf] }
  0x5f   :  { %1980 = vmatpush.bf16.msra.mxu1 %v3787_v43  ;;  %v4048_v43 = vld [vmem:[#allocation5 + $0x7c8] sm:$0xf0]  ;;  %v4354_v29 = vld [vmem:[#allocation5 + $0x40c] sm:$0xf0]  ;;  %v3166_v36 = vld [vmem:[#allocation5 + $0xc8] sm:$0xf] }
  0x60   :  { %1994 = vmatpush.bf16.msra.mxu2 %v3979_v44  ;;  %v3475_v44 = vor.u32 %v4326_v33, %v3472_v34  ;;  %v4051_v52 = vor.u32 %v4470_v42, %v4048_v43  ;;  %v3383_v33 = vor.u32 %v4306_v27, %v3382_v25  ;;  %v3575_v34 = vor.u32 %v4354_v29, %v3574_v28  ;;  %v3358_v38 = vld [vmem:[#allocation5 + $0x248] sm:$0xf]  ;;  %v4348_v43 = vld [vmem:[#allocation5 + $0x3dc] sm:$0xf0]  ;;  %v3142_v49 = vld [vmem:[#allocation5 + $0x98] sm:$0xf] }
  0x61   :  { %2008 = vmatpush.bf16.msra.mxu3 %v4171_v48  ;;  %v3859_v48 = vor.u32 %v4422_v40, %v3856_v41  ;;  %v4300_v41 = vld [vmem:[#allocation5 + $0x25c] sm:$0xf0]  ;;  %v3550_v42 = vld [vmem:[#allocation5 + $0x3c8] sm:$0xf]  ;;  %v4246_v50 = vld [vmem:[#allocation5 + $0xac] sm:$0xf0] }
  0x62   :  { %1967 = vmatpush.bf16.msra.mxu0 %v3571_v54  ;;  %v4464_v54 = vld [vmem:[#allocation5 + $0x784] sm:$0xf]  ;;  %v4396_v45 = vld [vmem:[#allocation5 + $0x55c] sm:$0xf0]  ;;  %v3334_v51 = vld [vmem:[#allocation5 + $0x218] sm:$0xf] }
  0x63   :  { %1981 = vmatpush.bf16.msra.mxu1 %v3763_v55  ;;  %v4024_v55 = vld [vmem:[#allocation5 + $0x798] sm:$0xf0]  ;;  %v4294_v53 = vld [vmem:[#allocation5 + $0x22c] sm:$0xf0]  ;;  %v3118_v62 = vld [vmem:[#allocation5 + $0x68] sm:$0xf] }
  0x64   :  { %1995 = vmatpush.bf16.msra.mxu2 %v3955_v56  ;;  %v3238_v56 = vld [vmem:[#allocation5 + $0x158] sm:$0xf]  ;;  %v4240_v63 = vld [vmem:[#allocation5 + $0x7c] sm:$0xf0]  ;;  %v4282_v15 = vld [vmem:[#allocation5 + $0x1cc] sm:$0xf0] }
  0x65   :  { %2009 = vmatpush.bf16.msra.mxu3 %v4147_v61  ;;  %v4318_v61 = vld [vmem:[#allocation5 + $0x2ec] sm:$0xf0]  ;;  %v3094_v11 = vld [vmem:[#allocation5 + $0x38] sm:$0xf]  ;;  %v3262_v27 = vld [vmem:[#allocation5 + $0x188] sm:$0xf] }
  0x66   :  { %1968 = vmatpush.bf16.msra.mxu0 %v3547_v3  ;;  %v4414_v3 = vld [vmem:[#allocation5 + $0x5ec] sm:$0xf0]  ;;  %v3431_v7 = vor.u32 %v4318_v61, %v3430_v59  ;;  %v3143_v59 = vor.u32 %v4246_v50, %v3142_v49  ;;  %v3286_v13 = vld [vmem:[#allocation5 + $0x1b8] sm:$0xf]  ;;  %v4276_v28 = vld [vmem:[#allocation5 + $0x19c] sm:$0xf0] }
  0x67   :  { %1982 = vmatpush.bf16.msra.mxu1 %v3739_v4  ;;  %v4027_v4 = vor.u32 %v4464_v54, %v4024_v55  ;;  %v3815_v12 = vor.u32 %v4414_v3, %v3814_v2  ;;  %v3526_v54 = vld [vmem:[#allocation5 + $0x398] sm:$0xf]  ;;  %v4342_v55 = vld [vmem:[#allocation5 + $0x3ac] sm:$0xf0]  ;;  %v4288_v2 = vld [vmem:[#allocation5 + $0x1fc] sm:$0xf0]  ;;  %v3287_v25 = vor.u32 %v4282_v15, %v3286_v13 }
  0x68   :  { %1996 = vmatpush.bf16.msra.mxu2 %v3931_v5  ;;  %v3239_v5 = vor.u32 %v4270_v58, %v3238_v56  ;;  %v3718_v56 = vld [vmem:[#allocation5 + $0x518] sm:$0xf]  ;;  %v4390_v58 = vld [vmem:[#allocation5 + $0x52c] sm:$0xf0]  ;;  %v3527_v61 = vor.u32 %v4342_v55, %v3526_v54  ;;  %v3502_v3 = vld [vmem:[#allocation5 + $0x368] sm:$0xf] }
  0x69   :  { %2010 = vmatpush.bf16.msra.mxu3 %v4123_v10  ;;  %v4264_v10 = vld [vmem:[#allocation5 + $0x13c] sm:$0xf0]  ;;  %v3454_v29 = vld [vmem:[#allocation5 + $0x308] sm:$0xf] }
  0x6a   :  { %1969 = vmatpush.bf16.msra.mxu0 %v3523_v16  ;;  %v3790_v16 = vld [vmem:[#allocation5 + $0x5a8] sm:$0xf]  ;;  %v4504_v55 = vld [vmem:[#allocation5 + $0x8bc] sm:$0xf0] }
  0x6b   :  { %1983 = vmatpush.bf16.msra.mxu1 %v3715_v17  ;;  %v4408_v17 = vld [vmem:[#allocation5 + $0x5bc] sm:$0xf0]  ;;  %v3934_v13 = vld [vmem:[#allocation5 + $0x6c8] sm:$0xf] }
  0x6c   :  { %1997 = vmatpush.bf16.msra.mxu2 %v3907_v18  ;;  %v3215_v18 = vor.u32 %v4264_v10, %v3214_v9  ;;  %v3791_v26 = vor.u32 %v4408_v17, %v3790_v16  ;;  %v3478_v16 = vld [vmem:[#allocation5 + $0x338] sm:$0xf]  ;;  %v4330_v17 = vld [vmem:[#allocation5 + $0x34c] sm:$0xf0]  ;;  %v4126_v15 = vld [vmem:[#allocation5 + $0x848] sm:$0xf] }
  0x6d   :  { %2011 = vmatpush.bf16.msra.mxu3 %v4099_v24  ;;  %v4258_v24 = vld [vmem:[#allocation5 + $0x10c] sm:$0xf0] }
  0x6e   :  { %1970 = vmatpush.bf16.msra.mxu0 %v3499_v30  ;;  %v3766_v30 = vld [vmem:[#allocation5 + $0x578] sm:$0xf] }
  0x6f   :  { %1984 = vmatpush.bf16.msra.mxu1 %v3691_v31  ;;  %v4402_v31 = vld [vmem:[#allocation5 + $0x58c] sm:$0xf0] }
  0x70   :  { %1998 = vmatpush.bf16.msra.mxu2 %v3883_v32  ;;  %v3191_v32 = vor.u32 %v4258_v24, %v3190_v21  ;;  %v3767_v40 = vor.u32 %v4402_v31, %v3766_v30  ;;  %v3070_v21 = vld [vmem:[#allocation5 + $0x8] sm:$0xf]  ;;  %v4228_v24 = vld [vmem:[#allocation5 + $0x1c] sm:$0xf0] }
  0x71   :  { %2012 = vmatpush.bf16.msra.mxu3 %v4075_v37  ;;  %v4252_v37 = vld [vmem:[#allocation5 + $0xdc] sm:$0xf0] }
  0x72   :  { %1971 = vmatpush.bf16.msra.mxu0 %v3475_v44  ;;  %v3742_v44 = vld [vmem:[#allocation5 + $0x548] sm:$0xf]  ;;  %v3167_v46 = vor.u32 %v4252_v37, %v3166_v36  ;;  %v4324_v31 = vld [vmem:[#allocation5 + $0x31c] sm:$0xf0]  ;;  %v4462_v36 = vld [vmem:[#allocation5 + $0x76c] sm:$0xf0] }
  0x73   :  { %1985 = vmatpush.bf16.msra.mxu1 %v3667_v47  ;;  %v3359_v47 = vor.u32 %v4300_v41, %v3358_v38  ;;  %v4198_v37 = vld [vmem:[#allocation5 + $0x8d8] sm:$0xf]  ;;  %v3071_v38 = vor.u32 %v4228_v24, %v3070_v21  ;;  %v4267_v41 = vld [vmem:[#allocation5 + $0x15c] sm:$0xf]  ;;  %v3360_v21 = vld [vmem:[#allocation5 + $0x260] sm:$0xf0] }
  0x74   :  { %1999 = vmatpush.bf16.msra.mxu2 %v3859_v48  ;;  %v3551_v48 = vor.u32 %v4348_v43, %v3550_v42  ;;  %v3240_v42 = vld [vmem:[#allocation5 + $0x170] sm:$0xf0]  ;;  %v3263_v43 = vor.u32 %v4276_v28, %v3262_v27  ;;  %v3910_v27 = vld [vmem:[#allocation5 + $0x698] sm:$0xf]  ;;  %v4438_v28 = vld [vmem:[#allocation5 + $0x6ac] sm:$0xf0] }
  0x75   :  { %2013 = vmatpush.bf16.msra.mxu3 %v4051_v52  ;;  %v3743_v52 = vor.u32 %v4396_v45, %v3742_v44  ;;  %v3455_v44 = vor.u32 %v4324_v31, %v3454_v29  ;;  %v4315_v45 = vld [vmem:[#allocation5 + $0x2dc] sm:$0xf]  ;;  %v3243_v50 = vor.u32 %v4267_v41, %v3240_v42  ;;  %v4102_v29 = vld [vmem:[#allocation5 + $0x818] sm:$0xf]  ;;  %v4486_v31 = vld [vmem:[#allocation5 + $0x82c] sm:$0xf0] }
  0x76   :  { %1972 = vmatpush.bf16.msra.mxu0 %v3451_v60  ;;  %v3335_v60 = vor.u32 %v4294_v53, %v3334_v51  ;;  %v3982_v51 = vld [vmem:[#allocation5 + $0x728] sm:$0xf]  ;;  %v4432_v42 = vld [vmem:[#allocation5 + $0x67c] sm:$0xf0] }
  0x77   :  { %1986 = vmatpush.bf16.msra.mxu1 %v3643_v0  ;;  %v3310_v0 = vld [vmem:[#allocation5 + $0x1e8] sm:$0xf] }
  0x78   :  { %2000 = vmatpush.bf16.msra.mxu2 %v3835_v1  ;;  %v3719_v1 = vor.u32 %v4390_v58, %v3718_v56  ;;  %v3311_v9 = vor.u32 %v4288_v2, %v3310_v0  ;;  %v4174_v53 = vld [vmem:[#allocation5 + $0x8a8] sm:$0xf]  ;;  %v4261_v56 = vld [vmem:[#allocation5 + $0x12c] sm:$0xf]  ;;  %v3216_v58 = vld [vmem:[#allocation5 + $0x140] sm:$0xf0] }
  0x79   :  { %2014 = vmatpush.bf16.msra.mxu3 %v4027_v4  ;;  %1973 = vmatmul.bf16.vlgmr.msra.gmra.mxu0 %v4767_v22  ;;  %v4336_v4 = vld [vmem:[#allocation5 + $0x37c] sm:$0xf0]  ;;  %v3958_v0 = vld [vmem:[#allocation5 + $0x6f8] sm:$0xf]  ;;  %v3886_v41 = vld [vmem:[#allocation5 + $0x668] sm:$0xf] }
  0x7a   :  { %2021 = vmatpush.bf16.msrb.mxu0 %v3239_v5  ;;  %1987 = vmatmul.bf16.vlgmr.msra.gmra.mxu1 %v4769_v23  ;;  %v3694_v5 = vld [vmem:[#allocation5 + $0x4e8] sm:$0xf]  ;;  %v3503_v10 = vor.u32 %v4336_v4, %v3502_v3  ;;  %v4150_v2 = vld [vmem:[#allocation5 + $0x878] sm:$0xf]  ;;  %v4498_v4 = vld [vmem:[#allocation5 + $0x88c] sm:$0xf0] }
  0x7b   :  { %2035 = vmatpush.bf16.msrb.mxu1 %v3431_v7  ;;  %2001 = vmatmul.bf16.vlgmr.msra.gmra.mxu2 %v4773_v35  ;;  %v4384_v7 = vld [vmem:[#allocation5 + $0x4fc] sm:$0xf0] }
  0x7c   :  { %2049 = vmatpush.bf16.msrb.mxu2 %v3623_v8  ;;  %2015 = vmatmul.bf16.vlgmr.msra.gmra.mxu3 %v4775_v39  ;;  %v3119_v8 = vor.u32 %v4240_v63, %v3118_v62  ;;  %v3695_v14 = vor.u32 %v4384_v7, %v3694_v5  ;;  %v4175_v62 = vor.u32 %v4504_v55, %v4174_v53  ;;  %v4255_v5 = vld [vmem:[#allocation5 + $0xfc] sm:$0xf]  ;;  %v3192_v7 = vld [vmem:[#allocation5 + $0x110] sm:$0xf0]  ;;  %v3862_v53 = vld [vmem:[#allocation5 + $0x638] sm:$0xf] }
  0x7d   :  { %2063 = vmatpush.bf16.msrb.mxu3 %v3815_v12  ;;  %v4234_v12 = vld [vmem:[#allocation5 + $0x4c] sm:$0xf0]  ;;  %v3219_v63 = vor.u32 %v4261_v56, %v3216_v58  ;;  %v4054_v55 = vld [vmem:[#allocation5 + $0x7b8] sm:$0xf] }
  0x7e   :  { %2022 = vmatpush.bf16.msrb.mxu0 %v3215_v18  ;;  %v3670_v18 = vld [vmem:[#allocation5 + $0x4b8] sm:$0xf]  ;;  %v4474_v58 = vld [vmem:[#allocation5 + $0x7cc] sm:$0xf0] }
  0x7f   :  { %2036 = vmatpush.bf16.msrb.mxu1 %v3407_v19  ;;  %v4378_v19 = vld [vmem:[#allocation5 + $0x4cc] sm:$0xf0] }
  0x80   :  { %2050 = vmatpush.bf16.msrb.mxu2 %v3599_v20  ;;  %v3095_v20 = vor.u32 %v4234_v12, %v3094_v11  ;;  %v3671_v30 = vor.u32 %v4378_v19, %v3670_v18  ;;  %v4151_v11 = vor.u32 %v4498_v4, %v4150_v2  ;;  %v3195_v12 = vor.u32 %v4255_v5, %v3192_v7  ;;  %v4249_v18 = vld [vmem:[#allocation5 + $0xcc] sm:$0xf]  ;;  %v3168_v19 = vld [vmem:[#allocation5 + $0xe0] sm:$0xf0]  ;;  %v4030_v4 = vld [vmem:[#allocation5 + $0x788] sm:$0xf] }
  0x81   :  { %2064 = vmatpush.bf16.msrb.mxu3 %v3791_v26  ;;  %v3479_v26 = vor.u32 %v4330_v17, %v3478_v16  ;;  %v4492_v17 = vld [vmem:[#allocation5 + $0x85c] sm:$0xf0]  ;;  %v4055_v2 = vor.u32 %v4474_v58, %v4054_v55  ;;  %v4225_v7 = vld [vmem:[#allocation5 + $0xc] sm:$0xf] }
  0x82   :  { %2023 = vmatpush.bf16.msrb.mxu0 %v3191_v32  ;;  %v3646_v32 = vld [vmem:[#allocation5 + $0x488] sm:$0xf]  ;;  %v4468_v5 = vld [vmem:[#allocation5 + $0x79c] sm:$0xf0]  ;;  %v4345_v58 = vld [vmem:[#allocation5 + $0x3cc] sm:$0xf] }
  0x83   :  { %2037 = vmatpush.bf16.msrb.mxu1 %v3383_v33  ;;  %v4372_v33 = vld [vmem:[#allocation5 + $0x49c] sm:$0xf0] }
  0x84   :  { %2051 = vmatpush.bf16.msrb.mxu2 %v3575_v34  ;;  %v4006_v34 = vld [vmem:[#allocation5 + $0x758] sm:$0xf] }
  0x85   :  { %2065 = vmatpush.bf16.msrb.mxu3 %v3767_v40  ;;  %v4510_v40 = vld [vmem:[#allocation5 + $0x8ec] sm:$0xf0] }
  0x86   :  { %2024 = vmatpush.bf16.msrb.mxu0 %v3167_v46  ;;  %v3432_v46 = vld [vmem:[#allocation5 + $0x2f0] sm:$0xf0]  ;;  %v4199_v49 = vor.u32 %v4510_v40, %v4198_v37  ;;  %v3911_v37 = vor.u32 %v4438_v28, %v3910_v27 }
  0x87   :  { %2038 = vmatpush.bf16.msrb.mxu1 %v3359_v47  ;;  %v3647_v47 = vor.u32 %v4372_v33, %v3646_v32  ;;  %v3435_v54 = vor.u32 %v4315_v45, %v3432_v46  ;;  %v4243_v32 = vld [vmem:[#allocation5 + $0x9c] sm:$0xf]  ;;  %v3144_v33 = vld [vmem:[#allocation5 + $0xb0] sm:$0xf0]  ;;  %v4480_v45 = vld [vmem:[#allocation5 + $0x7fc] sm:$0xf0] }
  0x88   :  { %2052 = vmatpush.bf16.msrb.mxu2 %v3551_v48  ;;  %v4007_v48 = vor.u32 %v4462_v36, %v4006_v34  ;;  %v4291_v34 = vld [vmem:[#allocation5 + $0x21c] sm:$0xf]  ;;  %v3336_v36 = vld [vmem:[#allocation5 + $0x230] sm:$0xf0]  ;;  %v3147_v40 = vor.u32 %v4243_v32, %v3144_v33  ;;  %v4237_v46 = vld [vmem:[#allocation5 + $0x6c] sm:$0xf] }
  0x89   :  { %2066 = vmatpush.bf16.msrb.mxu3 %v3743_v52  ;;  %v4456_v52 = vld [vmem:[#allocation5 + $0x73c] sm:$0xf0]  ;;  %v3792_v33 = vld [vmem:[#allocation5 + $0x5c0] sm:$0xf0] }
  0x8a   :  { %2025 = vmatpush.bf16.msrb.mxu0 %v3143_v59  ;;  %v4309_v59 = vld [vmem:[#allocation5 + $0x2ac] sm:$0xf] }
  0x8b   :  { %2039 = vmatpush.bf16.msrb.mxu1 %v3335_v60  ;;  %v3408_v60 = vld [vmem:[#allocation5 + $0x2c0] sm:$0xf0] }
  0x8c   :  { %2053 = vmatpush.bf16.msrb.mxu2 %v3527_v61  ;;  %v3983_v61 = vor.u32 %v4456_v52, %v3982_v51  ;;  %v3411_v3 = vor.u32 %v4309_v59, %v3408_v60  ;;  %v4231_v59 = vld [vmem:[#allocation5 + $0x3c] sm:$0xf]  ;;  %v3096_v60 = vld [vmem:[#allocation5 + $0x50] sm:$0xf0] }
  0x8d   :  { %2067 = vmatpush.bf16.msrb.mxu3 %v3719_v1  ;;  %v4450_v1 = vld [vmem:[#allocation5 + $0x70c] sm:$0xf0] }
  0x8e   :  { %2026 = vmatpush.bf16.msrb.mxu0 %v3119_v8  ;;  %v4303_v8 = vld [vmem:[#allocation5 + $0x27c] sm:$0xf] }
  0x8f   :  { %2040 = vmatpush.bf16.msrb.mxu1 %v3311_v9  ;;  %v3384_v9 = vld [vmem:[#allocation5 + $0x290] sm:$0xf0] }
  0x90   :  { %2054 = vmatpush.bf16.msrb.mxu2 %v3503_v10  ;;  %v3959_v10 = vor.u32 %v4450_v1, %v3958_v0  ;;  %v3387_v16 = vor.u32 %v4303_v8, %v3384_v9  ;;  %v3838_v0 = vld [vmem:[#allocation5 + $0x608] sm:$0xf]  ;;  %v4420_v1 = vld [vmem:[#allocation5 + $0x61c] sm:$0xf0]  ;;  %v3072_v9 = vld [vmem:[#allocation5 + $0x20] sm:$0xf0] }
  0x91   :  { %2068 = vmatpush.bf16.msrb.mxu3 %v3695_v14  ;;  %v4444_v14 = vld [vmem:[#allocation5 + $0x6dc] sm:$0xf0] }
  0x92   :  { %2027 = vmatpush.bf16.msrb.mxu0 %v3095_v20  ;;  %v4297_v20 = vld [vmem:[#allocation5 + $0x24c] sm:$0xf]  ;;  %v3935_v24 = vor.u32 %v4444_v14, %v3934_v13  ;;  %v3624_v13 = vld [vmem:[#allocation5 + $0x470] sm:$0xf0]  ;;  %v4411_v14 = vld [vmem:[#allocation5 + $0x5dc] sm:$0xf] }
  0x93   :  { %2041 = vmatpush.bf16.msrb.mxu1 %v3287_v25  ;;  %v4127_v25 = vor.u32 %v4492_v17, %v4126_v15  ;;  %v3839_v15 = vor.u32 %v4420_v1, %v3838_v0  ;;  %v4459_v17 = vld [vmem:[#allocation5 + $0x75c] sm:$0xf]  ;;  %v3936_v0 = vld [vmem:[#allocation5 + $0x6e0] sm:$0xf0]  ;;  %v4489_v1 = vld [vmem:[#allocation5 + $0x84c] sm:$0xf] }
  0x94   :  { %2055 = vmatpush.bf16.msrb.mxu2 %v3479_v26  ;;  %v3171_v26 = vor.u32 %v4249_v18, %v3168_v19  ;;  %v4008_v18 = vld [vmem:[#allocation5 + $0x770] sm:$0xf0]  ;;  %v4031_v19 = vor.u32 %v4468_v5, %v4030_v4 }
  0x95   :  { %2069 = vmatpush.bf16.msrb.mxu3 %v3671_v30  ;;  %v3363_v30 = vor.u32 %v4297_v20, %v3360_v21  ;;  %v3075_v20 = vor.u32 %v4225_v7, %v3072_v9  ;;  %v4507_v21 = vld [vmem:[#allocation5 + $0x8dc] sm:$0xf]  ;;  %v4011_v28 = vor.u32 %v4459_v17, %v4008_v18  ;;  %v4104_v17 = vld [vmem:[#allocation5 + $0x830] sm:$0xf0] }
  0x96   :  { %2028 = vmatpush.bf16.msrb.mxu0 %v3071_v38  ;;  %v4103_v38 = vor.u32 %v4486_v31, %v4102_v29  ;;  %v4357_v29 = vld [vmem:[#allocation5 + $0x42c] sm:$0xf]  ;;  %v4339_v9 = vld [vmem:[#allocation5 + $0x39c] sm:$0xf] }
  0x97   :  { %2042 = vmatpush.bf16.msrb.mxu1 %v3263_v43  ;;  %v4078_v43 = vld [vmem:[#allocation5 + $0x7e8] sm:$0xf]  ;;  %v4405_v31 = vld [vmem:[#allocation5 + $0x5ac] sm:$0xf] }
  0x98   :  { %2056 = vmatpush.bf16.msrb.mxu2 %v3455_v44  ;;  %v3339_v44 = vor.u32 %v4291_v34, %v3336_v36  ;;  %v4079_v51 = vor.u32 %v4480_v45, %v4078_v43  ;;  %v4453_v34 = vld [vmem:[#allocation5 + $0x72c] sm:$0xf]  ;;  %v3984_v36 = vld [vmem:[#allocation5 + $0x740] sm:$0xf0]  ;;  %v4399_v45 = vld [vmem:[#allocation5 + $0x57c] sm:$0xf] }
  0x99   :  { %2070 = vmatpush.bf16.msrb.mxu3 %v3647_v47  ;;  %2029 = vmatmul.bf16.vlgmr.msrb.gmra.mxu0 %v4761_v57  ;;  %v3120_v47 = vld [vmem:[#allocation5 + $0x80] sm:$0xf0]  ;;  %v3987_v43 = vor.u32 %v4453_v34, %v3984_v36 }
  0x9a   :  { %2077 = vmatpush.bf16.msra.mxu0 %v4007_v48  ;;  %2043 = vmatmul.bf16.vlgmr.msrb.gmra.mxu1 %v4764_v6  ;;  %v4285_v48 = vld [vmem:[#allocation5 + $0x1ec] sm:$0xf]  ;;  %v3123_v52 = vor.u32 %v4237_v46, %v3120_v47  ;;  %v4789_v46 = vld [vmem:[#allocation7] sm:$0x3f] }
  0x9b   :  { %2091 = vmatpush.bf16.msra.mxu1 %v4199_v49  ;;  %2057 = vmatmul.bf16.vlgmr.msrb.gmra.mxu2 %v4767_v22  ;;  %v3312_v49 = vld [vmem:[#allocation5 + $0x200] sm:$0xf0] }
  0x9c   :  { %2105 = vmatpush.bf16.msra.mxu2 %v3243_v50  ;;  %2071 = vmatmul.bf16.vlgmr.msrb.gmra.mxu3 %v4769_v23  ;;  %v3887_v50 = vor.u32 %v4432_v42, %v3886_v41  ;;  %v3315_v56 = vor.u32 %v4285_v48, %v3312_v49  ;;  %v4351_v41 = vld [vmem:[#allocation5 + $0x3fc] sm:$0xf]  ;;  %v3795_v42 = vor.u32 %v4405_v31, %v3792_v33  ;;  %v3768_v48 = vld [vmem:[#allocation5 + $0x590] sm:$0xf0]  ;;  %v3888_v31 = vld [vmem:[#allocation5 + $0x680] sm:$0xf0] }
  0x9d   :  { %2119 = vmatpush.bf16.msra.mxu3 %v3435_v54  ;;  %v4426_v54 = vld [vmem:[#allocation5 + $0x64c] sm:$0xf0]  ;;  %v4447_v49 = vld [vmem:[#allocation5 + $0x6fc] sm:$0xf]  ;;  %v3771_v55 = vor.u32 %v4399_v45, %v3768_v48  ;;  %v4080_v33 = vld [vmem:[#allocation5 + $0x800] sm:$0xf0] }
  0x9e   :  { %2078 = vmatpush.bf16.msra.mxu0 %v3983_v61  ;;  %v4279_v61 = vld [vmem:[#allocation5 + $0x1bc] sm:$0xf]  ;;  %v3672_v45 = vld [vmem:[#allocation5 + $0x4d0] sm:$0xf0] }
  0x9f   :  { %2092 = vmatpush.bf16.msra.mxu1 %v4175_v62  ;;  %v3288_v62 = vld [vmem:[#allocation5 + $0x1d0] sm:$0xf0] }
  0xa0   :  { %2106 = vmatpush.bf16.msra.mxu2 %v3219_v63  ;;  %v3863_v63 = vor.u32 %v4426_v54, %v3862_v53  ;;  %v3291_v8 = vor.u32 %v4279_v61, %v3288_v62  ;;  %v401_v54 = vperm.slane %v4789_v46, 0  ;;  %v3744_v62 = vld [vmem:[#allocation5 + $0x560] sm:$0xf0]  ;;  %v3864_v48 = vld [vmem:[#allocation5 + $0x650] sm:$0xf0] }
  0xa1   :  { %2120 = vmatpush.bf16.msra.mxu3 %v3411_v3  ;;  %v3099_v3 = vor.u32 %v4231_v59, %v3096_v60  ;;  %v3552_v59 = vld [vmem:[#allocation5 + $0x3e0] sm:$0xf0]  ;;  %v4393_v60 = vld [vmem:[#allocation5 + $0x54c] sm:$0xf] }
  0xa2   :  { %2079 = vmatpush.bf16.msra.mxu0 %v3959_v10  ;;  %v4273_v10 = vld [vmem:[#allocation5 + $0x18c] sm:$0xf]  ;;  %v3555_v4 = vor.u32 %v4345_v58, %v3552_v59  ;;  %v3747_v7 = vor.u32 %v4393_v60, %v3744_v62  ;;  %v3648_v60 = vld [vmem:[#allocation5 + $0x4a0] sm:$0xf0] }
  0xa3   :  { %2093 = vmatpush.bf16.msra.mxu1 %v4151_v11  ;;  %v3264_v11 = vld [vmem:[#allocation5 + $0x1a0] sm:$0xf0]  ;;  %v4369_v59 = vld [vmem:[#allocation5 + $0x48c] sm:$0xf] }
  0xa4   :  { %2107 = vmatpush.bf16.msra.mxu2 %v3195_v12  ;;  %v4363_v12 = vld [vmem:[#allocation5 + $0x45c] sm:$0xf] }
  0xa5   :  { %2121 = vmatpush.bf16.msra.mxu3 %v3387_v16  ;;  %v3816_v16 = vld [vmem:[#allocation5 + $0x5f0] sm:$0xf0] }
  0xa6   :  { %2080 = vmatpush.bf16.msra.mxu0 %v3935_v24  ;;  %v4200_v24 = vld [vmem:[#allocation5 + $0x8f0] sm:$0xf0]  ;;  %v3819_v27 = vor.u32 %v4411_v14, %v3816_v16  ;;  %v4435_v14 = vld [vmem:[#allocation5 + $0x69c] sm:$0xf] }
  0xa7   :  { %2094 = vmatpush.bf16.msra.mxu1 %v4127_v25  ;;  %v3267_v25 = vor.u32 %v4273_v10, %v3264_v11  ;;  %v4203_v32 = vor.u32 %v4507_v21, %v4200_v24  ;;  %v3528_v10 = vld [vmem:[#allocation5 + $0x3b0] sm:$0xf0]  ;;  %v4387_v11 = vld [vmem:[#allocation5 + $0x51c] sm:$0xf] }
  0xa8   :  { %2108 = vmatpush.bf16.msra.mxu2 %v3171_v26  ;;  %v3627_v26 = vor.u32 %v4363_v12, %v3624_v13  ;;  %v3720_v13 = vld [vmem:[#allocation5 + $0x530] sm:$0xf0]  ;;  %v4483_v16 = vld [vmem:[#allocation5 + $0x81c] sm:$0xf] }
  0xa9   :  { %2122 = vmatpush.bf16.msra.mxu3 %v3363_v30  ;;  %v3600_v30 = vld [vmem:[#allocation5 + $0x440] sm:$0xf0]  ;;  %v3723_v21 = vor.u32 %v4387_v11, %v3720_v13  ;;  %v3630_v11 = vld [vmem:[#allocation5 + $0x460] sm:$0xf] }
  0xaa   :  { %2081 = vmatpush.bf16.msra.mxu0 %v3911_v37  ;;  %v4501_v37 = vld [vmem:[#allocation5 + $0x8ac] sm:$0xf] }
  0xab   :  { %2095 = vmatpush.bf16.msra.mxu1 %v4103_v38  ;;  %v4176_v38 = vld [vmem:[#allocation5 + $0x8c0] sm:$0xf0] }
  0xac   :  { %2109 = vmatpush.bf16.msra.mxu2 %v3147_v40  ;;  %v3603_v40 = vor.u32 %v4357_v29, %v3600_v30  ;;  %v4179_v47 = vor.u32 %v4501_v37, %v4176_v38  ;;  %v3696_v29 = vld [vmem:[#allocation5 + $0x500] sm:$0xf0]  ;;  %v4429_v30 = vld [vmem:[#allocation5 + $0x66c] sm:$0xf] }
  0xad   :  { %2123 = vmatpush.bf16.msra.mxu3 %v3339_v44  ;;  %v3576_v44 = vld [vmem:[#allocation5 + $0x410] sm:$0xf0] }
  0xae   :  { %2082 = vmatpush.bf16.msra.mxu0 %v3887_v50  ;;  %v3960_v50 = vld [vmem:[#allocation5 + $0x710] sm:$0xf0]  ;;  %v3579_v53 = vor.u32 %v4351_v41, %v3576_v44  ;;  %v4327_v41 = vld [vmem:[#allocation5 + $0x33c] sm:$0xf] }
  0xaf   :  { %2096 = vmatpush.bf16.msra.mxu1 %v4079_v51  ;;  %v4495_v51 = vld [vmem:[#allocation5 + $0x87c] sm:$0xf] }
  0xb0   :  { %2110 = vmatpush.bf16.msra.mxu2 %v3123_v52  ;;  %v4152_v52 = vld [vmem:[#allocation5 + $0x890] sm:$0xf0] }
  0xb1   :  { %2124 = vmatpush.bf16.msra.mxu3 %v3315_v56  ;;  %v3963_v56 = vor.u32 %v4447_v49, %v3960_v50  ;;  %v4155_v61 = vor.u32 %v4495_v51, %v4152_v52  ;;  %v4471_v49 = vld [vmem:[#allocation5 + $0x7bc] sm:$0xf]  ;;  %v4056_v50 = vld [vmem:[#allocation5 + $0x7d0] sm:$0xf0] }
  0xb2   :  { %2083 = vmatpush.bf16.msra.mxu0 %v3863_v63  ;;  %v4441_v63 = vld [vmem:[#allocation5 + $0x6cc] sm:$0xf] }
  0xb3   :  { %2097 = vmatpush.bf16.msra.mxu1 %v4055_v2  ;;  %v4128_v2 = vld [vmem:[#allocation5 + $0x860] sm:$0xf0] }
  0xb4   :  { %2111 = vmatpush.bf16.msra.mxu2 %v3099_v3  ;;  %v4131_v12 = vor.u32 %v4489_v1, %v4128_v2  ;;  %v4465_v1 = vld [vmem:[#allocation5 + $0x78c] sm:$0xf]  ;;  %v4032_v2 = vld [vmem:[#allocation5 + $0x7a0] sm:$0xf0] }
  0xb5   :  { %2125 = vmatpush.bf16.msra.mxu3 %v3291_v8  ;;  %v3939_v8 = vor.u32 %v4441_v63, %v3936_v0  ;;  %v4059_v63 = vor.u32 %v4471_v49, %v4056_v50  ;;  %v3840_v0 = vld [vmem:[#allocation5 + $0x620] sm:$0xf0]  ;;  %v3774_v50 = vld [vmem:[#allocation5 + $0x580] sm:$0xf] }
  0xb6   :  { %2084 = vmatpush.bf16.msra.mxu0 %v3839_v15  ;;  %v1862_v3 = vpop.f32.mrf.mxu0  ;;  %v3912_v15 = vld [vmem:[#allocation5 + $0x6b0] sm:$0xf0] }
  0xb7   :  { %2098 = vmatpush.bf16.msra.mxu1 %v4031_v19  ;;  %v1863_v5 = vadd.f32 %v1862_v3, %v401_v54  ;;  %v1876_v18 = vpop.f32.mrf.mxu1  ;;  %v3531_v19 = vor.u32 %v4339_v9, %v3528_v10  ;;  %v3915_v24 = vor.u32 %v4435_v14, %v3912_v15  ;;  %v4319_v10 = vld [vmem:[#allocation5 + $0x2f4] sm:$0xf0]  ;;  %v3651_v14 = vor.u32 %v4369_v59, %v3648_v60  ;;  %v4301_v60 = vld [vmem:[#allocation5 + $0x264] sm:$0xf0] }
  0xb8   :  { %2112 = vmatpush.bf16.msra.mxu2 %v3075_v20 }
  0xb9   :  { %2126 = vmatpush.bf16.msra.mxu3 %v3267_v25  ;;  %2085 = vmatmul.bf16.vlgmr.msra.gmra.mxu0 %v4773_v35  ;;  %v1877_v20 = vadd.f32 %v1876_v18, %v1863_v5  ;;  %v4333_v25 = vld [vmem:[#allocation5 + $0x36c] sm:$0xf]  ;;  %v3246_v5 = vld [vmem:[#allocation5 + $0x160] sm:$0xf]  ;;  %v4035_v18 = vor.u32 %v4465_v1, %v4032_v2  ;;  %v4397_v1 = vld [vmem:[#allocation5 + $0x564] sm:$0xf0] }
  0xba   :  { %2133 = vmatpush.bf16.msrb.mxu0 %v3627_v26  ;;  %2099 = vmatmul.bf16.vlgmr.msra.gmra.mxu1 %v4775_v39  ;;  %v3504_v26 = vld [vmem:[#allocation5 + $0x380] sm:$0xf0] }
  0xbb   :  { %2147 = vmatpush.bf16.msrb.mxu1 %v3819_v27  ;;  %2113 = vmatmul.bf16.vlgmr.msra.gmra.mxu2 %v4761_v57  ;;  %v4381_v27 = vld [vmem:[#allocation5 + $0x4ec] sm:$0xf]  ;;  %v3507_v36 = vor.u32 %v4333_v25, %v3504_v26  ;;  %v4265_v25 = vld [vmem:[#allocation5 + $0x144] sm:$0xf0]  ;;  %v3414_v26 = vld [vmem:[#allocation5 + $0x2b0] sm:$0xf] }
  0xbc   :  { %2161 = vmatpush.bf16.msrb.mxu2 %v4011_v28  ;;  %2127 = vmatmul.bf16.vlgmr.msra.gmra.mxu3 %v4764_v6  ;;  %v4107_v28 = vor.u32 %v4483_v16, %v4104_v17  ;;  %v3699_v38 = vor.u32 %v4381_v27, %v3696_v29  ;;  %v3822_v16 = vld [vmem:[#allocation5 + $0x5e0] sm:$0xf]  ;;  %v4415_v17 = vld [vmem:[#allocation5 + $0x5f4] sm:$0xf0]  ;;  %v3606_v29 = vld [vmem:[#allocation5 + $0x430] sm:$0xf] }
  0xbd   :  { %2175 = vmatpush.bf16.msrb.mxu3 %v4203_v32  ;;  %v4477_v32 = vld [vmem:[#allocation5 + $0x7ec] sm:$0xf]  ;;  %v3823_v27 = vor.u32 %v4415_v17, %v3822_v16  ;;  %v4343_v16 = vld [vmem:[#allocation5 + $0x3b4] sm:$0xf0]  ;;  %v3726_v17 = vld [vmem:[#allocation5 + $0x520] sm:$0xf] }
  0xbe   :  { %2134 = vmatpush.bf16.msrb.mxu0 %v3603_v40  ;;  %v1864_v34 = vpop.f32.mrf.mxu0  ;;  %v3891_v40 = vor.u32 %v4429_v30, %v3888_v31  ;;  %v4083_v44 = vor.u32 %v4477_v32, %v4080_v33  ;;  %v1890_v62 = vpop.f32.mrf.mxu2  ;;  %v4361_v30 = vld [vmem:[#allocation5 + $0x444] sm:$0xf0]  ;;  %v3798_v31 = vld [vmem:[#allocation5 + $0x5b0] sm:$0xf] }
  0xbf   :  { %2148 = vmatpush.bf16.msrb.mxu1 %v3795_v42  ;;  %v1865_v37 = vadd.f32 %v1864_v34, %v401_v54  ;;  %v3480_v42 = vld [vmem:[#allocation5 + $0x350] sm:$0xf0]  ;;  %v1878_v51 = vpop.f32.mrf.mxu1  ;;  %v1891_v3 = vadd.f32 %v1890_v62, %v1877_v20  ;;  %v4409_v32 = vld [vmem:[#allocation5 + $0x5c4] sm:$0xf0] }
  0xc0   :  { %2162 = vmatpush.bf16.msrb.mxu2 %v3987_v43  ;;  %v4375_v43 = vld [vmem:[#allocation5 + $0x4bc] sm:$0xf]  ;;  %v3483_v52 = vor.u32 %v4327_v41, %v3480_v42  ;;  %v3198_v41 = vld [vmem:[#allocation5 + $0x100] sm:$0xf]  ;;  %v4259_v42 = vld [vmem:[#allocation5 + $0x114] sm:$0xf0] }
  0xc1   :  { %2176 = vmatpush.bf16.msrb.mxu3 %v4179_v47  ;;  %v4423_v47 = vld [vmem:[#allocation5 + $0x63c] sm:$0xf]  ;;  %v1879_v54 = vadd.f32 %v1878_v51, %v1865_v37  ;;  %v4403_v51 = vld [vmem:[#allocation5 + $0x594] sm:$0xf0]  ;;  %v4349_v62 = vld [vmem:[#allocation5 + $0x3e4] sm:$0xf0] }
  0xc2   :  { %2135 = vmatpush.bf16.msrb.mxu0 %v3579_v53  ;;  %v4321_v53 = vld [vmem:[#allocation5 + $0x30c] sm:$0xf]  ;;  %v3867_v58 = vor.u32 %v4423_v47, %v3864_v48  ;;  %v3582_v47 = vld [vmem:[#allocation5 + $0x400] sm:$0xf]  ;;  %v4355_v48 = vld [vmem:[#allocation5 + $0x414] sm:$0xf0]  ;;  %v3775_v59 = vor.u32 %v4403_v51, %v3774_v50 }
  0xc3   :  { %2149 = vmatpush.bf16.msrb.mxu1 %v3771_v55  ;;  %v3456_v55 = vld [vmem:[#allocation5 + $0x320] sm:$0xf0] }
  0xc4   :  { %2163 = vmatpush.bf16.msrb.mxu2 %v3963_v56  ;;  %v3675_v56 = vor.u32 %v4375_v43, %v3672_v45  ;;  %v3459_v9 = vor.u32 %v4321_v53, %v3456_v55  ;;  %v3390_v43 = vld [vmem:[#allocation5 + $0x280] sm:$0xf]  ;;  %v4307_v45 = vld [vmem:[#allocation5 + $0x294] sm:$0xf0]  ;;  %v3583_v55 = vor.u32 %v4355_v48, %v3582_v47 }
  0xc5   :  { %2177 = vmatpush.bf16.msrb.mxu3 %v4155_v61  ;;  %v4417_v61 = vld [vmem:[#allocation5 + $0x60c] sm:$0xf]  ;;  %v3391_v53 = vor.u32 %v4307_v45, %v3390_v43  ;;  %v4235_v45 = vld [vmem:[#allocation5 + $0x54] sm:$0xf0]  ;;  %v3294_v47 = vld [vmem:[#allocation5 + $0x1c0] sm:$0xf] }
  0xc6   :  { %2136 = vmatpush.bf16.msrb.mxu0 %v3555_v4  ;;  %v1904_v4 = vpop.f32.mrf.mxu3  ;;  %v3843_v15 = vor.u32 %v4417_v61, %v3840_v0  ;;  %v1892_v33 = vpop.f32.mrf.mxu2  ;;  %v3558_v61 = vld [vmem:[#allocation5 + $0x3d0] sm:$0xf] }
  0xc7   :  { %2150 = vmatpush.bf16.msrb.mxu1 %v3747_v7  ;;  %v4271_v7 = vld [vmem:[#allocation5 + $0x174] sm:$0xf0]  ;;  %v4796_v13 = vadd.f32 %v1904_v4, %v1891_v3  ;;  %v3750_v0 = vld [vmem:[#allocation5 + $0x550] sm:$0xf] }
  0xc8   :  { %2164 = vmatpush.bf16.msrb.mxu2 %v3939_v8  ;;  %v3438_v8 = vld [vmem:[#allocation5 + $0x2e0] sm:$0xf] }
  0xc9   :  { %2178 = vmatpush.bf16.msrb.mxu3 %v4131_v12  ;;  %v4367_v12 = vld [vmem:[#allocation5 + $0x474] sm:$0xf0]  ;;  %v3439_v20 = vor.u32 %v4319_v10, %v3438_v8  ;;  %v3150_v8 = vld [vmem:[#allocation5 + $0xa0] sm:$0xf] }
  0xca   :  { %2137 = vmatpush.bf16.msrb.mxu0 %v3531_v19  ;;  %v3247_v19 = vor.u32 %v4271_v7, %v3246_v5  ;;  %v3559_v7 = vor.u32 %v4349_v62, %v3558_v61  ;;  %v3342_v10 = vld [vmem:[#allocation5 + $0x220] sm:$0xf]  ;;  %v3270_v62 = vld [vmem:[#allocation5 + $0x190] sm:$0xf] }
  0xcb   :  { %2151 = vmatpush.bf16.msrb.mxu1 %v3723_v21  ;;  %v3631_v21 = vor.u32 %v4367_v12, %v3630_v11  ;;  %v3751_v11 = vor.u32 %v4397_v1, %v3750_v0  ;;  %v3462_v0 = vld [vmem:[#allocation5 + $0x310] sm:$0xf] }
  0xcc   :  { %2165 = vmatpush.bf16.msrb.mxu2 %v3915_v24  ;;  %v3222_v24 = vld [vmem:[#allocation5 + $0x130] sm:$0xf] }
  0xcd   :  { %2179 = vmatpush.bf16.msrb.mxu3 %v4107_v28  ;;  %v4313_v28 = vld [vmem:[#allocation5 + $0x2c4] sm:$0xf0]  ;;  %v3223_v34 = vor.u32 %v4265_v25, %v3222_v24  ;;  %v3126_v24 = vld [vmem:[#allocation5 + $0x70] sm:$0xf] }
  0xce   :  { %2138 = vmatpush.bf16.msrb.mxu0 %v3507_v36  ;;  %v1893_v36 = vadd.f32 %v1892_v33, %v1879_v54  ;;  %v1906_v37 = vpop.f32.mrf.mxu3  ;;  %v3174_v54 = vld [vmem:[#allocation5 + $0xd0] sm:$0xf]  ;;  %v4241_v25 = vld [vmem:[#allocation5 + $0x84] sm:$0xf0] }
  0xcf   :  { %2152 = vmatpush.bf16.msrb.mxu1 %v3699_v38  ;;  %v3415_v38 = vor.u32 %v4313_v28, %v3414_v26  ;;  %v3318_v26 = vld [vmem:[#allocation5 + $0x1f0] sm:$0xf]  ;;  %v4289_v28 = vld [vmem:[#allocation5 + $0x204] sm:$0xf0] }
  0xd0   :  { %2166 = vmatpush.bf16.msrb.mxu2 %v3891_v40  ;;  %v3607_v40 = vor.u32 %v4361_v30, %v3606_v29  ;;  %v4799_v49 = vadd.f32 %v1906_v37, %v1893_v36  ;;  %v3510_v29 = vld [vmem:[#allocation5 + $0x370] sm:$0xf]  ;;  %v4337_v30 = vld [vmem:[#allocation5 + $0x384] sm:$0xf0] }
  0xd1   :  { %2180 = vmatpush.bf16.msrb.mxu3 %v4083_v44  ;;  %v3799_v44 = vor.u32 %v4409_v32, %v3798_v31  ;;  %v3702_v33 = vld [vmem:[#allocation5 + $0x4f0] sm:$0xf]  ;;  %v3511_v43 = vor.u32 %v4337_v30, %v3510_v29  ;;  %v4457_v29 = vld [vmem:[#allocation5 + $0x744] sm:$0xf0] }
  0xd2   :  { %2139 = vmatpush.bf16.msrb.mxu0 %v3483_v52  ;;  %v3199_v52 = vor.u32 %v4259_v42, %v3198_v41  ;;  %v3319_v42 = vor.u32 %v4289_v28, %v3318_v26  ;;  %v4182_v30 = vld [vmem:[#allocation5 + $0x8b0] sm:$0xf] }
  0xd3   :  { %2153 = vmatpush.bf16.msrb.mxu1 %v3675_v56  ;;  %v4253_v56 = vld [vmem:[#allocation5 + $0xe4] sm:$0xf0] }
  0xd4   :  { %2167 = vmatpush.bf16.msrb.mxu2 %v3867_v58  ;;  %v3366_v58 = vld [vmem:[#allocation5 + $0x250] sm:$0xf]  ;;  %v3175_v3 = vor.u32 %v4253_v56, %v3174_v54  ;;  %v3678_v54 = vld [vmem:[#allocation5 + $0x4c0] sm:$0xf] }
  0xd5   :  { %2181 = vmatpush.bf16.msrb.mxu3 %v4059_v63  ;;  %v3367_v5 = vor.u32 %v4301_v60, %v3366_v58  ;;  %v3078_v58 = vld [vmem:[#allocation5 + $0x10] sm:$0xf] }
  0xd6   :  { %2140 = vmatpush.bf16.msrb.mxu0 %v3459_v9  ;;  %v1918_v63 = vpop.f32.mrf.mxu0  ;;  %v4247_v9 = vld [vmem:[#allocation5 + $0xb4] sm:$0xf0] }
  0xd7   :  { %2154 = vmatpush.bf16.msrb.mxu1 %v3651_v14  ;;  %v1919_v2 = vadd.f32 %v1918_v63, %v4796_v13  ;;  %v1932_v4 = vpop.f32.mrf.mxu1  ;;  %v4295_v14 = vld [vmem:[#allocation5 + $0x234] sm:$0xf0]  ;;  %v402_v13 = vperm.slane %v4789_v46, 1  ;;  %v4277_v63 = vld [vmem:[#allocation5 + $0x1a4] sm:$0xf0] }
  0xd8   :  { %2168 = vmatpush.bf16.msrb.mxu2 %v3843_v15  ;;  %v3534_v15 = vld [vmem:[#allocation5 + $0x3a0] sm:$0xf] }
  0xd9   :  { %2182 = vmatpush.bf16.msrb.mxu3 %v4035_v18  ;;  %2141 = vmatmul.bf16.vlgmr.msrb.gmra.mxu0 %v4767_v22  ;;  %v4805_v12 = vadd.f32 %v1932_v4, %v1919_v2  ;;  %v4391_v18 = vld [vmem:[#allocation5 + $0x534] sm:$0xf0]  ;;  %v4325_v2 = vld [vmem:[#allocation5 + $0x324] sm:$0xf0] }
  0xda   :  { %2189 = vmatpush.bf16.msra.mxu0 %v3247_v19  ;;  %2155 = vmatmul.bf16.vlgmr.msrb.gmra.mxu1 %v4769_v23  ;;  %v3151_v19 = vor.u32 %v4247_v9, %v3150_v8  ;;  %v4373_v4 = vld [vmem:[#allocation5 + $0x4a4] sm:$0xf0]  ;;  %v4463_v8 = vld [vmem:[#allocation5 + $0x774] sm:$0xf0]  ;;  %v4206_v9 = vld [vmem:[#allocation5 + $0x8e0] sm:$0xf] }
  0xdb   :  { %2203 = vmatpush.bf16.msra.mxu1 %v3439_v20  ;;  %2169 = vmatmul.bf16.vlgmr.msrb.gmra.mxu2 %v4773_v35  ;;  %v3343_v20 = vor.u32 %v4295_v14, %v3342_v10  ;;  %v4511_v14 = vld [vmem:[#allocation5 + $0x8f4] sm:$0xf0] }
  0xdc   :  { %2217 = vmatpush.bf16.msra.mxu2 %v3631_v21  ;;  %2183 = vmatmul.bf16.vlgmr.msrb.gmra.mxu3 %v4775_v39  ;;  %v3535_v21 = vor.u32 %v4343_v16, %v3534_v15  ;;  %v4268_v15 = vld [vmem:[#allocation5 + $0x164] sm:$0xf]  ;;  %v3248_v16 = vld [vmem:[#allocation5 + $0x178] sm:$0xf0] }
  0xdd   :  { %2231 = vmatpush.bf16.msra.mxu3 %v3823_v27  ;;  %v3727_v27 = vor.u32 %v4391_v18, %v3726_v17  ;;  %v3271_v18 = vor.u32 %v4277_v63, %v3270_v62  ;;  %v3251_v28 = vor.u32 %v4268_v15, %v3248_v16  ;;  %v4493_v62 = vld [vmem:[#allocation5 + $0x864] sm:$0xf0]  ;;  %v4250_v63 = vld [vmem:[#allocation5 + $0xd4] sm:$0xf]  ;;  %v4487_v16 = vld [vmem:[#allocation5 + $0x834] sm:$0xf0] }
  0xde   :  { %2190 = vmatpush.bf16.msra.mxu0 %v3223_v34  ;;  %v1946_v31 = vpop.f32.mrf.mxu2  ;;  %v1920_v32 = vpop.f32.mrf.mxu0  ;;  %v4385_v34 = vld [vmem:[#allocation5 + $0x504] sm:$0xf0] }
  0xdf   :  { %2204 = vmatpush.bf16.msra.mxu1 %v3415_v38  ;;  %v1947_v36 = vadd.f32 %v1946_v31, %v402_v13  ;;  %v1960_v37 = vpop.f32.mrf.mxu3  ;;  %v1921_v38 = vadd.f32 %v1920_v32, %v4799_v49  ;;  %v1934_v41 = vpop.f32.mrf.mxu1  ;;  %v3703_v50 = vor.u32 %v4385_v34, %v3702_v33  ;;  %v4379_v49 = vld [vmem:[#allocation5 + $0x4d4] sm:$0xf0]  ;;  %v4505_v32 = vld [vmem:[#allocation5 + $0x8c4] sm:$0xf0]  ;;  %v4262_v33 = vld [vmem:[#allocation5 + $0x134] sm:$0xf] }
  0xe0   :  { %2218 = vmatpush.bf16.msra.mxu2 %v3607_v40  ;;  %v3127_v40 = vor.u32 %v4241_v25, %v3126_v24  ;;  %v3679_v1 = vor.u32 %v4379_v49, %v3678_v54  ;;  %v3224_v34 = vld [vmem:[#allocation5 + $0x148] sm:$0xf0] }
  0xe1   :  { %2232 = vmatpush.bf16.msra.mxu3 %v3799_v44  ;;  %v3102_v44 = vld [vmem:[#allocation5 + $0x40] sm:$0xf]  ;;  %v4809_v48 = vadd.f32 %v1960_v37, %v1947_v36  ;;  %v4811_v51 = vadd.f32 %v1934_v41, %v1921_v38  ;;  %v4310_v36 = vld [vmem:[#allocation5 + $0x2b4] sm:$0xf]  ;;  %v3416_v37 = vld [vmem:[#allocation5 + $0x2c8] sm:$0xf0]  ;;  %v3227_v41 = vor.u32 %v4262_v33, %v3224_v34 }
  0xe2   :  { %2191 = vmatpush.bf16.msra.mxu0 %v3199_v52  ;;  %v4283_v52 = vld [vmem:[#allocation5 + $0x1d4] sm:$0xf0]  ;;  %v3103_v56 = vor.u32 %v4235_v45, %v3102_v44  ;;  %v4158_v44 = vld [vmem:[#allocation5 + $0x880] sm:$0xf]  ;;  %v3419_v45 = vor.u32 %v4310_v36, %v3416_v37  ;;  %v3128_v33 = vld [vmem:[#allocation5 + $0x88] sm:$0xf0] }
  0xe3   :  { %2205 = vmatpush.bf16.msra.mxu1 %v3391_v53  ;;  %v3486_v53 = vld [vmem:[#allocation5 + $0x340] sm:$0xf]  ;;  %v3295_v60 = vor.u32 %v4283_v52, %v3294_v47  ;;  %v4499_v47 = vld [vmem:[#allocation5 + $0x894] sm:$0xf0]  ;;  %v3200_v52 = vld [vmem:[#allocation5 + $0x118] sm:$0xf0] }
  0xe4   :  { %2219 = vmatpush.bf16.msra.mxu2 %v3583_v55  ;;  %v4331_v55 = vld [vmem:[#allocation5 + $0x354] sm:$0xf0]  ;;  %v4159_v49 = vor.u32 %v4499_v47, %v4158_v44  ;;  %v4286_v37 = vld [vmem:[#allocation5 + $0x1f4] sm:$0xf]  ;;  %v3870_v47 = vld [vmem:[#allocation5 + $0x640] sm:$0xf] }
  0xe5   :  { %2233 = vmatpush.bf16.msra.mxu3 %v3775_v59  ;;  %v4229_v59 = vld [vmem:[#allocation5 + $0x24] sm:$0xf0]  ;;  %v3487_v61 = vor.u32 %v4331_v55, %v3486_v53  ;;  %v4304_v53 = vld [vmem:[#allocation5 + $0x284] sm:$0xf]  ;;  %v3392_v55 = vld [vmem:[#allocation5 + $0x298] sm:$0xf0] }
  0xe6   :  { %2192 = vmatpush.bf16.msra.mxu0 %v3175_v3  ;;  %v3654_v3 = vld [vmem:[#allocation5 + $0x490] sm:$0xf] }
  0xe7   :  { %2206 = vmatpush.bf16.msra.mxu1 %v3367_v5  ;;  %v1948_v5 = vpop.f32.mrf.mxu2  ;;  %v1962_v17 = vpop.f32.mrf.mxu3  ;;  %v3655_v25 = vor.u32 %v4373_v4, %v3654_v3  ;;  %v3368_v3 = vld [vmem:[#allocation5 + $0x268] sm:$0xf0] }
  0xe8   :  { %2220 = vmatpush.bf16.msra.mxu2 %v3559_v7  ;;  %v4014_v7 = vld [vmem:[#allocation5 + $0x760] sm:$0xf]  ;;  %v1949_v10 = vadd.f32 %v1948_v5, %v402_v13  ;;  %v3990_v13 = vld [vmem:[#allocation5 + $0x730] sm:$0xf] }
  0xe9   :  { %2234 = vmatpush.bf16.msra.mxu3 %v3751_v11  ;;  %v3079_v11 = vor.u32 %v4229_v59, %v3078_v58  ;;  %v4015_v26 = vor.u32 %v4463_v8, %v4014_v7  ;;  %v3991_v38 = vor.u32 %v4457_v29, %v3990_v13  ;;  %v3942_v58 = vld [vmem:[#allocation5 + $0x6d0] sm:$0xf]  ;;  %v4445_v59 = vld [vmem:[#allocation5 + $0x6e4] sm:$0xf0] }
  0xea   :  { %2193 = vmatpush.bf16.msra.mxu0 %v3151_v19  ;;  %v3463_v19 = vor.u32 %v4325_v2, %v3462_v0  ;;  %v4813_v24 = vadd.f32 %v1962_v17, %v1949_v10  ;;  %v3176_v0 = vld [vmem:[#allocation5 + $0xe8] sm:$0xf0]  ;;  %v4298_v2 = vld [vmem:[#allocation5 + $0x254] sm:$0xf]  ;;  %v3943_v4 = vor.u32 %v4445_v59, %v3942_v58  ;;  %v3918_v10 = vld [vmem:[#allocation5 + $0x6a0] sm:$0xf] }
  0xeb   :  { %2207 = vmatpush.bf16.msra.mxu1 %v3343_v20  ;;  %v4316_v20 = vld [vmem:[#allocation5 + $0x2e4] sm:$0xf]  ;;  %v3371_v15 = vor.u32 %v4298_v2, %v3368_v3  ;;  %v4086_v13 = vld [vmem:[#allocation5 + $0x7f0] sm:$0xf]  ;;  %v3104_v58 = vld [vmem:[#allocation5 + $0x58] sm:$0xf0] }
  0xec   :  { %2221 = vmatpush.bf16.msra.mxu2 %v3535_v21  ;;  %v3440_v21 = vld [vmem:[#allocation5 + $0x2f8] sm:$0xf0]  ;;  %v4244_v17 = vld [vmem:[#allocation5 + $0xa4] sm:$0xf]  ;;  %v4469_v2 = vld [vmem:[#allocation5 + $0x7a4] sm:$0xf0] }
  0xed   :  { %2235 = vmatpush.bf16.msra.mxu3 %v3727_v27  ;;  %v4207_v27 = vor.u32 %v4511_v14, %v4206_v9  ;;  %v3443_v31 = vor.u32 %v4316_v20, %v3440_v21  ;;  %v3179_v9 = vor.u32 %v4250_v63, %v3176_v0  ;;  %v4110_v14 = vld [vmem:[#allocation5 + $0x820] sm:$0xf]  ;;  %v4292_v20 = vld [vmem:[#allocation5 + $0x224] sm:$0xf]  ;;  %v3344_v21 = vld [vmem:[#allocation5 + $0x238] sm:$0xf0] }
  0xee   :  { %2194 = vmatpush.bf16.msra.mxu0 %v3127_v40  ;;  %v4183_v40 = vor.u32 %v4505_v32, %v4182_v30  ;;  %v3347_v29 = vor.u32 %v4292_v20, %v3344_v21  ;;  %v4238_v32 = vld [vmem:[#allocation5 + $0x74] sm:$0xf]  ;;  %v4280_v59 = vld [vmem:[#allocation5 + $0x1c4] sm:$0xf]  ;;  %v4016_v20 = vld [vmem:[#allocation5 + $0x778] sm:$0xf0] }
  0xef   :  { %2208 = vmatpush.bf16.msra.mxu1 %v3319_v42  ;;  %v3966_v42 = vld [vmem:[#allocation5 + $0x700] sm:$0xf]  ;;  %v4226_v3 = vld [vmem:[#allocation5 + $0x14] sm:$0xf] }
  0xf0   :  { %2222 = vmatpush.bf16.msra.mxu2 %v3511_v43  ;;  %v4451_v43 = vld [vmem:[#allocation5 + $0x714] sm:$0xf0] }
  0xf1   :  { %2236 = vmatpush.bf16.msra.mxu3 %v3703_v50  ;;  %v4256_v50 = vld [vmem:[#allocation5 + $0x104] sm:$0xf]  ;;  %v3967_v54 = vor.u32 %v4451_v43, %v3966_v42 }
  0xf2   :  { %2195 = vmatpush.bf16.msra.mxu0 %v3103_v56  ;;  %v3203_v56 = vor.u32 %v4256_v50, %v3200_v52  ;;  %v4427_v50 = vld [vmem:[#allocation5 + $0x654] sm:$0xf0]  ;;  %v4062_v52 = vld [vmem:[#allocation5 + $0x7c0] sm:$0xf] }
  0xf3   :  { %2209 = vmatpush.bf16.msra.mxu1 %v3295_v60  ;;  %v4134_v60 = vld [vmem:[#allocation5 + $0x850] sm:$0xf] }
  0xf4   :  { %2223 = vmatpush.bf16.msra.mxu2 %v3487_v61  ;;  %v3395_v61 = vor.u32 %v4304_v53, %v3392_v55  ;;  %v4135_v8 = vor.u32 %v4493_v62, %v4134_v60  ;;  %v3296_v60 = vld [vmem:[#allocation5 + $0x1d8] sm:$0xf0]  ;;  %v4421_v62 = vld [vmem:[#allocation5 + $0x624] sm:$0xf0] }
  0xf5   :  { %2237 = vmatpush.bf16.msra.mxu3 %v3679_v1 }
  0xf6   :  { %2196 = vmatpush.bf16.msra.mxu0 %v3079_v11  ;;  %v1974_v1 = vpop.f32.mrf.mxu0  ;;  %v4439_v11 = vld [vmem:[#allocation5 + $0x6b4] sm:$0xf0] }
  0xf7   :  { %2210 = vmatpush.bf16.msra.mxu1 %v3271_v18  ;;  %v1988_v5 = vpop.f32.mrf.mxu1  ;;  %v1975_v7 = vadd.f32 %v1974_v1, %v4809_v48  ;;  %v3152_v18 = vld [vmem:[#allocation5 + $0xb8] sm:$0xf0]  ;;  %v3894_v48 = vld [vmem:[#allocation5 + $0x670] sm:$0xf] }
  0xf8   :  { %2224 = vmatpush.bf16.msra.mxu2 %v3463_v19  ;;  %v4038_v1 = vld [vmem:[#allocation5 + $0x790] sm:$0xf] }
  0xf9   :  { %2238 = vmatpush.bf16.msra.mxu3 %v3655_v25  ;;  %2197 = vmatmul.bf16.vlgmr.msra.gmra.mxu0 %v4761_v57  ;;  %v1989_v19 = vadd.f32 %v1988_v5, %v1975_v7  ;;  %v3919_v25 = vor.u32 %v4439_v11, %v3918_v10  ;;  %v3080_v7 = vld [vmem:[#allocation5 + $0x28] sm:$0xf0] }
  0xfa   :  { %2245 = vmatpush.bf16.msrb.mxu0 %v4015_v26  ;;  %2211 = vmatmul.bf16.vlgmr.msra.gmra.mxu1 %v4764_v6  ;;  %v4111_v26 = vor.u32 %v4487_v16, %v4110_v14  ;;  %v4364_v14 = vld [vmem:[#allocation5 + $0x464] sm:$0xf] }
  0xfb   :  { %2259 = vmatpush.bf16.msrb.mxu1 %v4207_v27  ;;  %2225 = vmatmul.bf16.vlgmr.msra.gmra.mxu2 %v4767_v22  ;;  %v3155_v27 = vor.u32 %v4244_v17, %v3152_v18  ;;  %v4412_v16 = vld [vmem:[#allocation5 + $0x5e4] sm:$0xf]  ;;  %v3824_v18 = vld [vmem:[#allocation5 + $0x5f8] sm:$0xf0] }
  0xfc   :  { %2273 = vmatpush.bf16.msrb.mxu2 %v3251_v28  ;;  %2239 = vmatmul.bf16.vlgmr.msra.gmra.mxu3 %v4769_v23  ;;  %v4433_v28 = vld [vmem:[#allocation5 + $0x684] sm:$0xf0] }
  0xfd   :  { %2287 = vmatpush.bf16.msrb.mxu3 %v3443_v31  ;;  %v4481_v31 = vld [vmem:[#allocation5 + $0x804] sm:$0xf0]  ;;  %v3895_v42 = vor.u32 %v4433_v28, %v3894_v48  ;;  %v4208_v48 = vld [vmem:[#allocation5 + $0x8f8] sm:$0xf0] }
  0xfe   :  { %2246 = vmatpush.bf16.msrb.mxu0 %v3991_v38  ;;  %v2002_v30 = vpop.f32.mrf.mxu2  ;;  %v1976_v34 = vpop.f32.mrf.mxu0  ;;  %v3320_v38 = vld [vmem:[#allocation5 + $0x208] sm:$0xf0]  ;;  %v4087_v44 = vor.u32 %v4481_v31, %v4086_v13  ;;  %v4358_v31 = vld [vmem:[#allocation5 + $0x434] sm:$0xf] }
  0xff   :  { %2260 = vmatpush.bf16.msrb.mxu1 %v4183_v40  ;;  %v2016_v36 = vpop.f32.mrf.mxu3  ;;  %v2003_v40 = vadd.f32 %v2002_v30, %v1989_v19  ;;  %v1990_v43 = vpop.f32.mrf.mxu1  ;;  %v3323_v55 = vor.u32 %v4286_v37, %v3320_v38  ;;  %v4460_v19 = vld [vmem:[#allocation5 + $0x764] sm:$0xf]  ;;  %v4454_v37 = vld [vmem:[#allocation5 + $0x734] sm:$0xf]  ;;  %v3992_v38 = vld [vmem:[#allocation5 + $0x748] sm:$0xf0] }
 0x100   :  { %2274 = vmatpush.bf16.msrb.mxu2 %v3227_v41  ;;  %v1977_v41 = vadd.f32 %v1976_v34, %v4813_v24  ;;  %v3871_v24 = vor.u32 %v4427_v50, %v3870_v47  ;;  %v4019_v30 = vor.u32 %v4460_v19, %v4016_v20  ;;  %v3584_v47 = vld [vmem:[#allocation5 + $0x418] sm:$0xf0]  ;;  %v4400_v50 = vld [vmem:[#allocation5 + $0x584] sm:$0xf] }
 0x101   :  { %2288 = vmatpush.bf16.msrb.mxu3 %v3419_v45  ;;  %v3131_v45 = vor.u32 %v4238_v32, %v3128_v33  ;;  %v4821_v53 = vadd.f32 %v2016_v36, %v2003_v40  ;;  %v3608_v32 = vld [vmem:[#allocation5 + $0x448] sm:$0xf0]  ;;  %v4406_v33 = vld [vmem:[#allocation5 + $0x5b4] sm:$0xf]  ;;  %v4436_v19 = vld [vmem:[#allocation5 + $0x6a4] sm:$0xf] }
 0x102   :  { %2247 = vmatpush.bf16.msrb.mxu0 %v3967_v54  ;;  %v1991_v54 = vadd.f32 %v1990_v43, %v1977_v41  ;;  %v3800_v36 = vld [vmem:[#allocation5 + $0x5c8] sm:$0xf0]  ;;  %v4502_v40 = vld [vmem:[#allocation5 + $0x8b4] sm:$0xf]  ;;  %v3920_v20 = vld [vmem:[#allocation5 + $0x6b8] sm:$0xf0] }
 0x103   :  { %2261 = vmatpush.bf16.msrb.mxu1 %v4159_v49  ;;  %v4475_v49 = vld [vmem:[#allocation5 + $0x7d4] sm:$0xf0]  ;;  %v4184_v41 = vld [vmem:[#allocation5 + $0x8c8] sm:$0xf0]  ;;  %v3803_v43 = vor.u32 %v4406_v33, %v3800_v36 }
 0x104   :  { %2275 = vmatpush.bf16.msrb.mxu2 %v3203_v56  ;;  %v4232_v56 = vld [vmem:[#allocation5 + $0x44] sm:$0xf]  ;;  %v4063_v63 = vor.u32 %v4475_v49, %v4062_v52  ;;  %v4187_v52 = vor.u32 %v4502_v40, %v4184_v41  ;;  %v3968_v49 = vld [vmem:[#allocation5 + $0x718] sm:$0xf0]  ;;  %v3704_v33 = vld [vmem:[#allocation5 + $0x508] sm:$0xf0] }
 0x105   :  { %2289 = vmatpush.bf16.msrb.mxu3 %v3395_v61  ;;  %v3846_v61 = vld [vmem:[#allocation5 + $0x610] sm:$0xf]  ;;  %v3107_v0 = vor.u32 %v4232_v56, %v3104_v58  ;;  %v4496_v56 = vld [vmem:[#allocation5 + $0x884] sm:$0xf]  ;;  %v4160_v58 = vld [vmem:[#allocation5 + $0x898] sm:$0xf0] }
 0x106   :  { %2248 = vmatpush.bf16.msrb.mxu0 %v3943_v4  ;;  %v3299_v4 = vor.u32 %v4280_v59, %v3296_v60  ;;  %v2004_v5 = vpop.f32.mrf.mxu2  ;;  %v3847_v17 = vor.u32 %v4421_v62, %v3846_v61  ;;  %v403_v60 = vperm.slane %v4789_v46, 2  ;;  %v4346_v62 = vld [vmem:[#allocation5 + $0x3d4] sm:$0xf]  ;;  %v3896_v36 = vld [vmem:[#allocation5 + $0x688] sm:$0xf0] }
 0x107   :  { %2262 = vmatpush.bf16.msrb.mxu1 %v4135_v8  ;;  %v4274_v8 = vld [vmem:[#allocation5 + $0x194] sm:$0xf]  ;;  %v2005_v10 = vadd.f32 %v2004_v5, %v1991_v54  ;;  %v2018_v11 = vpop.f32.mrf.mxu3  ;;  %v4448_v54 = vld [vmem:[#allocation5 + $0x704] sm:$0xf]  ;;  %v4136_v5 = vld [vmem:[#allocation5 + $0x868] sm:$0xf0] }
 0x108   :  { %2276 = vmatpush.bf16.msrb.mxu2 %v3179_v9  ;;  %v3272_v9 = vld [vmem:[#allocation5 + $0x1a8] sm:$0xf0]  ;;  %v3971_v61 = vor.u32 %v4448_v54, %v3968_v49 }
 0x109   :  { %2290 = vmatpush.bf16.msrb.mxu3 %v3371_v15  ;;  %v3632_v15 = vld [vmem:[#allocation5 + $0x478] sm:$0xf0]  ;;  %v4823_v21 = vadd.f32 %v2018_v11, %v2005_v10  ;;  %v3275_v28 = vor.u32 %v4274_v8, %v3272_v9  ;;  %v4088_v40 = vld [vmem:[#allocation5 + $0x808] sm:$0xf0] }
 0x10a   :  { %2249 = vmatpush.bf16.msrb.mxu0 %v3919_v25  ;;  %v4039_v25 = vor.u32 %v4469_v2, %v4038_v1  ;;  %v3635_v13 = vor.u32 %v4364_v14, %v3632_v15  ;;  %v4163_v1 = vor.u32 %v4496_v56, %v4160_v58  ;;  %v3752_v2 = vld [vmem:[#allocation5 + $0x568] sm:$0xf0]  ;;  %v4340_v14 = vld [vmem:[#allocation5 + $0x3a4] sm:$0xf]  ;;  %v3536_v15 = vld [vmem:[#allocation5 + $0x3b8] sm:$0xf0] }
 0x10b   :  { %2263 = vmatpush.bf16.msrb.mxu1 %v4111_v26  ;;  %v3083_v26 = vor.u32 %v4226_v3, %v3080_v7  ;;  %v4442_v3 = vld [vmem:[#allocation5 + $0x6d4] sm:$0xf]  ;;  %v3680_v56 = vld [vmem:[#allocation5 + $0x4d8] sm:$0xf0]  ;;  %v4424_v58 = vld [vmem:[#allocation5 + $0x644] sm:$0xf] }
 0x10c   :  { %2277 = vmatpush.bf16.msrb.mxu2 %v3155_v27  ;;  %v4508_v27 = vld [vmem:[#allocation5 + $0x8e4] sm:$0xf]  ;;  %v3464_v46 = vld [vmem:[#allocation5 + $0x328] sm:$0xf0] }
 0x10d   :  { %2291 = vmatpush.bf16.msrb.mxu3 %v3347_v29  ;;  %v3827_v29 = vor.u32 %v4412_v16, %v3824_v18  ;;  %v4211_v34 = vor.u32 %v4508_v27, %v4208_v48  ;;  %v4388_v16 = vld [vmem:[#allocation5 + $0x524] sm:$0xf]  ;;  %v3728_v18 = vld [vmem:[#allocation5 + $0x538] sm:$0xf0]  ;;  %v3539_v48 = vor.u32 %v4340_v14, %v3536_v15 }
 0x10e   :  { %2250 = vmatpush.bf16.msrb.mxu0 %v3895_v42  ;;  %v3611_v42 = vor.u32 %v4358_v31, %v3608_v32  ;;  %v4112_v27 = vld [vmem:[#allocation5 + $0x838] sm:$0xf0]  ;;  %v4382_v31 = vld [vmem:[#allocation5 + $0x4f4] sm:$0xf] }
 0x10f   :  { %2264 = vmatpush.bf16.msrb.mxu1 %v4087_v44  ;;  %v3995_v44 = vor.u32 %v4454_v37, %v3992_v38  ;;  %v4478_v38 = vld [vmem:[#allocation5 + $0x7f4] sm:$0xf] }
 0x110   :  { %2278 = vmatpush.bf16.msrb.mxu2 %v3131_v45  ;;  %v4352_v45 = vld [vmem:[#allocation5 + $0x404] sm:$0xf]  ;;  %v4091_v49 = vor.u32 %v4478_v38, %v4088_v40 }
 0x111   :  { %2292 = vmatpush.bf16.msrb.mxu3 %v3323_v55  ;;  %v3776_v55 = vld [vmem:[#allocation5 + $0x598] sm:$0xf0]  ;;  %v3587_v59 = vor.u32 %v4352_v45, %v3584_v47  ;;  %v3707_v45 = vor.u32 %v4382_v31, %v3704_v33 }
 0x112   :  { %2251 = vmatpush.bf16.msrb.mxu0 %v3871_v24  ;;  %v3779_v24 = vor.u32 %v4400_v50, %v3776_v55  ;;  %v4328_v50 = vld [vmem:[#allocation5 + $0x344] sm:$0xf] }
 0x113   :  { %2265 = vmatpush.bf16.msrb.mxu1 %v4063_v63  ;;  %v3560_v63 = vld [vmem:[#allocation5 + $0x3e8] sm:$0xf0]  ;;  %v4376_v55 = vld [vmem:[#allocation5 + $0x4c4] sm:$0xf] }
 0x114   :  { %2279 = vmatpush.bf16.msrb.mxu2 %v3107_v0  ;;  %v4394_v0 = vld [vmem:[#allocation5 + $0x554] sm:$0xf]  ;;  %v3563_v8 = vor.u32 %v4346_v62, %v3560_v63  ;;  %v4472_v62 = vld [vmem:[#allocation5 + $0x7c4] sm:$0xf]  ;;  %v4064_v63 = vld [vmem:[#allocation5 + $0x7d8] sm:$0xf0] }
 0x115   :  { %2293 = vmatpush.bf16.msrb.mxu3 %v3299_v4  ;;  %v4490_v4 = vld [vmem:[#allocation5 + $0x854] sm:$0xf]  ;;  %v3755_v10 = vor.u32 %v4394_v0, %v3752_v2  ;;  %v3683_v2 = vor.u32 %v4376_v55, %v3680_v56 }
 0x116   :  { %2252 = vmatpush.bf16.msrb.mxu0 %v3847_v17  ;;  %v2030_v7 = vpop.f32.mrf.mxu0  ;;  %v4139_v17 = vor.u32 %v4490_v4, %v4136_v5  ;;  %v4067_v4 = vor.u32 %v4472_v62, %v4064_v63  ;;  %v3656_v5 = vld [vmem:[#allocation5 + $0x4a8] sm:$0xf0] }
 0x117   :  { %2266 = vmatpush.bf16.msrb.mxu1 %v4039_v25  ;;  %v2044_v9 = vpop.f32.mrf.mxu1 }
 0x118   :  { %2280 = vmatpush.bf16.msrb.mxu2 %v3083_v26  ;;  %v4484_v26 = vld [vmem:[#allocation5 + $0x824] sm:$0xf] }
 0x119   :  { %2294 = vmatpush.bf16.msrb.mxu3 %v3275_v28  ;;  %2253 = vmatmul.bf16.vlgmr.msrb.gmra.mxu0 %v4773_v35  ;;  %v3731_v28 = vor.u32 %v4388_v16, %v3728_v18  ;;  %v4115_v32 = vor.u32 %v4484_v26, %v4112_v27 }
 0x11a   :  { %2301 = vmatpush.bf16.msra.mxu0 %v3635_v13  ;;  %2267 = vmatmul.bf16.vlgmr.msrb.gmra.mxu1 %v4775_v39  ;;  %v3923_v13 = vor.u32 %v4436_v19, %v3920_v20  ;;  %v4841_v20 = vmul.f32 0.70710677, %v4805_v12 }
 0x11b   :  { %2315 = vmatpush.bf16.msra.mxu1 %v3827_v29  ;;  %2281 = vmatmul.bf16.vlgmr.msrb.gmra.mxu2 %v4761_v57  ;;  %v3944_v57 = vld [vmem:[#allocation5 + $0x6e8] sm:$0xf0]  ;;  %v4334_v29 = vld [vmem:[#allocation5 + $0x374] sm:$0xf] }
 0x11c   :  { %2329 = vmatpush.bf16.msra.mxu2 %v4019_v30  ;;  %2295 = vmatmul.bf16.vlgmr.msrb.gmra.mxu3 %v4764_v6  ;;  %v2031_v6 = vadd.f32 %v2030_v7, %v403_v60  ;;  %v3947_v11 = vor.u32 %v4442_v3, %v3944_v57  ;;  %v3512_v30 = vld [vmem:[#allocation5 + $0x388] sm:$0xf0]  ;;  %v4322_v57 = vld [vmem:[#allocation5 + $0x314] sm:$0xf]  ;;  %v2381_v26 = vmul.f32 %v4841_v20, %v4841_v20 }
 0x11d   :  { %2343 = vmatpush.bf16.msra.mxu3 %v4211_v34  ;;  %v4430_v34 = vld [vmem:[#allocation5 + $0x674] sm:$0xf]  ;;  %v3467_v14 = vor.u32 %v4322_v57, %v3464_v46  ;;  %v4884_v46 = vld [vmem:[#allocation7] sm:$0x3f] }
 0x11e   :  { %2302 = vmatpush.bf16.msra.mxu0 %v3611_v42  ;;  %v2045_v25 = vadd.f32 %v2044_v9, %v2031_v6  ;;  %v2058_v37 = vpop.f32.mrf.mxu2  ;;  %v3899_v47 = vor.u32 %v4430_v34, %v3896_v36  ;;  %v4418_v7 = vld [vmem:[#allocation5 + $0x614] sm:$0xf] }
 0x11f   :  { %2316 = vmatpush.bf16.msra.mxu1 %v3803_v43  ;;  %v2072_v42 = vpop.f32.mrf.mxu3  ;;  %v3515_v43 = vor.u32 %v4334_v29, %v3512_v30  ;;  %v4466_v9 = vld [vmem:[#allocation5 + $0x794] sm:$0xf] }
 0x120   :  { %2330 = vmatpush.bf16.msra.mxu2 %v3995_v44  ;;  %v2059_v41 = vadd.f32 %v2058_v37, %v2045_v25  ;;  %v2032_v44 = vpop.f32.mrf.mxu0  ;;  %v4844_v25 = vmul.f32 0.70710677, %v4811_v51 }
 0x121   :  { %2344 = vmatpush.bf16.msra.mxu3 %v4187_v52  ;;  %v3488_v52 = vld [vmem:[#allocation5 + $0x358] sm:$0xf0]  ;;  %v2033_v54 = vadd.f32 %v2032_v44, %v403_v60  ;;  %v4370_v60 = vld [vmem:[#allocation5 + $0x494] sm:$0xf] }
 0x122   :  { %2303 = vmatpush.bf16.msra.mxu0 %v3587_v59  ;;  %v3872_v59 = vld [vmem:[#allocation5 + $0x658] sm:$0xf0]  ;;  %v3659_v16 = vor.u32 %v4370_v60, %v3656_v5  ;;  %v2621_v27 = vmul.f32 %v4844_v25, %v4844_v25  ;;  %v404_v60 = vperm.slane %v4884_v46, 3 }
 0x123   :  { %2317 = vmatpush.bf16.msra.mxu1 %v3779_v24  ;;  %v2046_v24 = vpop.f32.mrf.mxu1  ;;  %v3875_v3 = vor.u32 %v4424_v58, %v3872_v59 }
 0x124   :  { %2331 = vmatpush.bf16.msra.mxu2 %v3971_v61  ;;  %v4834_v61 = vadd.f32 %v2072_v42, %v2059_v41  ;;  %v2047_v0 = vadd.f32 %v2046_v24, %v2033_v54 }
 0x125   :  { %2345 = vmatpush.bf16.msra.mxu3 %v4163_v1  ;;  %v3491_v1 = vor.u32 %v4328_v50, %v3488_v52 }
 0x126   :  { %2304 = vmatpush.bf16.msra.mxu0 %v3563_v8  ;;  %v3848_v8 = vld [vmem:[#allocation5 + $0x628] sm:$0xf0]  ;;  %v2060_v6 = vpop.f32.mrf.mxu2 }
 0x127   :  { %2318 = vmatpush.bf16.msra.mxu1 %v3755_v10  ;;  %v4040_v10 = vld [vmem:[#allocation5 + $0x7a8] sm:$0xf0]  ;;  %v2061_v15 = vadd.f32 %v2060_v6, %v2047_v0 }
 0x128   :  { %2332 = vmatpush.bf16.msra.mxu2 %v3947_v11  ;;  %v2074_v11 = vpop.f32.mrf.mxu3  ;;  %v4043_v18 = vor.u32 %v4466_v9, %v4040_v10 }
 0x129   :  { %2346 = vmatpush.bf16.msra.mxu3 %v4139_v17  ;;  %v3851_v17 = vor.u32 %v4418_v7, %v3848_v8  ;;  %v2075_v19 = vadd.f32 %v2074_v11, %v2061_v15 }
 0x12a   :  { %2305 = vmatpush.bf16.msra.mxu0 %v3539_v48  ;;  %v4850_v48 = vmin.f32 %v2381_v26, 16.0 }
 0x12b   :  { %2319 = vmatpush.bf16.msra.mxu1 %v3731_v28 }
 0x12c   :  { %2333 = vmatpush.bf16.msra.mxu2 %v3923_v13 }
 0x12d   :  { %2347 = vmatpush.bf16.msra.mxu3 %v4115_v32  ;;  %v4865_v32 = vmul.f32 0.70710677, %v4823_v21 }
 0x12e   :  { %2306 = vmatpush.bf16.msra.mxu0 %v3515_v43  ;;  %v2383_v43 = vmul.f32 2.1237322e-06, %v4850_v48 }
 0x12f   :  { %2320 = vmatpush.bf16.msra.mxu1 %v3707_v45  ;;  %v2661_v37 = vmul.f32 %v4865_v32, %v4865_v32 }
 0x130   :  { %2334 = vmatpush.bf16.msra.mxu2 %v3899_v47  ;;  %v2384_v55 = vadd.f32 0.00028619796, %v2383_v43 }
 0x131   :  { %2348 = vmatpush.bf16.msra.mxu3 %v4091_v49  ;;  %v4873_v45 = vmin.f32 %v2661_v37, 16.0 }
 0x132   :  { %2307 = vmatpush.bf16.msra.mxu0 %v3491_v1  ;;  %v2385_v63 = vmul.f32 %v2384_v55, %v4850_v48 }
 0x133   :  { %2321 = vmatpush.bf16.msra.mxu1 %v3683_v2  ;;  %v2674_v49 = vmul.f32 3.8918573e-05, %v4873_v45 }
 0x134   :  { %2335 = vmatpush.bf16.msra.mxu2 %v3875_v3  ;;  %v2386_v5 = vadd.f32 0.0036580483, %v2385_v63 }
 0x135   :  { %2349 = vmatpush.bf16.msra.mxu3 %v4067_v4  ;;  %v2675_v1 = vadd.f32 0.001143296, %v2674_v49 }
 0x136   :  { %2308 = vmatpush.bf16.msra.mxu0 %v3467_v14  ;;  %v2086_v38 = vpop.f32.mrf.mxu0 }
 0x137   :  { %2322 = vmatpush.bf16.msra.mxu1 %v3659_v16  ;;  %v2100_v40 = vpop.f32.mrf.mxu1  ;;  %v2087_v56 = vadd.f32 %v2086_v38, %v4834_v61  ;;  %v2676_v8 = vmul.f32 %v2675_v1, %v4873_v45 }
 0x138   :  { %2336 = vmatpush.bf16.msra.mxu2 %v3851_v17 }
 0x139   :  { %2350 = vmatpush.bf16.msra.mxu3 %v4043_v18  ;;  %2309 = vmatmul.bf16.vlgmr.msra.gmra.mxu0 %v4767_v22  ;;  %v4852_v22 = vmin.f32 %v2621_v27, 16.0  ;;  %v4882_v57 = vadd.f32 %v2100_v40, %v2087_v56  ;;  %v2387_v18 = vmul.f32 %v2386_v5, %v4850_v48  ;;  %v2677_v27 = vadd.f32 0.014752088, %v2676_v8 }
 0x13a   :  { %2323 = vmatmul.bf16.vlgmr.msra.gmra.mxu1 %v4769_v23  ;;  %v4855_v23 = vmul.f32 0.70710677, %v4821_v53 }
 0x13b   :  { %2337 = vmatmul.bf16.vlgmr.msra.gmra.mxu2 %v4773_v35  ;;  %v2394_v35 = vmul.f32 3.8918573e-05, %v4850_v48  ;;  %v2623_v3 = vmul.f32 2.1237322e-06, %v4852_v22  ;;  %v4891_v9 = vmul.f32 0.70710677, %v4882_v57  ;;  %v2678_v38 = vmul.f32 %v2677_v27, %v4873_v45 }
 0x13c   :  { %2351 = vmatmul.bf16.vlgmr.msra.gmra.mxu3 %v4775_v39  ;;  %v2634_v39 = vmul.f32 3.8918573e-05, %v4852_v22  ;;  %v2421_v28 = vmul.f32 %v4855_v23, %v4855_v23 }
 0x13d   :  { %v2395_v13 = vadd.f32 0.001143296, %v2394_v35  ;;  %v2624_v6 = vadd.f32 0.00028619796, %v2623_v3 }
 0x13e   :  { %v2635_v29 = vadd.f32 0.001143296, %v2634_v39  ;;  %v4861_v30 = vmin.f32 %v2421_v28, 16.0  ;;  %v2114_v52 = vpop.f32.mrf.mxu2  ;;  %v2088_v24 = vpop.f32.mrf.mxu0  ;;  %v2461_v28 = vmul.f32 %v4891_v9, %v4891_v9 }
 0x13f   :  { %v2396_v31 = vmul.f32 %v2395_v13, %v4850_v48  ;;  %v2128_v62 = vpop.f32.mrf.mxu3  ;;  %v2102_v2 = vpop.f32.mrf.mxu1  ;;  %v2089_v11 = vadd.f32 %v2088_v24, %v2075_v19  ;;  %v2115_v14 = vadd.f32 %v2114_v52, %v404_v60  ;;  %v2625_v39 = vmul.f32 %v2624_v6, %v4852_v22 }
 0x140   :  { %v2636_v33 = vmul.f32 %v2635_v29, %v4852_v22  ;;  %v2434_v34 = vmul.f32 3.8918573e-05, %v4861_v30 }
 0x141   :  { %v2397_v36 = vadd.f32 0.014752088, %v2396_v31  ;;  %v4898_v29 = vadd.f32 %v2102_v2, %v2089_v11  ;;  %v2129_v31 = vadd.f32 %v2128_v62, %v2115_v14  ;;  %v2626_v40 = vadd.f32 0.0036580483, %v2625_v39 }
 0x142   :  { %v2637_v41 = vadd.f32 0.014752088, %v2636_v33  ;;  %v2435_v42 = vadd.f32 0.001143296, %v2434_v34  ;;  %v2423_v33 = vmul.f32 2.1237322e-06, %v4861_v30 }
 0x143   :  { %v2398_v44 = vmul.f32 %v2397_v36, %v4850_v48  ;;  %v2388_v36 = vadd.f32 0.05243302, %v2387_v18  ;;  %v2627_v49 = vmul.f32 %v2626_v40, %v4852_v22 }
 0x144   :  { %v2638_v47 = vmul.f32 %v2637_v41, %v4852_v22  ;;  %v2436_v50 = vmul.f32 %v2435_v42, %v4861_v30  ;;  %v4906_v41 = vmin.f32 %v2461_v28, 16.0  ;;  %v4909_v42 = vmul.f32 0.70710677, %v4898_v29 }
 0x145   :  { %v2399_v54 = vadd.f32 0.112945676, %v2398_v44  ;;  %v2389_v55 = vmul.f32 %v2388_v36, %v4850_v48  ;;  %v2628_v5 = vadd.f32 0.05243302, %v2627_v49  ;;  %v4948_v49 = vmul.f32 0.5, %v4805_v12 }
 0x146   :  { %v2639_v58 = vadd.f32 0.112945676, %v2638_v47  ;;  %v2437_v59 = vadd.f32 0.014752088, %v2436_v50  ;;  %v2116_v10 = vpop.f32.mrf.mxu2  ;;  %v2424_v47 = vadd.f32 0.00028619796, %v2423_v33  ;;  %v2701_v24 = vmul.f32 %v4909_v42, %v4909_v42 }
 0x147   :  { %v2400_v0 = vmul.f32 %v2399_v54, %v4850_v48  ;;  %v2130_v13 = vpop.f32.mrf.mxu3  ;;  %v2679_v54 = vadd.f32 0.112945676, %v2678_v38  ;;  %v2474_v56 = vmul.f32 3.8918573e-05, %v4906_v41  ;;  %v2390_v3 = vadd.f32 0.18741608, %v2389_v55 }
 0x148   :  { %v2640_v61 = vmul.f32 %v2639_v58, %v4852_v22  ;;  %v2438_v4 = vmul.f32 %v2437_v59, %v4861_v30  ;;  %v2117_v58 = vadd.f32 %v2116_v10, %v404_v60  ;;  %v4926_v6 = vmin.f32 %v2701_v24, 16.0 }
 0x149   :  { %v2401_v7 = vadd.f32 0.4994258, %v2400_v0  ;;  %v2425_v0 = vmul.f32 %v2424_v47, %v4861_v30  ;;  %v2475_v60 = vadd.f32 0.001143296, %v2474_v56  ;;  %v2629_v27 = vmul.f32 %v2628_v5, %v4852_v22 }
 0x14a   :  { %v2641_v15 = vadd.f32 0.4994258, %v2640_v61  ;;  %v2439_v16 = vadd.f32 0.112945676, %v2438_v4  ;;  %v2663_v61 = vmul.f32 2.1237322e-06, %v4873_v45  ;;  %v2680_v4 = vmul.f32 %v2679_v54, %v4873_v45 }
 0x14b   :  { %v2402_v26 = vmul.f32 %v2401_v7, %v4850_v48  ;;  %v2131_v7 = vadd.f32 %v2130_v13, %v2117_v58  ;;  %v2426_v11 = vadd.f32 0.0036580483, %v2425_v0 }
 0x14c   :  { %v2642_v19 = vmul.f32 %v2641_v15, %v4852_v22  ;;  %v2440_v34 = vmul.f32 %v2439_v16, %v4861_v30  ;;  %v2391_v15 = vmul.f32 %v2390_v3, %v4850_v48  ;;  %v2664_v16 = vadd.f32 0.00028619796, %v2663_v61 }
 0x14d   :  { %v4903_v37 = vadd.f32 1.0, %v2402_v26  ;;  %v405_v48 = vperm.slane %v4884_v46, 4 }
 0x14e   :  { %v4911_v44 = vadd.f32 1.0, %v2642_v19  ;;  %v2441_v50 = vadd.f32 0.4994258, %v2440_v34  ;;  %v2427_v34 = vmul.f32 %v2426_v11, %v4861_v30  ;;  %v2392_v36 = vadd.f32 1.1283791, %v2391_v15 }
 0x14f   :  { %4522 = vrcp.f32 %v4903_v37  ;;  %v2665_v40 = vmul.f32 %v2664_v16, %v4873_v45  ;;  %v2413_v24 = vand.u32 2147483647, %v4903_v37  ;;  %vm2409_vm0 = vweird.f32 %v4903_v37 }
 0x150   :  { %4524 = vrcp.f32 %v4911_v44  ;;  %v2442_v1 = vmul.f32 %v2441_v50, %v4861_v30  ;;  %v2630_v50 = vadd.f32 0.18741608, %v2629_v27  ;;  %v2428_v0 = vadd.f32 0.05243302, %v2427_v34 }
 0x151   :  { %vm4973_vm2 = vcmp.eq.f32.partialorder %v2413_v24, 8.507059e+37  ;;  %vm2649_vm3 = vweird.f32 %v4911_v44 }
 0x152   :  { %v4928_v14 = vadd.f32 1.0, %v2442_v1 }
 0x154   :  { %4526 = vrcp.f32 %v4928_v14  ;;  %vm2449_vm9 = vweird.f32 %v4928_v14 }
 0x155   :  { %v4924_v8 = vpop.eup %4522 }
 0x156   :  { %v2142_v17 = vpop.f32.mrf.mxu0  ;;  %v4931_v18 = vpop.eup %4524  ;;  %v2405_v26 = vmul.f32 %v4924_v8, %v4903_v37  ;;  %vm2410_vm1 = vweird.f32 %v4924_v8 }
 0x157   :  { %v2156_v35 = vpop.f32.mrf.mxu1  ;;  %v2143_v43 = vadd.f32 %v2142_v17, %v2129_v31  ;;  %v2681_v17 = vadd.f32 0.4994258, %v2680_v4  ;;  %v2714_v31 = vmul.f32 3.8918573e-05, %v4926_v6  ;;  %v2645_v38 = vmul.f32 %v4931_v18, %v4911_v44  ;;  %vm4998_vm4 = vmor %vm2409_vm0, %vm2410_vm1 }
 0x158   :  { %v2406_v47 = vsub.f32 1.0, %v2405_v26  ;;  %v4963_v4 = vmul.f32 %v2392_v36, %v4841_v20  ;;  %vm2650_vm5 = vweird.f32 %v4931_v18 }
 0x159   :  { %v2157_v62 = vadd.f32 %v2156_v35, %v2143_v43  ;;  %v2476_v35 = vmul.f32 %v2475_v60, %v4906_v41  ;;  %v2682_v43 = vmul.f32 %v2681_v17, %v4873_v45  ;;  %v2715_v56 = vadd.f32 0.001143296, %v2714_v31  ;;  %vm5016_vm6 = vmor %vm2649_vm3, %vm2650_vm5 }
 0x15a   :  { %v2646_v3 = vsub.f32 1.0, %v2645_v38  ;;  %v4960_v12 = vpop.eup %4526  ;;  %v2407_v5 = vmul.f32 %v4924_v8, %v2406_v47  ;;  %v2631_v60 = vmul.f32 %v2630_v50, %v4852_v22  ;;  %v2429_v22 = vmul.f32 %v2428_v0, %v4861_v30 }
 0x15b   :  { %v4958_v61 = vadd.f32 1.0, %v2682_v43  ;;  %v2653_v50 = vand.u32 2147483647, %v4911_v44  ;;  %vm2450_vm8 = vweird.f32 %v4960_v12 }
 0x15c   :  { %v2647_v27 = vmul.f32 %v4931_v18, %v2646_v3  ;;  %v2632_v31 = vadd.f32 1.1283791, %v2631_v60  ;;  %vm5056_vm10 = vmor %vm2449_vm9, %vm2450_vm8 }
 0x15d   :  { %4528 = vrcp.f32 %v4958_v61  ;;  %vm5020_vm7 = vcmp.eq.f32.partialorder %v2653_v50, 8.507059e+37  ;;  %vm2689_vm13 = vweird.f32 %v4958_v61 }
 0x15e   :  { %v2170_v52 = vpop.f32.mrf.mxu2  ;;  %v2144_v59 = vpop.f32.mrf.mxu0 }
 0x15f   :  { %v2158_v63 = vpop.f32.mrf.mxu1  ;;  %v2184_v2 = vpop.f32.mrf.mxu3  ;;  %v2171_v10 = vadd.f32 %v2170_v52, %v2157_v62  ;;  %v2145_v39 = vadd.f32 %v2144_v59, %v2131_v7  ;;  %v2477_v52 = vadd.f32 0.014752088, %v2476_v35  ;;  %v2415_v62 = vand.u32 2147483648, %v4903_v37 }
 0x160   :  { %v2445_v35 = vmul.f32 %v4960_v12, %v4928_v14 }
 0x161   :  { %v4938_v19 = vadd.f32 %v2184_v2, %v2171_v10  ;;  %v2159_v55 = vadd.f32 %v2158_v63, %v2145_v39  ;;  %v4956_v2 = vmul.f32 0.5, %v4811_v51  ;;  %v2666_v63 = vadd.f32 0.0036580483, %v2665_v40 }
 0x162   :  { %v2478_v7 = vmul.f32 %v2477_v52, %v4906_v41  ;;  %v2716_v51 = vmul.f32 %v2715_v56, %v4926_v6  ;;  %v2416_v16 = vor.u32 1.1754944e-38, %v2415_v62  ;;  %v2430_v52 = vadd.f32 0.18741608, %v2429_v22 }
 0x163   :  { %v4951_v58 = vmul.f32 0.70710677, %v4938_v19  ;;  %v2667_v39 = vmul.f32 %v2666_v63, %v4873_v45  ;;  %v2648_v56 = vadd.f32 %v4931_v18, %v2647_v27  ;;  %v2655_v62 = vand.u32 2147483648, %v4911_v44  ;;  %v5009_v37 = vpop.eup %4528 }
 0x164   :  { %v2479_v34 = vadd.f32 0.112945676, %v2478_v7  ;;  %v2717_v38 = vadd.f32 0.014752088, %v2716_v51  ;;  %v2633_v7 = vmul.f32 %v2632_v31, %v4844_v25  ;;  %v2431_v51 = vmul.f32 %v2430_v52, %v4861_v30 }
 0x165   :  { %v2501_v11 = vmul.f32 %v4951_v58, %v4951_v58  ;;  %v2652_v25 = vsel %vm5016_vm6, %v4931_v18, %v2648_v56  ;;  %v2656_v27 = vor.u32 1.1754944e-38, %v2655_v62  ;;  %vm2690_vm12 = vweird.f32 %v5009_v37 }
 0x166   :  { %v2172_v28 = vpop.f32.mrf.mxu2  ;;  %v2718_v3 = vmul.f32 %v2717_v38, %v4926_v6  ;;  %vm5099_vm14 = vmor %vm2689_vm13, %vm2690_vm12 }
 0x167   :  { %v2186_v54 = vpop.f32.mrf.mxu3  ;;  %v2173_v1 = vadd.f32 %v2172_v28, %v2159_v55  ;;  %v4987_v40 = vmin.f32 %v2501_v11, 16.0  ;;  %v2657_v18 = vsel %vm5020_vm7, %v2656_v27, %v2652_v25 }
 0x169   :  { %v4978_v17 = vadd.f32 %v2186_v54, %v2173_v1  ;;  %v2480_v1 = vmul.f32 %v2479_v34, %v4906_v41  ;;  %v2514_v63 = vmul.f32 3.8918573e-05, %v4987_v40 }
 0x16b   :  { %v4992_v55 = vmul.f32 0.70710677, %v4978_v17  ;;  %v2515_v31 = vadd.f32 0.001143296, %v2514_v63  ;;  %v2455_v63 = vand.u32 2147483648, %v4928_v14 }
 0x16d   :  { %v2741_v11 = vmul.f32 %v4992_v55, %v4992_v55 }
 0x16f   :  { %v5042_v38 = vmin.f32 %v2741_v11, 16.0 }
 0x176   :  { %v2198_v13 = vpop.f32.mrf.mxu0 }
 0x177   :  { %v2212_v33 = vpop.f32.mrf.mxu1  ;;  %v2199_v59 = vadd.f32 %v2198_v13, %v405_v48  ;;  %v2408_v13 = vadd.f32 %v4924_v8, %v2407_v5 }
 0x179   :  { %v2213_v15 = vadd.f32 %v2212_v33, %v2199_v59  ;;  %v2463_v33 = vmul.f32 2.1237322e-06, %v4906_v41  ;;  %v2668_v59 = vadd.f32 0.05243302, %v2667_v39  ;;  %v2412_v24 = vsel %vm4998_vm4, %v4924_v8, %v2408_v13 }
 0x17a   :  { %v2417_v22 = vsel %vm4973_vm2, %v2416_v16, %v2412_v24  ;;  %v2481_v39 = vadd.f32 0.4994258, %v2480_v1  ;;  %v2719_v13 = vadd.f32 0.112945676, %v2718_v3  ;;  %v2453_v3 = vand.u32 2147483647, %v4928_v14 }
 0x17b   :  { %v2464_v0 = vadd.f32 0.00028619796, %v2463_v33  ;;  %v5038_v34 = vmul.f32 %v2417_v22, %v4963_v4  ;;  %v2703_v14 = vmul.f32 2.1237322e-06, %v4926_v6 }
 0x17c   :  { %v2482_v4 = vmul.f32 %v2481_v39, %v4906_v41  ;;  %vm2454_vm11 = vcmp.eq.f32.partialorder %v2453_v3, 8.507059e+37 }
 0x17d   :  { %v2465_v30 = vmul.f32 %v2464_v0, %v4906_v41  ;;  %v4212_v0 = vclamps-f32 %v5038_v34, 1.0 }
 0x17e   :  { %v2226_v10 = vpop.f32.mrf.mxu2  ;;  %v2200_v26 = vpop.f32.mrf.mxu0  ;;  %v5073_v22 = vadd.f32 1.0, %v2482_v4  ;;  %v2693_v4 = vand.u32 2147483647, %v4958_v61 }
 0x17f   :  { %v2214_v28 = vpop.f32.mrf.mxu1  ;;  %v2240_v36 = vpop.f32.mrf.mxu3  ;;  %v2201_v43 = vadd.f32 %v2200_v26, %v405_v48  ;;  %v2227_v47 = vadd.f32 %v2226_v10, %v2213_v15  ;;  %v2446_v48 = vsub.f32 1.0, %v2445_v35  ;;  %v2669_v26 = vmul.f32 %v2668_v59, %v4873_v45 }
 0x180   :  { %v2685_v35 = vmul.f32 %v5009_v37, %v4958_v61  ;;  %v2466_v56 = vadd.f32 0.0036580483, %v2465_v30  ;;  %v2516_v59 = vmul.f32 %v2515_v31, %v4987_v40  ;;  %4530 = vrcp.f32 %v5073_v22 }
 0x181   :  { %v2215_v5 = vadd.f32 %v2214_v28, %v2201_v43  ;;  %v2241_v60 = vadd.f32 %v2240_v36, %v2227_v47  ;;  %v2447_v44 = vmul.f32 %v4960_v12, %v2446_v48  ;;  %v2432_v36 = vadd.f32 1.1283791, %v2431_v51 }
 0x182   :  { %v2670_v50 = vadd.f32 0.18741608, %v2669_v26  ;;  %v2686_v54 = vsub.f32 1.0, %v2685_v35  ;;  %v2720_v48 = vmul.f32 %v2719_v13, %v4926_v6  ;;  %v2456_v35 = vor.u32 1.1754944e-38, %v2455_v63 }
 0x183   :  { %v2448_v47 = vadd.f32 %v4960_v12, %v2447_v44  ;;  %v2517_v44 = vadd.f32 0.014752088, %v2516_v59  ;;  %vm2694_vm15 = vcmp.eq.f32.partialorder %v2693_v4, 8.507059e+37  ;;  %vm2489_vm1 = vweird.f32 %v5073_v22 }
 0x184   :  { %v2671_v8 = vmul.f32 %v2670_v50, %v4873_v45  ;;  %v2687_v11 = vmul.f32 %v5009_v37, %v2686_v54  ;;  %v2433_v45 = vmul.f32 %v2432_v36, %v4855_v23 }
 0x185   :  { %v2452_v10 = vsel %vm5056_vm10, %v4960_v12, %v2448_v47  ;;  %v2518_v23 = vmul.f32 %v2517_v44, %v4987_v40  ;;  %v2503_v47 = vmul.f32 2.1237322e-06, %v4987_v40 }
 0x186   :  { %v2228_v15 = vpop.f32.mrf.mxu2  ;;  %v2672_v39 = vadd.f32 1.1283791, %v2671_v8  ;;  %v2457_v31 = vsel %vm2454_vm11, %v2456_v35, %v2452_v10  ;;  %v5112_v8 = vpop.eup %4530 }
 0x187   :  { %v2229_v33 = vadd.f32 %v2228_v15, %v2215_v5  ;;  %v2242_v43 = vpop.f32.mrf.mxu3  ;;  %v2754_v5 = vmul.f32 3.8918573e-05, %v5042_v38  ;;  %v2467_v15 = vmul.f32 %v2466_v56, %v4906_v41  ;;  %v2458_v56 = vmul.f32 %v2457_v31, %v2433_v45 }
 0x188   :  { %v2673_v44 = vmul.f32 %v2672_v39, %v4865_v32  ;;  %v2358_v32 = vmul.f32 0.5, %v4821_v53  ;;  %v5133_v53 = vmul.f32 0.5, %v4823_v21  ;;  %vm2490_vm0 = vweird.f32 %v5112_v8 }
 0x189   :  { %v2243_v62 = vadd.f32 %v2242_v43, %v2229_v33  ;;  %v2755_v30 = vadd.f32 0.001143296, %v2754_v5  ;;  %v2688_v33 = vadd.f32 %v5009_v37, %v2687_v11  ;;  %v2695_v43 = vand.u32 2147483648, %v4958_v61  ;;  %vm5173_vm2 = vmor %vm2489_vm1, %vm2490_vm0 }
 0x18a   :  { %v2504_v11 = vadd.f32 0.00028619796, %v2503_v47 }
 0x18b   :  { %v2756_v50 = vmul.f32 %v2755_v30, %v5042_v38  ;;  %v2692_v61 = vsel %vm5099_vm14, %v5009_v37, %v2688_v33 }
 0x18c   :  { %v2505_v39 = vmul.f32 %v2504_v11, %v4987_v40 }
 0x196   :  { %v2254_v28 = vpop.f32.mrf.mxu0 }
 0x197   :  { %v2255_v20 = vadd.f32 %v2254_v28, %v2241_v60  ;;  %v2268_v16 = vpop.f32.mrf.mxu1  ;;  %v5063_v60 = vmul.f32 %v2657_v18, %v2633_v7  ;;  %v2721_v7 = vadd.f32 0.4994258, %v2720_v48 }
 0x199   :  { %v5046_v52 = vadd.f32 %v2268_v16, %v2255_v20  ;;  %v2468_v20 = vadd.f32 0.05243302, %v2467_v15  ;;  %v2704_v16 = vadd.f32 0.00028619796, %v2703_v14  ;;  %v2722_v18 = vmul.f32 %v2721_v7, %v4926_v6 }
 0x19a   :  { %v4218_v59 = vclamps-f32 %v5063_v60, 1.0  ;;  %v2519_v60 = vadd.f32 0.112945676, %v2518_v23  ;;  %v2757_v15 = vadd.f32 0.014752088, %v2756_v50  ;;  %v4213_v7 = vclamps-f32 %v2458_v56, 1.0 }
 0x19b   :  { %v5053_v24 = vmul.f32 0.70710677, %v5046_v52  ;;  %v2469_v1 = vmul.f32 %v2468_v20, %v4906_v41  ;;  %v2705_v3 = vmul.f32 %v2704_v16, %v4926_v6  ;;  %v5110_v5 = vadd.f32 1.0, %v2722_v18 }
 0x19c   :  { %v2520_v31 = vmul.f32 %v2519_v60, %v4987_v40  ;;  %v406_v20 = vperm.slane %v4884_v46, 5  ;;  %v2758_v16 = vmul.f32 %v2757_v15, %v5042_v38  ;;  %v2861_v18 = vadd.f32 1.0, %v4212_v0 }
 0x19d   :  { %v2541_v51 = vmul.f32 %v5053_v24, %v5053_v24  ;;  %v2470_v45 = vadd.f32 0.18741608, %v2469_v1  ;;  %v2706_v35 = vadd.f32 0.0036580483, %v2705_v3  ;;  %4532 = vrcp.f32 %v5110_v5 }
 0x19e   :  { %v2256_v25 = vpop.f32.mrf.mxu0  ;;  %v2867_v23 = vadd.f32 1.0, %v4218_v59  ;;  %v2862_v47 = vadd.f32 1.0, %v4213_v7  ;;  %v2506_v1 = vadd.f32 0.0036580483, %v2505_v39  ;;  %v2759_v3 = vadd.f32 0.112945676, %v2758_v16 }
 0x19f   :  { %v5076_v26 = vmin.f32 %v2541_v51, 16.0  ;;  %v2257_v27 = vadd.f32 %v2256_v25, %v2243_v62  ;;  %v2270_v12 = vpop.f32.mrf.mxu1  ;;  %v2696_v51 = vor.u32 1.1754944e-38, %v2695_v43  ;;  %v2282_v25 = vpop.f32.mrf.mxu2  ;;  %v2471_v50 = vmul.f32 %v2470_v45, %v4906_v41 }
 0x1a0   :  { %v2707_v56 = vmul.f32 %v2706_v35, %v4926_v6  ;;  %v2283_v62 = vadd.f32 %v2282_v25, %v406_v20  ;;  %v5138_v59 = vmul.f32 %v2861_v18, %v4948_v49  ;;  %v5141_v41 = vmul.f32 %v2867_v23, %v4956_v2 }
 0x1a1   :  { %v2554_v28 = vmul.f32 3.8918573e-05, %v5076_v26  ;;  %v5081_v13 = vadd.f32 %v2270_v12, %v2257_v27  ;;  %v2296_v12 = vpop.f32.mrf.mxu3  ;;  %v2697_v37 = vsel %vm2694_vm15, %v2696_v51, %v2692_v61  ;;  %v5144_v60 = vmul.f32 %v2862_v47, %v2358_v32 }
 0x1a2   :  { %v2472_v21 = vadd.f32 1.1283791, %v2471_v50  ;;  %v5148_v15 = vmul.f32 0.5, %v4882_v57  ;;  %v2743_v49 = vmul.f32 2.1237322e-06, %v5042_v38  ;;  %v2297_v7 = vadd.f32 %v2296_v12, %v2283_v62 }
 0x1a3   :  { %v2555_v36 = vadd.f32 0.001143296, %v2554_v28  ;;  %v5091_v54 = vmul.f32 0.70710677, %v5081_v13  ;;  %v2485_v28 = vmul.f32 %v5112_v8, %v5073_v22  ;;  %v5135_v0 = vpop.eup %4532  ;;  %v2507_v45 = vmul.f32 %v2506_v1, %v4987_v40 }
 0x1a4   :  { %v2760_v35 = vmul.f32 %v2759_v3, %v5042_v38  ;;  %v2543_v57 = vmul.f32 2.1237322e-06, %v5076_v26  ;;  %v2473_v32 = vmul.f32 %v2472_v21, %v4891_v9  ;;  %v2495_v12 = vand.u32 2147483648, %v5073_v22 }
 0x1a5   :  { %v2556_v48 = vmul.f32 %v2555_v36, %v5076_v26  ;;  %v2781_v63 = vmul.f32 %v5091_v54, %v5091_v54  ;;  %v2698_v36 = vmul.f32 %v2697_v37, %v2673_v44  ;;  %v2486_v4 = vsub.f32 1.0, %v2485_v28 }
 0x1a6   :  { %v2725_v37 = vmul.f32 %v5135_v0, %v5110_v5  ;;  %v2744_v23 = vadd.f32 0.00028619796, %v2743_v49  ;;  %v2508_v50 = vadd.f32 0.05243302, %v2507_v45  ;;  %v2544_v9 = vadd.f32 0.00028619796, %v2543_v57 }
 0x1a7   :  { %v2557_v10 = vadd.f32 0.014752088, %v2556_v48  ;;  %v5114_v14 = vmin.f32 %v2781_v63, 16.0  ;;  %v2521_v48 = vadd.f32 0.4994258, %v2520_v31  ;;  %v4219_v63 = vclamps-f32 %v2698_v36, 1.0  ;;  %v2284_v11 = vpop.f32.mrf.mxu2 }
 0x1a8   :  { %v2285_v36 = vadd.f32 %v2284_v11, %v406_v20  ;;  %v2726_v47 = vsub.f32 1.0, %v2725_v37  ;;  %v2496_v62 = vor.u32 1.1754944e-38, %v2495_v12  ;;  %v2733_v45 = vand.u32 2147483647, %v5110_v5 }
 0x1a9   :  { %v2558_v27 = vmul.f32 %v2557_v10, %v5076_v26  ;;  %v2794_v30 = vmul.f32 3.8918573e-05, %v5114_v14  ;;  %v2708_v10 = vadd.f32 0.05243302, %v2707_v56  ;;  %v2522_v25 = vmul.f32 %v2521_v48, %v4987_v40  ;;  %v2298_v2 = vpop.f32.mrf.mxu3 }
 0x1aa   :  { %v2761_v56 = vadd.f32 0.4994258, %v2760_v35  ;;  %v2493_v48 = vand.u32 2147483647, %v5073_v22  ;;  %v2727_v11 = vmul.f32 %v5135_v0, %v2726_v47  ;;  %vm2730_vm4 = vweird.f32 %v5135_v0 }
 0x1ab   :  { %v2795_v33 = vadd.f32 0.001143296, %v2794_v30  ;;  %v2559_v43 = vadd.f32 0.112945676, %v2558_v27  ;;  %v2487_v27 = vmul.f32 %v5112_v8, %v2486_v4  ;;  %v5157_v30 = vadd.f32 1.0, %v4219_v63 }
 0x1ac   :  { %v2709_v39 = vmul.f32 %v2708_v10, %v4926_v6  ;;  %v5164_v18 = vadd.f32 1.0, %v2522_v25  ;;  %v2745_v63 = vmul.f32 %v2744_v23, %v5042_v38  ;;  %v2509_v25 = vmul.f32 %v2508_v50, %v4987_v40 }
 0x1ad   :  { %v2796_v46 = vmul.f32 %v2795_v33, %v5114_v14  ;;  %v2560_v61 = vmul.f32 %v2559_v43, %v5076_v26  ;;  %v2488_v43 = vadd.f32 %v5112_v8, %v2487_v27  ;;  %v2762_v49 = vmul.f32 %v2761_v56, %v5042_v38 }
 0x1ae   :  { %v2710_v1 = vadd.f32 0.18741608, %v2709_v39  ;;  %4534 = vrcp.f32 %v5164_v18  ;;  %vm2494_vm3 = vcmp.eq.f32.partialorder %v2493_v48, 8.507059e+37  ;;  %v2746_v57 = vadd.f32 0.0036580483, %v2745_v63 }
 0x1af   :  { %v2797_v34 = vadd.f32 0.014752088, %v2796_v46  ;;  %v2561_v28 = vadd.f32 0.4994258, %v2560_v61  ;;  %v2299_v61 = vadd.f32 %v2298_v2, %v2285_v36  ;;  %v2492_v22 = vsel %vm5173_vm2, %v5112_v8, %v2488_v43 }
 0x1b0   :  { %v2711_v37 = vmul.f32 %v2710_v1, %v4926_v6  ;;  %v2497_v8 = vsel %vm2494_vm3, %v2496_v62, %v2492_v22  ;;  %v2728_v12 = vadd.f32 %v5135_v0, %v2727_v11  ;;  %v2510_v39 = vadd.f32 0.18741608, %v2509_v25 }
 0x1b1   :  { %v2798_v51 = vmul.f32 %v2797_v34, %v5114_v14  ;;  %v2562_v46 = vmul.f32 %v2561_v28, %v5076_v26  ;;  %v2783_v28 = vmul.f32 2.1237322e-06, %v5114_v14  ;;  %v2498_v47 = vmul.f32 %v2497_v8, %v2473_v32 }
 0x1b2   :  { %vm2729_vm5 = vweird.f32 %v5110_v5  ;;  %v2735_v50 = vand.u32 2147483648, %v5110_v5  ;;  %v2712_v1 = vadd.f32 1.1283791, %v2711_v37  ;;  %vm5217_vm7 = vcmp.eq.f32.partialorder %v2733_v45, 8.507059e+37 }
 0x1b3   :  { %v2799_v16 = vadd.f32 0.112945676, %v2798_v51  ;;  %vm5213_vm6 = vmor %vm2729_vm5, %vm2730_vm4  ;;  %v2511_v20 = vmul.f32 %v2510_v39, %v4987_v40  ;;  %vm2529_vm8 = vweird.f32 %v5164_v18 }
 0x1b4   :  { %v5200_v23 = vpop.eup %4534  ;;  %v2713_v8 = vmul.f32 %v2712_v1, %v4909_v42  ;;  %v5258_v42 = vmul.f32 0.5, %v4938_v19 }
 0x1b5   :  { %v2800_v3 = vmul.f32 %v2799_v16, %v5114_v14  ;;  %v5198_v16 = vadd.f32 1.0, %v2762_v49  ;;  %v2525_v5 = vmul.f32 %v5200_v23, %v5164_v18  ;;  %v4214_v49 = vclamps-f32 %v2498_v47, 1.0 }
 0x1b6   :  { %v2310_v44 = vpop.f32.mrf.mxu0  ;;  %vm2530_vm9 = vweird.f32 %v5200_v23 }
 0x1b7   :  { %v2311_v31 = vadd.f32 %v2310_v44, %v2297_v7  ;;  %v2324_v33 = vpop.f32.mrf.mxu1  ;;  %v2545_v7 = vmul.f32 %v2544_v9, %v5076_v26  ;;  %v5186_v44 = vadd.f32 1.0, %v2562_v46  ;;  %v2801_v35 = vadd.f32 0.4994258, %v2800_v3  ;;  %vm5287_vm10 = vmor %vm2529_vm8, %vm2530_vm9 }
 0x1b8   :  { %v2747_v46 = vmul.f32 %v2746_v57, %v5042_v38  ;;  %v2526_v37 = vsub.f32 1.0, %v2525_v5  ;;  %v2512_v57 = vadd.f32 1.1283791, %v2511_v20  ;;  %v2533_v20 = vand.u32 2147483647, %v5164_v18 }
 0x1b9   :  { %v2325_v4 = vadd.f32 %v2324_v33, %v2311_v31  ;;  %v2546_v6 = vadd.f32 0.0036580483, %v2545_v7  ;;  %4536 = vrcp.f32 %v5186_v44  ;;  %v2802_v56 = vmul.f32 %v2801_v35, %v5114_v14 }
 0x1ba   :  { %4538 = vrcp.f32 %v5198_v16  ;;  %v2748_v7 = vadd.f32 0.05243302, %v2747_v46  ;;  %vm5291_vm11 = vcmp.eq.f32.partialorder %v2533_v20, 8.507059e+37  ;;  %v2575_v20 = vand.u32 2147483648, %v5186_v44 }
 0x1bb   :  { %v2547_v63 = vmul.f32 %v2546_v6, %v5076_v26  ;;  %vm2569_vm14 = vweird.f32 %v5186_v44  ;;  %vm2769_vm0 = vweird.f32 %v5198_v16 }
 0x1be   :  { %v2338_v34 = vpop.f32.mrf.mxu2  ;;  %v2312_v51 = vpop.f32.mrf.mxu0 }
 0x1bf   :  { %v2339_v21 = vadd.f32 %v2338_v34, %v2325_v4  ;;  %v2352_v10 = vpop.f32.mrf.mxu3  ;;  %v2313_v2 = vadd.f32 %v2312_v51, %v2299_v61  ;;  %v2326_v33 = vpop.f32.mrf.mxu1  ;;  %v2784_v4 = vadd.f32 0.00028619796, %v2783_v28  ;;  %v2732_v34 = vsel %vm5213_vm6, %v5135_v0, %v2728_v12 }
 0x1c0   :  { %v5230_v51 = vadd.f32 1.0, %v2802_v56  ;;  %v5235_v25 = vpop.eup %4536  ;;  %v2548_v28 = vadd.f32 0.05243302, %v2547_v63  ;;  %v2527_v56 = vmul.f32 %v5200_v23, %v2526_v37  ;;  %v2535_v63 = vand.u32 2147483648, %v5164_v18 }
 0x1c1   :  { %v5188_v27 = vadd.f32 %v2352_v10, %v2339_v21  ;;  %v2327_v43 = vadd.f32 %v2326_v33, %v2313_v2  ;;  %v2736_v10 = vor.u32 1.1754944e-38, %v2735_v50  ;;  %v2785_v0 = vmul.f32 %v2784_v4, %v5114_v14  ;;  %v5245_v39 = vpop.eup %4538 }
 0x1c2   :  { %v2565_v33 = vmul.f32 %v5235_v25, %v5186_v44  ;;  %4540 = vrcp.f32 %v5230_v51  ;;  %v2765_v1 = vmul.f32 %v5245_v39, %v5198_v16  ;;  %v2549_v3 = vmul.f32 %v2548_v28, %v5076_v26 }
 0x1c3   :  { %v5194_v31 = vmul.f32 0.70710677, %v5188_v27  ;;  %v2737_v40 = vsel %vm5217_vm7, %v2736_v10, %v2732_v34  ;;  %v2786_v50 = vadd.f32 0.0036580483, %v2785_v0  ;;  %v2528_v10 = vadd.f32 %v5200_v23, %v2527_v56 }
 0x1c4   :  { %v5255_v47 = vmul.f32 %v2737_v40, %v2713_v8  ;;  %v2566_v19 = vsub.f32 1.0, %v2565_v33  ;;  %v2550_v0 = vadd.f32 0.18741608, %v2549_v3  ;;  %v2536_v56 = vor.u32 1.1754944e-38, %v2535_v63 }
 0x1c5   :  { %v2581_v36 = vmul.f32 %v5194_v31, %v5194_v31  ;;  %v2773_v18 = vand.u32 2147483647, %v5198_v16  ;;  %vm2570_vm12 = vweird.f32 %v5235_v25  ;;  %vm2770_vm13 = vweird.f32 %v5245_v39 }
 0x1c6   :  { %v2340_v9 = vpop.f32.mrf.mxu2  ;;  %vm5318_vm15 = vmor %vm2569_vm14, %vm2570_vm12  ;;  %vm2809_vm5 = vweird.f32 %v5230_v51 }
 0x1c7   :  { %v5209_v48 = vmin.f32 %v2581_v36, 16.0  ;;  %v2341_v62 = vadd.f32 %v2340_v9, %v2327_v43  ;;  %v2354_v21 = vpop.f32.mrf.mxu3  ;;  %v5253_v43 = vadd.f32 1.0, %v4214_v49  ;;  %v2749_v9 = vmul.f32 %v2748_v7, %v5042_v38  ;;  %vm5335_vm2 = vmor %vm2769_vm0, %vm2770_vm13 }
 0x1c8   :  { %v2766_v7 = vsub.f32 1.0, %v2765_v1  ;;  %v2551_v1 = vmul.f32 %v2550_v0, %v5076_v26  ;;  %v2573_v26 = vand.u32 2147483647, %v5186_v44  ;;  %vm5339_vm3 = vcmp.eq.f32.partialorder %v2773_v18, 8.507059e+37 }
 0x1c9   :  { %v2583_v61 = vmul.f32 2.1237322e-06, %v5209_v48  ;;  %v5232_v22 = vadd.f32 %v2354_v21, %v2341_v62  ;;  %v2594_v11 = vmul.f32 3.8918573e-05, %v5209_v48  ;;  %v5265_v62 = vmul.f32 %v2512_v57, %v4951_v58  ;;  %v5277_v21 = vpop.eup %4540 }
 0x1ca   :  { %v2787_v58 = vmul.f32 %v2786_v50, %v5114_v14  ;;  %v2750_v37 = vadd.f32 0.18741608, %v2749_v9  ;;  %v2532_v50 = vsel %vm5287_vm10, %v5200_v23, %v2528_v10  ;;  %vm2574_vm1 = vcmp.eq.f32.partialorder %v2573_v26, 8.507059e+37 }
 0x1cb   :  { %v2584_v2 = vadd.f32 0.00028619796, %v2583_v61  ;;  %v5241_v45 = vmul.f32 0.70710677, %v5232_v22  ;;  %v2595_v35 = vadd.f32 0.001143296, %v2594_v11  ;;  %v2537_v10 = vsel %vm5291_vm11, %v2536_v56, %v2532_v50 }
 0x1cc   :  { %v2788_v33 = vadd.f32 0.05243302, %v2787_v58  ;;  %vm2810_vm4 = vweird.f32 %v5277_v21 }
 0x1cd   :  { %v2585_v12 = vmul.f32 %v2584_v2, %v5209_v48  ;;  %v2821_v6 = vmul.f32 %v5241_v45, %v5241_v45  ;;  %v2596_v36 = vmul.f32 %v2595_v35, %v5209_v48  ;;  %v2567_v35 = vmul.f32 %v5235_v25, %v2566_v19  ;;  %vm5361_vm6 = vmor %vm2809_vm5, %vm2810_vm4 }
 0x1ce   :  { %v2789_v23 = vmul.f32 %v2788_v33, %v5114_v14  ;;  %v2775_v33 = vand.u32 2147483648, %v5198_v16 }
 0x1cf   :  { %v5262_v46 = vmin.f32 %v2821_v6, 16.0  ;;  %v2597_v4 = vadd.f32 0.014752088, %v2596_v36  ;;  %v2586_v32 = vadd.f32 0.0036580483, %v2585_v12  ;;  %v2805_v6 = vmul.f32 %v5277_v21, %v5230_v51 }
 0x1d0   :  { %v2568_v19 = vadd.f32 %v5235_v25, %v2567_v35  ;;  %v2576_v35 = vor.u32 1.1754944e-38, %v2575_v20  ;;  %v2751_v12 = vmul.f32 %v2750_v37, %v5042_v38  ;;  %v2538_v38 = vmul.f32 %v2537_v10, %v5265_v62 }
 0x1d1   :  { %v2823_v5 = vmul.f32 2.1237322e-06, %v5262_v46  ;;  %v2598_v34 = vmul.f32 %v2597_v4, %v5209_v48  ;;  %v2834_v61 = vmul.f32 3.8918573e-05, %v5262_v46  ;;  %v2587_v2 = vmul.f32 %v2586_v32, %v5209_v48 }
 0x1d2   :  { %v2767_v4 = vmul.f32 %v5245_v39, %v2766_v7  ;;  %v2806_v63 = vsub.f32 1.0, %v2805_v6  ;;  %v2813_v62 = vand.u32 2147483647, %v5230_v51  ;;  %v2752_v20 = vadd.f32 1.1283791, %v2751_v12 }
 0x1d3   :  { %v2824_v11 = vadd.f32 0.00028619796, %v2823_v5  ;;  %v2599_v49 = vadd.f32 0.112945676, %v2598_v34  ;;  %v2835_v40 = vadd.f32 0.001143296, %v2834_v61 }
 0x1d4   :  { %v2588_v3 = vadd.f32 0.05243302, %v2587_v2  ;;  %v2552_v2 = vadd.f32 1.1283791, %v2551_v1  ;;  %vm2814_vm7 = vcmp.eq.f32.partialorder %v2813_v62, 8.507059e+37  ;;  %v4220_v12 = vclamps-f32 %v5255_v47, 1.0 }
 0x1d5   :  { %v2825_v8 = vmul.f32 %v2824_v11, %v5262_v46  ;;  %v2600_v57 = vmul.f32 %v2599_v49, %v5209_v48  ;;  %v2836_v36 = vmul.f32 %v2835_v40, %v5262_v46  ;;  %v2768_v11 = vadd.f32 %v5245_v39, %v2767_v4 }
 0x1d6   :  { %v2589_v7 = vmul.f32 %v2588_v3, %v5209_v48  ;;  %v2572_v40 = vsel %vm5318_vm15, %v5235_v25, %v2568_v19  ;;  %v2553_v37 = vmul.f32 %v2552_v2, %v5053_v24  ;;  %v5387_v47 = vmul.f32 %v5157_v30, %v5133_v53 }
 0x1d7   :  { %v2601_v9 = vadd.f32 0.4994258, %v2600_v57  ;;  %v2837_v32 = vadd.f32 0.014752088, %v2836_v36  ;;  %v2826_v5 = vadd.f32 0.0036580483, %v2825_v8  ;;  %v2807_v57 = vmul.f32 %v5277_v21, %v2806_v63 }
 0x1d8   :  { %v2790_v8 = vadd.f32 0.18741608, %v2789_v23  ;;  %v2577_v36 = vsel %vm2574_vm1, %v2576_v35, %v2572_v40  ;;  %v2590_v50 = vadd.f32 0.18741608, %v2589_v7  ;;  %v2772_v16 = vsel %vm5335_vm2, %v5245_v39, %v2768_v11 }
 0x1d9   :  { %v2602_v34 = vmul.f32 %v2601_v9, %v5209_v48  ;;  %v2838_v58 = vmul.f32 %v2837_v32, %v5262_v46  ;;  %v2827_v44 = vmul.f32 %v2826_v5, %v5262_v46  ;;  %v2808_v1 = vadd.f32 %v5277_v21, %v2807_v57 }
 0x1da   :  { %v2791_v4 = vmul.f32 %v2790_v8, %v5114_v14  ;;  %v2776_v32 = vor.u32 1.1754944e-38, %v2775_v33  ;;  %v2578_v19 = vmul.f32 %v2577_v36, %v2553_v37  ;;  %v2815_v5 = vand.u32 2147483648, %v5230_v51 }
 0x1db   :  { %v5313_v61 = vadd.f32 1.0, %v2602_v34  ;;  %v2839_v0 = vadd.f32 0.112945676, %v2838_v58  ;;  %v2828_v9 = vadd.f32 0.05243302, %v2827_v44  ;;  %v2591_v24 = vmul.f32 %v2590_v50, %v5209_v48 }
 0x1dc   :  { %v4215_v34 = vclamps-f32 %v2538_v38, 1.0  ;;  %v2777_v23 = vsel %vm5339_vm3, %v2776_v32, %v2772_v16  ;;  %v2792_v26 = vadd.f32 1.1283791, %v2791_v4  ;;  %v2812_v48 = vsel %vm5361_vm6, %v5277_v21, %v2808_v1 }
 0x1dd   :  { %4542 = vrcp.f32 %v5313_v61  ;;  %v2840_v28 = vmul.f32 %v2839_v0, %v5262_v46  ;;  %v2829_v58 = vmul.f32 %v2828_v9, %v5262_v46  ;;  %v2816_v10 = vor.u32 1.1754944e-38, %v2815_v5 }
 0x1de   :  { %v4216_v11 = vclamps-f32 %v2578_v19, 1.0  ;;  %v2615_v49 = vand.u32 2147483648, %v5313_v61  ;;  %v2592_v7 = vadd.f32 1.1283791, %v2591_v24  ;;  %v2613_v2 = vand.u32 2147483647, %v5313_v61 }
 0x1df   :  { %v2841_v56 = vadd.f32 0.4994258, %v2840_v28  ;;  %v5374_v40 = vmul.f32 %v5253_v43, %v5148_v15  ;;  %v2753_v44 = vmul.f32 %v2752_v20, %v4992_v55  ;;  %v2817_v21 = vsel %vm2814_vm7, %v2816_v10, %v2812_v48 }
 0x1e0   :  { %v2830_v35 = vadd.f32 0.18741608, %v2829_v58  ;;  %v2864_v8 = vadd.f32 1.0, %v4215_v34  ;;  %v2793_v57 = vmul.f32 %v2792_v26, %v5091_v54  ;;  %vm2609_vm9 = vweird.f32 %v5313_v61 }
 0x1e1   :  { %v2842_v18 = vmul.f32 %v2841_v56, %v5262_v46  ;;  %v2778_v33 = vmul.f32 %v2777_v23, %v2753_v44  ;;  %v2616_v25 = vor.u32 1.1754944e-38, %v2615_v49  ;;  %v2865_v6 = vadd.f32 1.0, %v4216_v11 }
 0x1e2   :  { %v2818_v50 = vmul.f32 %v2817_v21, %v2793_v57  ;;  %v2593_v15 = vmul.f32 %v2592_v7, %v5194_v31  ;;  %vm2614_vm11 = vcmp.eq.f32.partialorder %v2613_v2, 8.507059e+37  ;;  %v2885_v55 = vadd.f32 %v5144_v60, %v5138_v59 }
 0x1e3   :  { %v4543_v3 = vpop.eup %4542  ;;  %v5357_v14 = vadd.f32 1.0, %v2842_v18  ;;  %v2831_v54 = vmul.f32 %v2830_v35, %v5262_v46  ;;  %v2876_v38 = vmul.f32 %v2864_v8, %v5258_v42  ;;  %v2361_v16 = vmul.f32 0.5, %v5046_v52 }
 0x1e4   :  { %v2605_v39 = vmul.f32 %v4543_v3, %v5313_v61  ;;  %vm2610_vm8 = vweird.f32 %v4543_v3  ;;  %v2869_v31 = vadd.f32 1.0, %v4220_v12  ;;  %v4221_v9 = vclamps-f32 %v2778_v33, 1.0 }
 0x1e5   :  { %4544 = vrcp.f32 %v5357_v14  ;;  %vm2611_vm10 = vmor %vm2609_vm9, %vm2610_vm8  ;;  %v2886_v4 = vadd.f32 %v2885_v55, %v5374_v40  ;;  %v4222_v18 = vclamps-f32 %v2818_v50, 1.0  ;;  %v2877_v46 = vmul.f32 %v2865_v6, %v2361_v16 }
 0x1e6   :  { %v2606_v51 = vsub.f32 1.0, %v2605_v39  ;;  %v2855_v32 = vand.u32 2147483648, %v5357_v14  ;;  %v2832_v19 = vadd.f32 1.1283791, %v2831_v54  ;;  %v2853_v53 = vand.u32 2147483647, %v5357_v14 }
 0x1e7   :  { %v2365_v30 = vmul.f32 0.5, %v4898_v29  ;;  %v2362_v52 = vmul.f32 0.5, %v5188_v27  ;;  %v2887_v5 = vadd.f32 %v2886_v4, %v2876_v38  ;;  %v2366_v24 = vmul.f32 0.5, %v4978_v17 }
 0x1e8   :  { %v2607_v0 = vmul.f32 %v4543_v3, %v2606_v51  ;;  %v2870_v39 = vadd.f32 1.0, %v4221_v9  ;;  %vm2849_vm13 = vweird.f32 %v5357_v14  ;;  %v2856_v58 = vor.u32 1.1754944e-38, %v2855_v32 }
 0x1e9   :  { %v2881_v20 = vmul.f32 %v2869_v31, %v2365_v30  ;;  %v2888_v63 = vadd.f32 %v2887_v5, %v2877_v46  ;;  %v2871_v26 = vadd.f32 1.0, %v4222_v18  ;;  %v2833_v48 = vmul.f32 %v2832_v19, %v5241_v45 }
 0x1ea   :  { %v2608_v28 = vadd.f32 %v4543_v3, %v2607_v0  ;;  %vm2854_vm15 = vcmp.eq.f32.partialorder %v2853_v53, 8.507059e+37  ;;  %v2892_v10 = vadd.f32 %v5387_v47, %v5141_v41  ;;  %v2882_v17 = vmul.f32 %v2870_v39, %v2366_v24 }
 0x1eb   :  { %v4545_v36 = vpop.eup %4544  ;;  %v2367_v11 = vmul.f32 0.5, %v5081_v13  ;;  %v2368_v2 = vmul.f32 0.5, %v5232_v22 }
 0x1ec   :  { %v2612_v43 = vsel %vm2611_vm10, %v4543_v3, %v2608_v28  ;;  %v2845_v61 = vmul.f32 %v4545_v36, %v5357_v14  ;;  %vm2850_vm12 = vweird.f32 %v4545_v36  ;;  %v2893_v14 = vadd.f32 %v2892_v10, %v2881_v20 }
 0x1ed   :  { %v2617_v56 = vsel %vm2614_vm11, %v2616_v25, %v2612_v43  ;;  %vm2851_vm14 = vmor %vm2849_vm13, %vm2850_vm12  ;;  %v2883_v7 = vmul.f32 %v2871_v26, %v2367_v11 }
 0x1ee   :  { %v2618_v37 = vmul.f32 %v2617_v56, %v2593_v15  ;;  %v2846_v1 = vsub.f32 1.0, %v2845_v61  ;;  %v2894_v21 = vadd.f32 %v2893_v14, %v2882_v17 }
 0x1f0   :  { %v4217_v3 = vclamps-f32 %v2618_v37, 1.0  ;;  %v2847_v62 = vmul.f32 %v4545_v36, %v2846_v1  ;;  %v2895_v35 = vadd.f32 %v2894_v21, %v2883_v7 }
 0x1f2   :  { %v2866_v42 = vadd.f32 1.0, %v4217_v3  ;;  %v2848_v34 = vadd.f32 %v4545_v36, %v2847_v62 }
 0x1f4   :  { %v2878_v23 = vmul.f32 %v2866_v42, %v2362_v52  ;;  %v2852_v51 = vsel %vm2851_vm14, %v4545_v36, %v2848_v34 }
 0x1f5   :  { %v2857_v27 = vsel %vm2854_vm15, %v2856_v58, %v2852_v51 }
 0x1f6   :  { %v2889_v29 = vadd.f32 %v2888_v63, %v2878_v23  ;;  %v2858_v49 = vmul.f32 %v2857_v27, %v2833_v48  ;;  %v5456_v48 = vld [vmem:[#allocation8] sm:$0x3f] }
 0x1f7   :  { %v2977_v10 = vperm.slane %v5456_v48, 0  ;;  %v2980_v14 = vperm.slane %v5456_v48, 3 }
 0x1f8   :  { %2890 = vadd.xlane.f32.xlu0 %v2889_v29  ;;  %v4223_v0 = vclamps-f32 %v2858_v49, 1.0  ;;  %v5458_v29 = vld [vmem:[#allocation10] sm:$0x3f]  ;;  %v2979_v49 = vperm.slane %v5456_v48, 2 }
 0x1fa   :  { %v2872_v44 = vadd.f32 1.0, %v4223_v0  ;;  %v2981_v0 = vperm.slane %v5456_v48, 4 }
 0x1fc   :  { %v2884_v45 = vmul.f32 %v2872_v44, %v2368_v2  ;;  %v2982_v2 = vperm.slane %v5456_v48, 5  ;;  %v3003_v44 = vperm.slane %v5458_v29, 0 }
 0x1fe   :  { %v2896_v8 = vadd.f32 %v2895_v35, %v2884_v45  ;;  %v3005_v35 = vperm.slane %v5458_v29, 2 }
 0x200   :  { %2897 = vadd.xlane.f32.xlu0 %v2896_v8  ;;  %v3006_v8 = vperm.slane %v5458_v29, 3 }
 0x26b   :  { %v2891_v57 = vpop.xlane.xlu0 %2890 }
 0x26c   :  { %v2899_v28 = vmul.f32 0.0013020834, %v2891_v57 }
 0x26e   :  { %v5404_v12 = vsub.f32 %v5138_v59, %v2899_v28  ;;  %v5407_v13 = vsub.f32 %v5144_v60, %v2899_v28  ;;  %v5410_v33 = vsub.f32 %v5374_v40, %v2899_v28  ;;  %v5412_v25 = vsub.f32 %v2876_v38, %v2899_v28 }
 0x26f   :  { %v5418_v36 = vsub.f32 %v2877_v46, %v2899_v28  ;;  %v5422_v60 = vsub.f32 %v2878_v23, %v2899_v28 }
 0x270   :  { %v2913_v22 = vmul.f32 %v5404_v12, %v5404_v12  ;;  %v2914_v6 = vmul.f32 %v5407_v13, %v5407_v13  ;;  %v2915_v59 = vmul.f32 %v5410_v33, %v5410_v33  ;;  %v2916_v40 = vmul.f32 %v5412_v25, %v5412_v25 }
 0x271   :  { %v2917_v54 = vmul.f32 %v5418_v36, %v5418_v36  ;;  %v2918_v37 = vmul.f32 %v5422_v60, %v5422_v60 }
 0x272   :  { %v2925_v50 = vadd.f32 %v2914_v6, %v2913_v22 }
 0x273   :  { %v2898_v15 = vpop.xlane.xlu0 %2897 }
 0x274   :  { %v2926_v43 = vadd.f32 %v2925_v50, %v2915_v59  ;;  %v2900_v55 = vmul.f32 0.0013020834, %v2898_v15  ;;  %v3007_v50 = vperm.slane %v5458_v29, 4 }
 0x276   :  { %v2927_v56 = vadd.f32 %v2926_v43, %v2916_v40  ;;  %v5429_v61 = vsub.f32 %v5141_v41, %v2900_v55  ;;  %v5432_v38 = vsub.f32 %v5387_v47, %v2900_v55  ;;  %v5434_v16 = vsub.f32 %v2881_v20, %v2900_v55 }
 0x277   :  { %v5438_v9 = vsub.f32 %v2882_v17, %v2900_v55  ;;  %v5444_v41 = vsub.f32 %v2883_v7, %v2900_v55  ;;  %v5448_v46 = vsub.f32 %v2884_v45, %v2900_v55  ;;  %v2978_v17 = vperm.slane %v5456_v48, 1 }
 0x278   :  { %v2928_v31 = vadd.f32 %v2927_v56, %v2917_v54  ;;  %v2919_v4 = vmul.f32 %v5429_v61, %v5429_v61  ;;  %v2920_v1 = vmul.f32 %v5432_v38, %v5432_v38  ;;  %v2921_v47 = vmul.f32 %v5434_v16, %v5434_v16 }
 0x279   :  { %v2922_v32 = vmul.f32 %v5438_v9, %v5438_v9  ;;  %v2923_v62 = vmul.f32 %v5444_v41, %v5444_v41  ;;  %v2924_v30 = vmul.f32 %v5448_v46, %v5448_v46  ;;  %v3004_v45 = vperm.slane %v5458_v29, 1 }
 0x27a   :  { %v2929_v18 = vadd.f32 %v2928_v31, %v2918_v37  ;;  %v2932_v3 = vadd.f32 %v2920_v1, %v2919_v4  ;;  %v3008_v31 = vperm.slane %v5458_v29, 5 }
 0x27c   :  { %2930 = vadd.xlane.f32.xlu1 %v2929_v18  ;;  %v2933_v19 = vadd.f32 %v2932_v3, %v2921_v47 }
 0x27e   :  { %v2934_v53 = vadd.f32 %v2933_v19, %v2922_v32 }
 0x280   :  { %v2935_v52 = vadd.f32 %v2934_v53, %v2923_v62 }
 0x282   :  { %v2936_v42 = vadd.f32 %v2935_v52, %v2924_v30 }
 0x284   :  { %2937 = vadd.xlane.f32.xlu1 %v2936_v42 }
 0x2ef   :  { %v2931_v5 = vpop.xlane.xlu1 %2930 }
 0x2f0   :  { %v2939_v24 = vmul.f32 0.0013020834, %v2931_v5 }
 0x2f2   :  { %v2941_v39 = vadd.f32 1e-12, %v2939_v24 }
 0x2f4   :  { %4546 = vrsqrt.f32 %v2941_v39  ;;  %vm2949_vm1 = vweird.f32 %v2941_v39 }
 0x2f7   :  { %v2938_v34 = vpop.xlane.xlu1 %2937 }
 0x2f8   :  { %v2940_v20 = vmul.f32 0.0013020834, %v2938_v34 }
 0x2fa   :  { %v4547_v23 = vpop.eup %4546  ;;  %v2942_v58 = vadd.f32 1e-12, %v2940_v20 }
 0x2fb   :  { %v2944_v63 = vmul.f32 %v4547_v23, %v2941_v39  ;;  %vm2950_vm0 = vweird.f32 %v4547_v23 }
 0x2fc   :  { %4548 = vrsqrt.f32 %v2942_v58  ;;  %vm2951_vm2 = vmor %vm2949_vm1, %vm2950_vm0  ;;  %vm2959_vm4 = vweird.f32 %v2942_v58 }
 0x2fd   :  { %v2945_v26 = vmul.f32 %v4547_v23, %v2944_v63 }
 0x2ff   :  { %v2946_v51 = vmul.f32 0.5, %v2945_v26 }
 0x301   :  { %v2947_v27 = vsub.f32 1.5, %v2946_v51 }
 0x302   :  { %v4549_v11 = vpop.eup %4548 }
 0x303   :  { %v2948_v7 = vmul.f32 %v4547_v23, %v2947_v27  ;;  %v2954_v21 = vmul.f32 %v4549_v11, %v2942_v58  ;;  %vm2960_vm3 = vweird.f32 %v4549_v11 }
 0x304   :  { %vm2961_vm5 = vmor %vm2959_vm4, %vm2960_vm3 }
 0x305   :  { %v2952_v57 = vsel %vm2951_vm2, %v4547_v23, %v2948_v7  ;;  %v2955_v43 = vmul.f32 %v4549_v11, %v2954_v21 }
 0x306   :  { %v2963_v28 = vmul.f32 %v2952_v57, %v5404_v12  ;;  %v2964_v22 = vmul.f32 %v2952_v57, %v5407_v13  ;;  %v2965_v6 = vmul.f32 %v2952_v57, %v5410_v33  ;;  %v2966_v59 = vmul.f32 %v2952_v57, %v5412_v25 }
 0x307   :  { %v2967_v15 = vmul.f32 %v2952_v57, %v5418_v36  ;;  %v2968_v40 = vmul.f32 %v2952_v57, %v5422_v60  ;;  %v2956_v13 = vmul.f32 0.5, %v2955_v43 }
 0x308   :  { %v2989_v55 = vmul.f32 %v2977_v10, %v2963_v28  ;;  %v2990_v54 = vmul.f32 %v2978_v17, %v2964_v22  ;;  %v2991_v56 = vmul.f32 %v2979_v49, %v2965_v6  ;;  %v2992_v37 = vmul.f32 %v2980_v14, %v2966_v59 }
 0x309   :  { %v2993_v12 = vmul.f32 %v2981_v0, %v2967_v15  ;;  %v2994_v4 = vmul.f32 %v2982_v2, %v2968_v40  ;;  %v2957_v47 = vsub.f32 1.5, %v2956_v13 }
 0x30a   :  { %v3015_v1 = vadd.f32 %v3003_v44, %v2989_v55  ;;  %v3016_v33 = vadd.f32 %v3004_v45, %v2990_v54  ;;  %v3017_v18 = vadd.f32 %v3005_v35, %v2991_v56  ;;  %v3018_v25 = vadd.f32 %v3006_v8, %v2992_v37 }
 0x30b   :  { %v3019_v3 = vadd.f32 %v3007_v50, %v2993_v12  ;;  %v3020_v36 = vadd.f32 %v3008_v31, %v2994_v4  ;;  %v2958_v60 = vmul.f32 %v4549_v11, %v2957_v47 }
 0x30c   :  { %3027 = vst [vmem:[#allocation11] sm:$0xff] %v3015_v1 }
 0x30d   :  { %3028 = vst [vmem:[#allocation11 + $0x8] sm:$0xff] %v3016_v33  ;;  %v2962_v32 = vsel %vm2961_vm5, %v4549_v11, %v2958_v60 }
 0x30e   :  { %3029 = vst [vmem:[#allocation11 + $0x10] sm:$0xff] %v3017_v18  ;;  %v2969_v19 = vmul.f32 %v2962_v32, %v5429_v61  ;;  %v2970_v62 = vmul.f32 %v2962_v32, %v5432_v38  ;;  %v2971_v53 = vmul.f32 %v2962_v32, %v5434_v16  ;;  %v2972_v30 = vmul.f32 %v2962_v32, %v5438_v9 }
 0x30f   :  { %3030 = vst [vmem:[#allocation11 + $0x18] sm:$0xff] %v3018_v25  ;;  %v2973_v52 = vmul.f32 %v2962_v32, %v5444_v41  ;;  %v2974_v42 = vmul.f32 %v2962_v32, %v5448_v46 }
 0x310   :  { %3031 = vst [vmem:[#allocation11 + $0x20] sm:$0xff] %v3019_v3  ;;  %v2995_v5 = vmul.f32 %v2977_v10, %v2969_v19  ;;  %v2996_v24 = vmul.f32 %v2978_v17, %v2970_v62  ;;  %v2997_v39 = vmul.f32 %v2979_v49, %v2971_v53  ;;  %v2998_v34 = vmul.f32 %v2980_v14, %v2972_v30 }
 0x311   :  { %3032 = vst [vmem:[#allocation11 + $0x28] sm:$0xff] %v3020_v36  ;;  %v2999_v20 = vmul.f32 %v2981_v0, %v2973_v52  ;;  %v3000_v23 = vmul.f32 %v2982_v2, %v2974_v42 }
 0x312   :  { %v3021_v63 = vadd.f32 %v3003_v44, %v2995_v5  ;;  %v3022_v58 = vadd.f32 %v3004_v45, %v2996_v24  ;;  %v3023_v61 = vadd.f32 %v3005_v35, %v2997_v39  ;;  %v3024_v26 = vadd.f32 %v3006_v8, %v2998_v34 }
 0x313   :  { %v3025_v38 = vadd.f32 %v3007_v50, %v2999_v20  ;;  %v3026_v16 = vadd.f32 %v3008_v31, %v3000_v23 }
 0x314   :  { %3033 = vst [vmem:[#allocation11 + $0x30] sm:$0xff] %v3021_v63 }
 0x315   :  { %3034 = vst [vmem:[#allocation11 + $0x38] sm:$0xff] %v3022_v58 }
 0x316   :  { %3035 = vst [vmem:[#allocation11 + $0x40] sm:$0xff] %v3023_v61 }
 0x317   :  { %3036 = vst [vmem:[#allocation11 + $0x48] sm:$0xff] %v3024_v26 }
 0x318   :  { %3037 = vst [vmem:[#allocation11 + $0x50] sm:$0xff] %v3025_v38 }
 0x319   :  { %3038 = vst [vmem:[#allocation11 + $0x58] sm:$0xff] %v3026_v16 }
 0x31a   :  { %3051 = dma.vmem_to_hbm [thread:$0]  %s3044_s4, 1536, %s3046_s21, [#allocation4], %s4708_s11, %s4708_s11, %s4709_s12  }
 0x31b   :  { %4701 = dma.done.wait [#allocation4], 1536  }
 0x31c   :  { %4702 = vsyncadd [#allocation4], 4294965760 }
 0x31d   :  { %3056 = vsyncpa [#allocation3], 1 }
 0x31e   :  { %3057 = vsyncpa [#allocation6], 1 }
 0x31f   :  { %3058 = vsyncpa [#allocation9], 1 }
 0x320   :  { %3059 = vsyncpa [#allocation4], 1 }

</bundles_post_ra>
